<compile_context>
chip_gen: v7x
topology: tpu7x:2x2x1
jax: 0.10.0
libtpu: 0.0.40
codegen_flags: <defaults>
</compile_context>

<pallas_src>
import jax
import jax.numpy as jnp
from jax import lax
from jax.experimental import pallas as pl
from jax.experimental.pallas import tpu as pltpu


# ----------------------------------------------------------------------------
# Kernel 1: Cayley map  C = (I + X)^{-1} (I - X)   (X skew-symmetric)
# ----------------------------------------------------------------------------
def cayley_kernel(x_ref, o_ref, m_ref):
    n = x_ref.shape[0]
    X = x_ref[...].astype(jnp.float32)

    r = lax.broadcasted_iota(jnp.int32, (n, n), 0)
    c = lax.broadcasted_iota(jnp.int32, (n, n), 1)
    eye = jnp.where(r == c, 1.0, 0.0).astype(jnp.float32)

    # Fused augmented system M = [A | B] = [I + X | I - X], shape (n, 2n):
    # one rank-1 elimination update per step, 2x lane occupancy.
    m_ref[...] = jnp.concatenate([eye + X, eye - X], axis=1)

    if n <= 128:
        # Fully unrolled: k is a Python int, so the pivot and elimination column
        # are static 1-lane slices (no masked compare/select/reduce), and the
        # straight-line body keeps the LLO scheduler fully informed.
        for k in range(n):
            row = m_ref[pl.ds(k, 1), :]                    # (1, 2n) pivot row
            pivot = row[:, k:k + 1]                        # (1, 1) static slice
            inv_p = 1.0 / pivot                            # exact; off crit path
            row_s = row * inv_p                            # normalized pivot row
            M = m_ref[...]
            col_k = M[:, k:k + 1]                          # (n, 1) static slice
            # Rank-1 elimination; the pivot row is overwritten right after,
            # so no mask is needed on its own factor.
            m_ref[...] = M - col_k * row_s
            m_ref[pl.ds(k, 1), :] = row_s
    else:
        # Dynamic-k fallback for larger n: masked extraction restricted to the
        # A-half (half-width VPU compares and XLU reduces).
        c_half = lax.broadcasted_iota(jnp.int32, (n, n), 1)
        c_row = lax.broadcasted_iota(jnp.int32, (1, n), 1)

        @pl.loop(0, n)
        def _(k):
            row = m_ref[pl.ds(k, 1), :]                                # (1, 2n)
            pivot = jnp.sum(jnp.where(c_row == k, row[:, :n], 0.0),
                            axis=1, keepdims=True)                     # (1, 1)
            inv_p = 1.0 / pivot
            row_s = row * inv_p
            M = m_ref[...]
            col_k = jnp.sum(jnp.where(c_half == k, M[:, :n], 0.0),
                            axis=1, keepdims=True)                     # (n, 1)
            m_ref[...] = M - col_k * row_s
            m_ref[pl.ds(k, 1), :] = row_s
        # TODO(synk): for n >= ~256, block the elimination (small panel on the
        # VPU, trailing update as jnp.dot on the MXU) and store the augmented
        # system sublane-stacked (2n, n) so all slices stay 128-lane aligned.

    o_ref[...] = m_ref[...][:, n:].astype(o_ref.dtype)


def cayley_map(X):
    """C = (I + X)^{-1} (I - X).  X must already be skew-symmetric (as produced
    by a skew parametrization); no silent projection is applied."""
    n = X.shape[0]
    return pl.pallas_call(
        cayley_kernel,
        out_shape=jax.ShapeDtypeStruct((n, n), jnp.float32),
        in_specs=[pl.BlockSpec((n, n), lambda: (0, 0))],
        out_specs=pl.BlockSpec((n, n), lambda: (0, 0)),
        scratch_shapes=[pltpu.VMEM((n, 2 * n), jnp.float32)],
    )(X.astype(jnp.float32))


# ----------------------------------------------------------------------------
# Kernel 2: forward(B) = C @ B @ C.T   (batched over leading dim of B)
# ----------------------------------------------------------------------------
def simtransform_kernel(c_ref, ct_ref, b_ref, o_ref):
    bb, n, _ = b_ref.shape
    C = c_ref[...]
    CT = ct_ref[...]

    # Fused matmul #1: stack the bb B matrices along rows so the MXU sees
    # M = bb*n:  D = stack_b(B[b] @ C.T), shape (bb*n, n).
    b_rows = b_ref[...].reshape(bb * n, n)
    d_rows = jnp.dot(b_rows, CT, preferred_element_type=jnp.float32)

    # Matmul #2, statically unrolled over the batch: out[b] = C @ D[b].
    for b in range(bb):
        d_b = d_rows[b * n:(b + 1) * n, :]                 # static row slice
        o_ref[b] = jnp.dot(C, d_b,
                           preferred_element_type=jnp.float32).astype(o_ref.dtype)


def similarity_transform(C, B):
    """LearnableSimilarityTransform.forward with orthog=True: C @ B @ C.T."""
    squeeze = B.ndim == 2
    if squeeze:
        B = B[None]
    bs, n, _ = B.shape

    C = C.astype(jnp.float32)
    CT = C.T                                   # hoisted once, resident in VMEM

    # Batch several B per grid step (launch-overhead / MXU-utilization win at
    # small n); pad the batch to a multiple of bb with zero matrices.
    bb = int(max(1, min(bs, 512 // max(n, 1))))
    bs_pad = int(pl.cdiv(bs, bb)) * bb
    Bf = B.astype(jnp.float32)
    if bs_pad != bs:
        Bf = jnp.concatenate(
            [Bf, jnp.zeros((bs_pad - bs, n, n), jnp.float32)], axis=0)

    out = pl.pallas_call(
        simtransform_kernel,
        out_shape=jax.ShapeDtypeStruct((bs_pad, n, n), jnp.float32),
        grid=(bs_pad // bb,),
        in_specs=[
            pl.BlockSpec((n, n), lambda i: (0, 0)),        # C resident
            pl.BlockSpec((n, n), lambda i: (0, 0)),        # C.T resident
            pl.BlockSpec((bb, n, n), lambda i: (i, 0, 0)),
        ],
        out_specs=pl.BlockSpec((bb, n, n), lambda i: (i, 0, 0)),
        compiler_params=pltpu.CompilerParams(
            dimension_semantics=("parallel",)),            # megacore over batch
    )(C, CT, Bf)
    # TODO(synk): for n >= ~1024 add output row/col tiling (grid over (bs, n//tm,
    # n//tn)) with an explicit vmem_limit_bytes, bf16 MXU inputs, and a second
    # parallel axis so both v7x TensorCores get work when bs is small.
    out = out[:bs]
    return out[0] if squeeze else out

# TODO(synk): orthog=False branch (C @ B @ torch.linalg.inv(C) for a general,
# non-orthonormal C) would need a partially-pivoted solve; only the default
# orthog=True path (plus the Cayley solve used to build an orthonormal C) is
# implemented.


if __name__ == "__main__":
    n, batch = 32, 2
    key = jax.random.PRNGKey(0)
    k1, k2 = jax.random.split(key)

    # Skew-symmetric parameter -> orthonormal C via the Cayley-map kernel.
    A = jax.random.normal(k1, (n, n), dtype=jnp.float32) * 0.1
    X = A - A.T
    C = jax.block_until_ready(cayley_map(X))

    I = jnp.eye(n, dtype=jnp.float32)
    hi = jax.lax.Precision.HIGHEST
    C_ref = jnp.linalg.solve(I + X, I - X)
    assert jnp.allclose(C, C_ref, atol=1e-4, rtol=1e-4)
    assert jnp.allclose(jnp.matmul(C, C.T, precision=hi), I, atol=1e-4)

    # Module forward: out = C @ B @ C.T
    B = jax.random.normal(k2, (batch, n, n), dtype=jnp.float32)
    out = jax.block_until_ready(similarity_transform(C, B))
    out_ref = jnp.einsum("ij,bjk,lk->bil", C, B, C, precision=hi)
    assert jnp.allclose(out, out_ref, atol=1e-3, rtol=1e-3)

    print("KERNEL_OK")
</pallas_src>

<mosaic_0001>
module attributes {stable_mosaic.version = 11 : i64} {
  func.func @cayley_kernel(%arg0: memref<32x32xf32, #tpu.memory_space<vmem>>, %arg1: memref<32x32xf32, #tpu.memory_space<vmem>>, %arg2: memref<32x64xf32, #tpu.memory_space<vmem>>) attributes {dimension_semantics = [], scalar_prefetch = 0 : i64, scratch_operands = 1 : i64, tpu.core_type = #tpu.core_type<tc>} {
    %c0 = arith.constant 0 : index
    %c0_0 = arith.constant 0 : index
    %0 = vector.load %arg0[%c0, %c0_0] : memref<32x32xf32, #tpu.memory_space<vmem>>, vector<32x32xf32>
    %1 = tpu.iota {dimensions = array<i32: 0>} : vector<32x32xi32>
    %2 = tpu.iota {dimensions = array<i32: 1>} : vector<32x32xi32>
    %3 = arith.cmpi eq, %1, %2 : vector<32x32xi32>
    %cst = arith.constant 1.000000e+00 : f32
    %cst_1 = arith.constant 0.000000e+00 : f32
    %4 = vector.broadcast %cst : f32 to vector<32x32xf32>
    %5 = vector.broadcast %cst_1 : f32 to vector<32x32xf32>
    %6 = arith.select %3, %4, %5 : vector<32x32xi1>, vector<32x32xf32>
    %7 = arith.addf %6, %0 : vector<32x32xf32>
    %8 = arith.subf %6, %0 : vector<32x32xf32>
    %9 = tpu.concatenate %7, %8 in 1 : vector<32x32xf32>, vector<32x32xf32> -> vector<32x64xf32>
    %c0_2 = arith.constant 0 : index
    %c0_3 = arith.constant 0 : index
    %10 = vector.load %arg2[%c0_2, %c0_3] : memref<32x64xf32, #tpu.memory_space<vmem>>, vector<32x64xf32>
    tpu.vector_store %arg2[%c0_2, %c0_3], %9 {strides = array<i32>} : memref<32x64xf32, #tpu.memory_space<vmem>>, vector<32x64xf32>,
    %c0_4 = arith.constant 0 : index
    %c0_5 = arith.constant 0 : index
    %11 = vector.load %arg2[%c0_4, %c0_5] : memref<32x64xf32, #tpu.memory_space<vmem>>, vector<1x64xf32>
    %12 = vector.extract_strided_slice %11 {offsets = [0, 0], sizes = [1, 1], strides = [1, 1]} : vector<1x64xf32> to vector<1x1xf32>
    %cst_6 = arith.constant 1.000000e+00 : f32
    %13 = vector.broadcast %cst_6 : f32 to vector<1x1xf32>
    %14 = arith.divf %13, %12 : vector<1x1xf32>
    %15 = vector.broadcast %14 : vector<1x1xf32> to vector<1x64xf32>
    %16 = arith.mulf %11, %15 : vector<1x64xf32>
    %c0_7 = arith.constant 0 : index
    %c0_8 = arith.constant 0 : index
    %17 = vector.load %arg2[%c0_7, %c0_8] : memref<32x64xf32, #tpu.memory_space<vmem>>, vector<32x64xf32>
    %18 = vector.extract_strided_slice %17 {offsets = [0, 0], sizes = [32, 1], strides = [1, 1]} : vector<32x64xf32> to vector<32x1xf32>
    %19 = vector.broadcast %18 : vector<32x1xf32> to vector<32x64xf32>
    %20 = vector.broadcast %16 : vector<1x64xf32> to vector<32x64xf32>
    %21 = arith.mulf %19, %20 : vector<32x64xf32>
    %22 = arith.subf %17, %21 : vector<32x64xf32>
    %c0_9 = arith.constant 0 : index
    %c0_10 = arith.constant 0 : index
    %23 = vector.load %arg2[%c0_9, %c0_10] : memref<32x64xf32, #tpu.memory_space<vmem>>, vector<32x64xf32>
    tpu.vector_store %arg2[%c0_9, %c0_10], %22 {strides = array<i32>} : memref<32x64xf32, #tpu.memory_space<vmem>>, vector<32x64xf32>,
    %c0_11 = arith.constant 0 : index
    %c0_12 = arith.constant 0 : index
    %24 = vector.load %arg2[%c0_11, %c0_12] : memref<32x64xf32, #tpu.memory_space<vmem>>, vector<1x64xf32>
    tpu.vector_store %arg2[%c0_11, %c0_12], %16 {strides = array<i32>} : memref<32x64xf32, #tpu.memory_space<vmem>>, vector<1x64xf32>,
    %c1 = arith.constant 1 : index
    %c0_13 = arith.constant 0 : index
    %25 = vector.load %arg2[%c1, %c0_13] : memref<32x64xf32, #tpu.memory_space<vmem>>, vector<1x64xf32>
    %26 = vector.extract_strided_slice %25 {offsets = [0, 1], sizes = [1, 1], strides = [1, 1]} : vector<1x64xf32> to vector<1x1xf32>
    %cst_14 = arith.constant 1.000000e+00 : f32
    %27 = vector.broadcast %cst_14 : f32 to vector<1x1xf32>
    %28 = arith.divf %27, %26 : vector<1x1xf32>
    %29 = vector.broadcast %28 : vector<1x1xf32> to vector<1x64xf32>
    %30 = arith.mulf %25, %29 : vector<1x64xf32>
    %c0_15 = arith.constant 0 : index
    %c0_16 = arith.constant 0 : index
    %31 = vector.load %arg2[%c0_15, %c0_16] : memref<32x64xf32, #tpu.memory_space<vmem>>, vector<32x64xf32>
    %32 = vector.extract_strided_slice %31 {offsets = [0, 1], sizes = [32, 1], strides = [1, 1]} : vector<32x64xf32> to vector<32x1xf32>
    %33 = vector.broadcast %32 : vector<32x1xf32> to vector<32x64xf32>
    %34 = vector.broadcast %30 : vector<1x64xf32> to vector<32x64xf32>
    %35 = arith.mulf %33, %34 : vector<32x64xf32>
    %36 = arith.subf %31, %35 : vector<32x64xf32>
    %c0_17 = arith.constant 0 : index
    %c0_18 = arith.constant 0 : index
    %37 = vector.load %arg2[%c0_17, %c0_18] : memref<32x64xf32, #tpu.memory_space<vmem>>, vector<32x64xf32>
    tpu.vector_store %arg2[%c0_17, %c0_18], %36 {strides = array<i32>} : memref<32x64xf32, #tpu.memory_space<vmem>>, vector<32x64xf32>,
    %c1_19 = arith.constant 1 : index
    %c0_20 = arith.constant 0 : index
    %38 = vector.load %arg2[%c1_19, %c0_20] : memref<32x64xf32, #tpu.memory_space<vmem>>, vector<1x64xf32>
    tpu.vector_store %arg2[%c1_19, %c0_20], %30 {strides = array<i32>} : memref<32x64xf32, #tpu.memory_space<vmem>>, vector<1x64xf32>,
    %c2 = arith.constant 2 : index
    %c0_21 = arith.constant 0 : index
    %39 = vector.load %arg2[%c2, %c0_21] : memref<32x64xf32, #tpu.memory_space<vmem>>, vector<1x64xf32>
    %40 = vector.extract_strided_slice %39 {offsets = [0, 2], sizes = [1, 1], strides = [1, 1]} : vector<1x64xf32> to vector<1x1xf32>
    %cst_22 = arith.constant 1.000000e+00 : f32
    %41 = vector.broadcast %cst_22 : f32 to vector<1x1xf32>
    %42 = arith.divf %41, %40 : vector<1x1xf32>
    %43 = vector.broadcast %42 : vector<1x1xf32> to vector<1x64xf32>
    %44 = arith.mulf %39, %43 : vector<1x64xf32>
    %c0_23 = arith.constant 0 : index
    %c0_24 = arith.constant 0 : index
    %45 = vector.load %arg2[%c0_23, %c0_24] : memref<32x64xf32, #tpu.memory_space<vmem>>, vector<32x64xf32>
    %46 = vector.extract_strided_slice %45 {offsets = [0, 2], sizes = [32, 1], strides = [1, 1]} : vector<32x64xf32> to vector<32x1xf32>
    %47 = vector.broadcast %46 : vector<32x1xf32> to vector<32x64xf32>
    %48 = vector.broadcast %44 : vector<1x64xf32> to vector<32x64xf32>
    %49 = arith.mulf %47, %48 : vector<32x64xf32>
    %50 = arith.subf %45, %49 : vector<32x64xf32>
    %c0_25 = arith.constant 0 : index
    %c0_26 = arith.constant 0 : index
    %51 = vector.load %arg2[%c0_25, %c0_26] : memref<32x64xf32, #tpu.memory_space<vmem>>, vector<32x64xf32>
    tpu.vector_store %arg2[%c0_25, %c0_26], %50 {strides = array<i32>} : memref<32x64xf32, #tpu.memory_space<vmem>>, vector<32x64xf32>,
    %c2_27 = arith.constant 2 : index
    %c0_28 = arith.constant 0 : index
    %52 = vector.load %arg2[%c2_27, %c0_28] : memref<32x64xf32, #tpu.memory_space<vmem>>, vector<1x64xf32>
    tpu.vector_store %arg2[%c2_27, %c0_28], %44 {strides = array<i32>} : memref<32x64xf32, #tpu.memory_space<vmem>>, vector<1x64xf32>,
    %c3 = arith.constant 3 : index
    %c0_29 = arith.constant 0 : index
    %53 = vector.load %arg2[%c3, %c0_29] : memref<32x64xf32, #tpu.memory_space<vmem>>, vector<1x64xf32>
    %54 = vector.extract_strided_slice %53 {offsets = [0, 3], sizes = [1, 1], strides = [1, 1]} : vector<1x64xf32> to vector<1x1xf32>
    %cst_30 = arith.constant 1.000000e+00 : f32
    %55 = vector.broadcast %cst_30 : f32 to vector<1x1xf32>
    %56 = arith.divf %55, %54 : vector<1x1xf32>
    %57 = vector.broadcast %56 : vector<1x1xf32> to vector<1x64xf32>
    %58 = arith.mulf %53, %57 : vector<1x64xf32>
    %c0_31 = arith.constant 0 : index
    %c0_32 = arith.constant 0 : index
    %59 = vector.load %arg2[%c0_31, %c0_32] : memref<32x64xf32, #tpu.memory_space<vmem>>, vector<32x64xf32>
    %60 = vector.extract_strided_slice %59 {offsets = [0, 3], sizes = [32, 1], strides = [1, 1]} : vector<32x64xf32> to vector<32x1xf32>
    %61 = vector.broadcast %60 : vector<32x1xf32> to vector<32x64xf32>
    %62 = vector.broadcast %58 : vector<1x64xf32> to vector<32x64xf32>
    %63 = arith.mulf %61, %62 : vector<32x64xf32>
    %64 = arith.subf %59, %63 : vector<32x64xf32>
    %c0_33 = arith.constant 0 : index
    %c0_34 = arith.constant 0 : index
    %65 = vector.load %arg2[%c0_33, %c0_34] : memref<32x64xf32, #tpu.memory_space<vmem>>, vector<32x64xf32>
    tpu.vector_store %arg2[%c0_33, %c0_34], %64 {strides = array<i32>} : memref<32x64xf32, #tpu.memory_space<vmem>>, vector<32x64xf32>,
    %c3_35 = arith.constant 3 : index
    %c0_36 = arith.constant 0 : index
    %66 = vector.load %arg2[%c3_35, %c0_36] : memref<32x64xf32, #tpu.memory_space<vmem>>, vector<1x64xf32>
    tpu.vector_store %arg2[%c3_35, %c0_36], %58 {strides = array<i32>} : memref<32x64xf32, #tpu.memory_space<vmem>>, vector<1x64xf32>,
    %c4 = arith.constant 4 : index
    %c0_37 = arith.constant 0 : index
    %67 = vector.load %arg2[%c4, %c0_37] : memref<32x64xf32, #tpu.memory_space<vmem>>, vector<1x64xf32>
    %68 = vector.extract_strided_slice %67 {offsets = [0, 4], sizes = [1, 1], strides = [1, 1]} : vector<1x64xf32> to vector<1x1xf32>
    %cst_38 = arith.constant 1.000000e+00 : f32
    %69 = vector.broadcast %cst_38 : f32 to vector<1x1xf32>
    %70 = arith.divf %69, %68 : vector<1x1xf32>
    %71 = vector.broadcast %70 : vector<1x1xf32> to vector<1x64xf32>
    %72 = arith.mulf %67, %71 : vector<1x64xf32>
    %c0_39 = arith.constant 0 : index
    %c0_40 = arith.constant 0 : index
    %73 = vector.load %arg2[%c0_39, %c0_40] : memref<32x64xf32, #tpu.memory_space<vmem>>, vector<32x64xf32>
    %74 = vector.extract_strided_slice %73 {offsets = [0, 4], sizes = [32, 1], strides = [1, 1]} : vector<32x64xf32> to vector<32x1xf32>
    %75 = vector.broadcast %74 : vector<32x1xf32> to vector<32x64xf32>
    %76 = vector.broadcast %72 : vector<1x64xf32> to vector<32x64xf32>
    %77 = arith.mulf %75, %76 : vector<32x64xf32>
    %78 = arith.subf %73, %77 : vector<32x64xf32>
    %c0_41 = arith.constant 0 : index
    %c0_42 = arith.constant 0 : index
    %79 = vector.load %arg2[%c0_41, %c0_42] : memref<32x64xf32, #tpu.memory_space<vmem>>, vector<32x64xf32>
    tpu.vector_store %arg2[%c0_41, %c0_42], %78 {strides = array<i32>} : memref<32x64xf32, #tpu.memory_space<vmem>>, vector<32x64xf32>,
    %c4_43 = arith.constant 4 : index
    %c0_44 = arith.constant 0 : index
    %80 = vector.load %arg2[%c4_43, %c0_44] : memref<32x64xf32, #tpu.memory_space<vmem>>, vector<1x64xf32>
    tpu.vector_store %arg2[%c4_43, %c0_44], %72 {strides = array<i32>} : memref<32x64xf32, #tpu.memory_space<vmem>>, vector<1x64xf32>,
    %c5 = arith.constant 5 : index
    %c0_45 = arith.constant 0 : index
    %81 = vector.load %arg2[%c5, %c0_45] : memref<32x64xf32, #tpu.memory_space<vmem>>, vector<1x64xf32>
    %82 = vector.extract_strided_slice %81 {offsets = [0, 5], sizes = [1, 1], strides = [1, 1]} : vector<1x64xf32> to vector<1x1xf32>
    %cst_46 = arith.constant 1.000000e+00 : f32
    %83 = vector.broadcast %cst_46 : f32 to vector<1x1xf32>
    %84 = arith.divf %83, %82 : vector<1x1xf32>
    %85 = vector.broadcast %84 : vector<1x1xf32> to vector<1x64xf32>
    %86 = arith.mulf %81, %85 : vector<1x64xf32>
    %c0_47 = arith.constant 0 : index
    %c0_48 = arith.constant 0 : index
    %87 = vector.load %arg2[%c0_47, %c0_48] : memref<32x64xf32, #tpu.memory_space<vmem>>, vector<32x64xf32>
    %88 = vector.extract_strided_slice %87 {offsets = [0, 5], sizes = [32, 1], strides = [1, 1]} : vector<32x64xf32> to vector<32x1xf32>
    %89 = vector.broadcast %88 : vector<32x1xf32> to vector<32x64xf32>
    %90 = vector.broadcast %86 : vector<1x64xf32> to vector<32x64xf32>
    %91 = arith.mulf %89, %90 : vector<32x64xf32>
    %92 = arith.subf %87, %91 : vector<32x64xf32>
    %c0_49 = arith.constant 0 : index
    %c0_50 = arith.constant 0 : index
    %93 = vector.load %arg2[%c0_49, %c0_50] : memref<32x64xf32, #tpu.memory_space<vmem>>, vector<32x64xf32>
    tpu.vector_store %arg2[%c0_49, %c0_50], %92 {strides = array<i32>} : memref<32x64xf32, #tpu.memory_space<vmem>>, vector<32x64xf32>,
    %c5_51 = arith.constant 5 : index
    %c0_52 = arith.constant 0 : index
    %94 = vector.load %arg2[%c5_51, %c0_52] : memref<32x64xf32, #tpu.memory_space<vmem>>, vector<1x64xf32>
    tpu.vector_store %arg2[%c5_51, %c0_52], %86 {strides = array<i32>} : memref<32x64xf32, #tpu.memory_space<vmem>>, vector<1x64xf32>,
    %c6 = arith.constant 6 : index
    %c0_53 = arith.constant 0 : index
    %95 = vector.load %arg2[%c6, %c0_53] : memref<32x64xf32, #tpu.memory_space<vmem>>, vector<1x64xf32>
    %96 = vector.extract_strided_slice %95 {offsets = [0, 6], sizes = [1, 1], strides = [1, 1]} : vector<1x64xf32> to vector<1x1xf32>
    %cst_54 = arith.constant 1.000000e+00 : f32
    %97 = vector.broadcast %cst_54 : f32 to vector<1x1xf32>
    %98 = arith.divf %97, %96 : vector<1x1xf32>
    %99 = vector.broadcast %98 : vector<1x1xf32> to vector<1x64xf32>
    %100 = arith.mulf %95, %99 : vector<1x64xf32>
    %c0_55 = arith.constant 0 : index
    %c0_56 = arith.constant 0 : index
    %101 = vector.load %arg2[%c0_55, %c0_56] : memref<32x64xf32, #tpu.memory_space<vmem>>, vector<32x64xf32>
    %102 = vector.extract_strided_slice %101 {offsets = [0, 6], sizes = [32, 1], strides = [1, 1]} : vector<32x64xf32> to vector<32x1xf32>
    %103 = vector.broadcast %102 : vector<32x1xf32> to vector<32x64xf32>
    %104 = vector.broadcast %100 : vector<1x64xf32> to vector<32x64xf32>
    %105 = arith.mulf %103, %104 : vector<32x64xf32>
    %106 = arith.subf %101, %105 : vector<32x64xf32>
    %c0_57 = arith.constant 0 : index
    %c0_58 = arith.constant 0 : index
    %107 = vector.load %arg2[%c0_57, %c0_58] : memref<32x64xf32, #tpu.memory_space<vmem>>, vector<32x64xf32>
    tpu.vector_store %arg2[%c0_57, %c0_58], %106 {strides = array<i32>} : memref<32x64xf32, #tpu.memory_space<vmem>>, vector<32x64xf32>,
    %c6_59 = arith.constant 6 : index
    %c0_60 = arith.constant 0 : index
    %108 = vector.load %arg2[%c6_59, %c0_60] : memref<32x64xf32, #tpu.memory_space<vmem>>, vector<1x64xf32>
    tpu.vector_store %arg2[%c6_59, %c0_60], %100 {strides = array<i32>} : memref<32x64xf32, #tpu.memory_space<vmem>>, vector<1x64xf32>,
    %c7 = arith.constant 7 : index
    %c0_61 = arith.constant 0 : index
    %109 = vector.load %arg2[%c7, %c0_61] : memref<32x64xf32, #tpu.memory_space<vmem>>, vector<1x64xf32>
    %110 = vector.extract_strided_slice %109 {offsets = [0, 7], sizes = [1, 1], strides = [1, 1]} : vector<1x64xf32> to vector<1x1xf32>
    %cst_62 = arith.constant 1.000000e+00 : f32
    %111 = vector.broadcast %cst_62 : f32 to vector<1x1xf32>
    %112 = arith.divf %111, %110 : vector<1x1xf32>
    %113 = vector.broadcast %112 : vector<1x1xf32> to vector<1x64xf32>
    %114 = arith.mulf %109, %113 : vector<1x64xf32>
    %c0_63 = arith.constant 0 : index
    %c0_64 = arith.constant 0 : index
    %115 = vector.load %arg2[%c0_63, %c0_64] : memref<32x64xf32, #tpu.memory_space<vmem>>, vector<32x64xf32>
    %116 = vector.extract_strided_slice %115 {offsets = [0, 7], sizes = [32, 1], strides = [1, 1]} : vector<32x64xf32> to vector<32x1xf32>
    %117 = vector.broadcast %116 : vector<32x1xf32> to vector<32x64xf32>
    %118 = vector.broadcast %114 : vector<1x64xf32> to vector<32x64xf32>
    %119 = arith.mulf %117, %118 : vector<32x64xf32>
    %120 = arith.subf %115, %119 : vector<32x64xf32>
    %c0_65 = arith.constant 0 : index
    %c0_66 = arith.constant 0 : index
    %121 = vector.load %arg2[%c0_65, %c0_66] : memref<32x64xf32, #tpu.memory_space<vmem>>, vector<32x64xf32>
    tpu.vector_store %arg2[%c0_65, %c0_66], %120 {strides = array<i32>} : memref<32x64xf32, #tpu.memory_space<vmem>>, vector<32x64xf32>,
    %c7_67 = arith.constant 7 : index
    %c0_68 = arith.constant 0 : index
    %122 = vector.load %arg2[%c7_67, %c0_68] : memref<32x64xf32, #tpu.memory_space<vmem>>, vector<1x64xf32>
    tpu.vector_store %arg2[%c7_67, %c0_68], %114 {strides = array<i32>} : memref<32x64xf32, #tpu.memory_space<vmem>>, vector<1x64xf32>,
    %c8 = arith.constant 8 : index
    %c0_69 = arith.constant 0 : index
    %123 = vector.load %arg2[%c8, %c0_69] : memref<32x64xf32, #tpu.memory_space<vmem>>, vector<1x64xf32>
    %124 = vector.extract_strided_slice %123 {offsets = [0, 8], sizes = [1, 1], strides = [1, 1]} : vector<1x64xf32> to vector<1x1xf32>
    %cst_70 = arith.constant 1.000000e+00 : f32
    %125 = vector.broadcast %cst_70 : f32 to vector<1x1xf32>
    %126 = arith.divf %125, %124 : vector<1x1xf32>
    %127 = vector.broadcast %126 : vector<1x1xf32> to vector<1x64xf32>
    %128 = arith.mulf %123, %127 : vector<1x64xf32>
    %c0_71 = arith.constant 0 : index
    %c0_72 = arith.constant 0 : index
    %129 = vector.load %arg2[%c0_71, %c0_72] : memref<32x64xf32, #tpu.memory_space<vmem>>, vector<32x64xf32>
    %130 = vector.extract_strided_slice %129 {offsets = [0, 8], sizes = [32, 1], strides = [1, 1]} : vector<32x64xf32> to vector<32x1xf32>
    %131 = vector.broadcast %130 : vector<32x1xf32> to vector<32x64xf32>
    %132 = vector.broadcast %128 : vector<1x64xf32> to vector<32x64xf32>
    %133 = arith.mulf %131, %132 : vector<32x64xf32>
    %134 = arith.subf %129, %133 : vector<32x64xf32>
    %c0_73 = arith.constant 0 : index
    %c0_74 = arith.constant 0 : index
    %135 = vector.load %arg2[%c0_73, %c0_74] : memref<32x64xf32, #tpu.memory_space<vmem>>, vector<32x64xf32>
    tpu.vector_store %arg2[%c0_73, %c0_74], %134 {strides = array<i32>} : memref<32x64xf32, #tpu.memory_space<vmem>>, vector<32x64xf32>,
    %c8_75 = arith.constant 8 : index
    %c0_76 = arith.constant 0 : index
    %136 = vector.load %arg2[%c8_75, %c0_76] : memref<32x64xf32, #tpu.memory_space<vmem>>, vector<1x64xf32>
    tpu.vector_store %arg2[%c8_75, %c0_76], %128 {strides = array<i32>} : memref<32x64xf32, #tpu.memory_space<vmem>>, vector<1x64xf32>,
    %c9 = arith.constant 9 : index
    %c0_77 = arith.constant 0 : index
    %137 = vector.load %arg2[%c9, %c0_77] : memref<32x64xf32, #tpu.memory_space<vmem>>, vector<1x64xf32>
    %138 = vector.extract_strided_slice %137 {offsets = [0, 9], sizes = [1, 1], strides = [1, 1]} : vector<1x64xf32> to vector<1x1xf32>
    %cst_78 = arith.constant 1.000000e+00 : f32
    %139 = vector.broadcast %cst_78 : f32 to vector<1x1xf32>
    %140 = arith.divf %139, %138 : vector<1x1xf32>
    %141 = vector.broadcast %140 : vector<1x1xf32> to vector<1x64xf32>
    %142 = arith.mulf %137, %141 : vector<1x64xf32>
    %c0_79 = arith.constant 0 : index
    %c0_80 = arith.constant 0 : index
    %143 = vector.load %arg2[%c0_79, %c0_80] : memref<32x64xf32, #tpu.memory_space<vmem>>, vector<32x64xf32>
    %144 = vector.extract_strided_slice %143 {offsets = [0, 9], sizes = [32, 1], strides = [1, 1]} : vector<32x64xf32> to vector<32x1xf32>
    %145 = vector.broadcast %144 : vector<32x1xf32> to vector<32x64xf32>
    %146 = vector.broadcast %142 : vector<1x64xf32> to vector<32x64xf32>
    %147 = arith.mulf %145, %146 : vector<32x64xf32>
    %148 = arith.subf %143, %147 : vector<32x64xf32>
    %c0_81 = arith.constant 0 : index
    %c0_82 = arith.constant 0 : index
    %149 = vector.load %arg2[%c0_81, %c0_82] : memref<32x64xf32, #tpu.memory_space<vmem>>, vector<32x64xf32>
    tpu.vector_store %arg2[%c0_81, %c0_82], %148 {strides = array<i32>} : memref<32x64xf32, #tpu.memory_space<vmem>>, vector<32x64xf32>,
    %c9_83 = arith.constant 9 : index
    %c0_84 = arith.constant 0 : index
    %150 = vector.load %arg2[%c9_83, %c0_84] : memref<32x64xf32, #tpu.memory_space<vmem>>, vector<1x64xf32>
    tpu.vector_store %arg2[%c9_83, %c0_84], %142 {strides = array<i32>} : memref<32x64xf32, #tpu.memory_space<vmem>>, vector<1x64xf32>,
    %c10 = arith.constant 10 : index
    %c0_85 = arith.constant 0 : index
    %151 = vector.load %arg2[%c10, %c0_85] : memref<32x64xf32, #tpu.memory_space<vmem>>, vector<1x64xf32>
    %152 = vector.extract_strided_slice %151 {offsets = [0, 10], sizes = [1, 1], strides = [1, 1]} : vector<1x64xf32> to vector<1x1xf32>
    %cst_86 = arith.constant 1.000000e+00 : f32
    %153 = vector.broadcast %cst_86 : f32 to vector<1x1xf32>
    %154 = arith.divf %153, %152 : vector<1x1xf32>
    %155 = vector.broadcast %154 : vector<1x1xf32> to vector<1x64xf32>
    %156 = arith.mulf %151, %155 : vector<1x64xf32>
    %c0_87 = arith.constant 0 : index
    %c0_88 = arith.constant 0 : index
    %157 = vector.load %arg2[%c0_87, %c0_88] : memref<32x64xf32, #tpu.memory_space<vmem>>, vector<32x64xf32>
    %158 = vector.extract_strided_slice %157 {offsets = [0, 10], sizes = [32, 1], strides = [1, 1]} : vector<32x64xf32> to vector<32x1xf32>
    %159 = vector.broadcast %158 : vector<32x1xf32> to vector<32x64xf32>
    %160 = vector.broadcast %156 : vector<1x64xf32> to vector<32x64xf32>
    %161 = arith.mulf %159, %160 : vector<32x64xf32>
    %162 = arith.subf %157, %161 : vector<32x64xf32>
    %c0_89 = arith.constant 0 : index
    %c0_90 = arith.constant 0 : index
    %163 = vector.load %arg2[%c0_89, %c0_90] : memref<32x64xf32, #tpu.memory_space<vmem>>, vector<32x64xf32>
    tpu.vector_store %arg2[%c0_89, %c0_90], %162 {strides = array<i32>} : memref<32x64xf32, #tpu.memory_space<vmem>>, vector<32x64xf32>,
    %c10_91 = arith.constant 10 : index
    %c0_92 = arith.constant 0 : index
    %164 = vector.load %arg2[%c10_91, %c0_92] : memref<32x64xf32, #tpu.memory_space<vmem>>, vector<1x64xf32>
    tpu.vector_store %arg2[%c10_91, %c0_92], %156 {strides = array<i32>} : memref<32x64xf32, #tpu.memory_space<vmem>>, vector<1x64xf32>,
    %c11 = arith.constant 11 : index
    %c0_93 = arith.constant 0 : index
    %165 = vector.load %arg2[%c11, %c0_93] : memref<32x64xf32, #tpu.memory_space<vmem>>, vector<1x64xf32>
    %166 = vector.extract_strided_slice %165 {offsets = [0, 11], sizes = [1, 1], strides = [1, 1]} : vector<1x64xf32> to vector<1x1xf32>
    %cst_94 = arith.constant 1.000000e+00 : f32
    %167 = vector.broadcast %cst_94 : f32 to vector<1x1xf32>
    %168 = arith.divf %167, %166 : vector<1x1xf32>
    %169 = vector.broadcast %168 : vector<1x1xf32> to vector<1x64xf32>
    %170 = arith.mulf %165, %169 : vector<1x64xf32>
    %c0_95 = arith.constant 0 : index
    %c0_96 = arith.constant 0 : index
    %171 = vector.load %arg2[%c0_95, %c0_96] : memref<32x64xf32, #tpu.memory_space<vmem>>, vector<32x64xf32>
    %172 = vector.extract_strided_slice %171 {offsets = [0, 11], sizes = [32, 1], strides = [1, 1]} : vector<32x64xf32> to vector<32x1xf32>
    %173 = vector.broadcast %172 : vector<32x1xf32> to vector<32x64xf32>
    %174 = vector.broadcast %170 : vector<1x64xf32> to vector<32x64xf32>
    %175 = arith.mulf %173, %174 : vector<32x64xf32>
    %176 = arith.subf %171, %175 : vector<32x64xf32>
    %c0_97 = arith.constant 0 : index
    %c0_98 = arith.constant 0 : index
    %177 = vector.load %arg2[%c0_97, %c0_98] : memref<32x64xf32, #tpu.memory_space<vmem>>, vector<32x64xf32>
    tpu.vector_store %arg2[%c0_97, %c0_98], %176 {strides = array<i32>} : memref<32x64xf32, #tpu.memory_space<vmem>>, vector<32x64xf32>,
    %c11_99 = arith.constant 11 : index
    %c0_100 = arith.constant 0 : index
    %178 = vector.load %arg2[%c11_99, %c0_100] : memref<32x64xf32, #tpu.memory_space<vmem>>, vector<1x64xf32>
    tpu.vector_store %arg2[%c11_99, %c0_100], %170 {strides = array<i32>} : memref<32x64xf32, #tpu.memory_space<vmem>>, vector<1x64xf32>,
    %c12 = arith.constant 12 : index
    %c0_101 = arith.constant 0 : index
    %179 = vector.load %arg2[%c12, %c0_101] : memref<32x64xf32, #tpu.memory_space<vmem>>, vector<1x64xf32>
    %180 = vector.extract_strided_slice %179 {offsets = [0, 12], sizes = [1, 1], strides = [1, 1]} : vector<1x64xf32> to vector<1x1xf32>
    %cst_102 = arith.constant 1.000000e+00 : f32
    %181 = vector.broadcast %cst_102 : f32 to vector<1x1xf32>
    %182 = arith.divf %181, %180 : vector<1x1xf32>
    %183 = vector.broadcast %182 : vector<1x1xf32> to vector<1x64xf32>
    %184 = arith.mulf %179, %183 : vector<1x64xf32>
    %c0_103 = arith.constant 0 : index
    %c0_104 = arith.constant 0 : index
    %185 = vector.load %arg2[%c0_103, %c0_104] : memref<32x64xf32, #tpu.memory_space<vmem>>, vector<32x64xf32>
    %186 = vector.extract_strided_slice %185 {offsets = [0, 12], sizes = [32, 1], strides = [1, 1]} : vector<32x64xf32> to vector<32x1xf32>
    %187 = vector.broadcast %186 : vector<32x1xf32> to vector<32x64xf32>
    %188 = vector.broadcast %184 : vector<1x64xf32> to vector<32x64xf32>
    %189 = arith.mulf %187, %188 : vector<32x64xf32>
    %190 = arith.subf %185, %189 : vector<32x64xf32>
    %c0_105 = arith.constant 0 : index
    %c0_106 = arith.constant 0 : index
    %191 = vector.load %arg2[%c0_105, %c0_106] : memref<32x64xf32, #tpu.memory_space<vmem>>, vector<32x64xf32>
    tpu.vector_store %arg2[%c0_105, %c0_106], %190 {strides = array<i32>} : memref<32x64xf32, #tpu.memory_space<vmem>>, vector<32x64xf32>,
    %c12_107 = arith.constant 12 : index
    %c0_108 = arith.constant 0 : index
    %192 = vector.load %arg2[%c12_107, %c0_108] : memref<32x64xf32, #tpu.memory_space<vmem>>, vector<1x64xf32>
    tpu.vector_store %arg2[%c12_107, %c0_108], %184 {strides = array<i32>} : memref<32x64xf32, #tpu.memory_space<vmem>>, vector<1x64xf32>,
    %c13 = arith.constant 13 : index
    %c0_109 = arith.constant 0 : index
    %193 = vector.load %arg2[%c13, %c0_109] : memref<32x64xf32, #tpu.memory_space<vmem>>, vector<1x64xf32>
    %194 = vector.extract_strided_slice %193 {offsets = [0, 13], sizes = [1, 1], strides = [1, 1]} : vector<1x64xf32> to vector<1x1xf32>
    %cst_110 = arith.constant 1.000000e+00 : f32
    %195 = vector.broadcast %cst_110 : f32 to vector<1x1xf32>
    %196 = arith.divf %195, %194 : vector<1x1xf32>
    %197 = vector.broadcast %196 : vector<1x1xf32> to vector<1x64xf32>
    %198 = arith.mulf %193, %197 : vector<1x64xf32>
    %c0_111 = arith.constant 0 : index
    %c0_112 = arith.constant 0 : index
    %199 = vector.load %arg2[%c0_111, %c0_112] : memref<32x64xf32, #tpu.memory_space<vmem>>, vector<32x64xf32>
    %200 = vector.extract_strided_slice %199 {offsets = [0, 13], sizes = [32, 1], strides = [1, 1]} : vector<32x64xf32> to vector<32x1xf32>
    %201 = vector.broadcast %200 : vector<32x1xf32> to vector<32x64xf32>
    %202 = vector.broadcast %198 : vector<1x64xf32> to vector<32x64xf32>
    %203 = arith.mulf %201, %202 : vector<32x64xf32>
    %204 = arith.subf %199, %203 : vector<32x64xf32>
    %c0_113 = arith.constant 0 : index
    %c0_114 = arith.constant 0 : index
    %205 = vector.load %arg2[%c0_113, %c0_114] : memref<32x64xf32, #tpu.memory_space<vmem>>, vector<32x64xf32>
    tpu.vector_store %arg2[%c0_113, %c0_114], %204 {strides = array<i32>} : memref<32x64xf32, #tpu.memory_space<vmem>>, vector<32x64xf32>,
    %c13_115 = arith.constant 13 : index
    %c0_116 = arith.constant 0 : index
    %206 = vector.load %arg2[%c13_115, %c0_116] : memref<32x64xf32, #tpu.memory_space<vmem>>, vector<1x64xf32>
    tpu.vector_store %arg2[%c13_115, %c0_116], %198 {strides = array<i32>} : memref<32x64xf32, #tpu.memory_space<vmem>>, vector<1x64xf32>,
    %c14 = arith.constant 14 : index
    %c0_117 = arith.constant 0 : index
    %207 = vector.load %arg2[%c14, %c0_117] : memref<32x64xf32, #tpu.memory_space<vmem>>, vector<1x64xf32>
    %208 = vector.extract_strided_slice %207 {offsets = [0, 14], sizes = [1, 1], strides = [1, 1]} : vector<1x64xf32> to vector<1x1xf32>
    %cst_118 = arith.constant 1.000000e+00 : f32
    %209 = vector.broadcast %cst_118 : f32 to vector<1x1xf32>
    %210 = arith.divf %209, %208 : vector<1x1xf32>
    %211 = vector.broadcast %210 : vector<1x1xf32> to vector<1x64xf32>
    %212 = arith.mulf %207, %211 : vector<1x64xf32>
    %c0_119 = arith.constant 0 : index
    %c0_120 = arith.constant 0 : index
    %213 = vector.load %arg2[%c0_119, %c0_120] : memref<32x64xf32, #tpu.memory_space<vmem>>, vector<32x64xf32>
    %214 = vector.extract_strided_slice %213 {offsets = [0, 14], sizes = [32, 1], strides = [1, 1]} : vector<32x64xf32> to vector<32x1xf32>
    %215 = vector.broadcast %214 : vector<32x1xf32> to vector<32x64xf32>
    %216 = vector.broadcast %212 : vector<1x64xf32> to vector<32x64xf32>
    %217 = arith.mulf %215, %216 : vector<32x64xf32>
    %218 = arith.subf %213, %217 : vector<32x64xf32>
    %c0_121 = arith.constant 0 : index
    %c0_122 = arith.constant 0 : index
    %219 = vector.load %arg2[%c0_121, %c0_122] : memref<32x64xf32, #tpu.memory_space<vmem>>, vector<32x64xf32>
    tpu.vector_store %arg2[%c0_121, %c0_122], %218 {strides = array<i32>} : memref<32x64xf32, #tpu.memory_space<vmem>>, vector<32x64xf32>,
    %c14_123 = arith.constant 14 : index
    %c0_124 = arith.constant 0 : index
    %220 = vector.load %arg2[%c14_123, %c0_124] : memref<32x64xf32, #tpu.memory_space<vmem>>, vector<1x64xf32>
    tpu.vector_store %arg2[%c14_123, %c0_124], %212 {strides = array<i32>} : memref<32x64xf32, #tpu.memory_space<vmem>>, vector<1x64xf32>,
    %c15 = arith.constant 15 : index
    %c0_125 = arith.constant 0 : index
    %221 = vector.load %arg2[%c15, %c0_125] : memref<32x64xf32, #tpu.memory_space<vmem>>, vector<1x64xf32>
    %222 = vector.extract_strided_slice %221 {offsets = [0, 15], sizes = [1, 1], strides = [1, 1]} : vector<1x64xf32> to vector<1x1xf32>
    %cst_126 = arith.constant 1.000000e+00 : f32
    %223 = vector.broadcast %cst_126 : f32 to vector<1x1xf32>
    %224 = arith.divf %223, %222 : vector<1x1xf32>
    %225 = vector.broadcast %224 : vector<1x1xf32> to vector<1x64xf32>
    %226 = arith.mulf %221, %225 : vector<1x64xf32>
    %c0_127 = arith.constant 0 : index
    %c0_128 = arith.constant 0 : index
    %227 = vector.load %arg2[%c0_127, %c0_128] : memref<32x64xf32, #tpu.memory_space<vmem>>, vector<32x64xf32>
    %228 = vector.extract_strided_slice %227 {offsets = [0, 15], sizes = [32, 1], strides = [1, 1]} : vector<32x64xf32> to vector<32x1xf32>
    %229 = vector.broadcast %228 : vector<32x1xf32> to vector<32x64xf32>
    %230 = vector.broadcast %226 : vector<1x64xf32> to vector<32x64xf32>
    %231 = arith.mulf %229, %230 : vector<32x64xf32>
    %232 = arith.subf %227, %231 : vector<32x64xf32>
    %c0_129 = arith.constant 0 : index
    %c0_130 = arith.constant 0 : index
    %233 = vector.load %arg2[%c0_129, %c0_130] : memref<32x64xf32, #tpu.memory_space<vmem>>, vector<32x64xf32>
    tpu.vector_store %arg2[%c0_129, %c0_130], %232 {strides = array<i32>} : memref<32x64xf32, #tpu.memory_space<vmem>>, vector<32x64xf32>,
    %c15_131 = arith.constant 15 : index
    %c0_132 = arith.constant 0 : index
    %234 = vector.load %arg2[%c15_131, %c0_132] : memref<32x64xf32, #tpu.memory_space<vmem>>, vector<1x64xf32>
    tpu.vector_store %arg2[%c15_131, %c0_132], %226 {strides = array<i32>} : memref<32x64xf32, #tpu.memory_space<vmem>>, vector<1x64xf32>,
    %c16 = arith.constant 16 : index
    %c0_133 = arith.constant 0 : index
    %235 = vector.load %arg2[%c16, %c0_133] : memref<32x64xf32, #tpu.memory_space<vmem>>, vector<1x64xf32>
    %236 = vector.extract_strided_slice %235 {offsets = [0, 16], sizes = [1, 1], strides = [1, 1]} : vector<1x64xf32> to vector<1x1xf32>
    %cst_134 = arith.constant 1.000000e+00 : f32
    %237 = vector.broadcast %cst_134 : f32 to vector<1x1xf32>
    %238 = arith.divf %237, %236 : vector<1x1xf32>
    %239 = vector.broadcast %238 : vector<1x1xf32> to vector<1x64xf32>
    %240 = arith.mulf %235, %239 : vector<1x64xf32>
    %c0_135 = arith.constant 0 : index
    %c0_136 = arith.constant 0 : index
    %241 = vector.load %arg2[%c0_135, %c0_136] : memref<32x64xf32, #tpu.memory_space<vmem>>, vector<32x64xf32>
    %242 = vector.extract_strided_slice %241 {offsets = [0, 16], sizes = [32, 1], strides = [1, 1]} : vector<32x64xf32> to vector<32x1xf32>
    %243 = vector.broadcast %242 : vector<32x1xf32> to vector<32x64xf32>
    %244 = vector.broadcast %240 : vector<1x64xf32> to vector<32x64xf32>
    %245 = arith.mulf %243, %244 : vector<32x64xf32>
    %246 = arith.subf %241, %245 : vector<32x64xf32>
    %c0_137 = arith.constant 0 : index
    %c0_138 = arith.constant 0 : index
    %247 = vector.load %arg2[%c0_137, %c0_138] : memref<32x64xf32, #tpu.memory_space<vmem>>, vector<32x64xf32>
    tpu.vector_store %arg2[%c0_137, %c0_138], %246 {strides = array<i32>} : memref<32x64xf32, #tpu.memory_space<vmem>>, vector<32x64xf32>,
    %c16_139 = arith.constant 16 : index
    %c0_140 = arith.constant 0 : index
    %248 = vector.load %arg2[%c16_139, %c0_140] : memref<32x64xf32, #tpu.memory_space<vmem>>, vector<1x64xf32>
    tpu.vector_store %arg2[%c16_139, %c0_140], %240 {strides = array<i32>} : memref<32x64xf32, #tpu.memory_space<vmem>>, vector<1x64xf32>,
    %c17 = arith.constant 17 : index
    %c0_141 = arith.constant 0 : index
    %249 = vector.load %arg2[%c17, %c0_141] : memref<32x64xf32, #tpu.memory_space<vmem>>, vector<1x64xf32>
    %250 = vector.extract_strided_slice %249 {offsets = [0, 17], sizes = [1, 1], strides = [1, 1]} : vector<1x64xf32> to vector<1x1xf32>
    %cst_142 = arith.constant 1.000000e+00 : f32
    %251 = vector.broadcast %cst_142 : f32 to vector<1x1xf32>
    %252 = arith.divf %251, %250 : vector<1x1xf32>
    %253 = vector.broadcast %252 : vector<1x1xf32> to vector<1x64xf32>
    %254 = arith.mulf %249, %253 : vector<1x64xf32>
    %c0_143 = arith.constant 0 : index
    %c0_144 = arith.constant 0 : index
    %255 = vector.load %arg2[%c0_143, %c0_144] : memref<32x64xf32, #tpu.memory_space<vmem>>, vector<32x64xf32>
    %256 = vector.extract_strided_slice %255 {offsets = [0, 17], sizes = [32, 1], strides = [1, 1]} : vector<32x64xf32> to vector<32x1xf32>
    %257 = vector.broadcast %256 : vector<32x1xf32> to vector<32x64xf32>
    %258 = vector.broadcast %254 : vector<1x64xf32> to vector<32x64xf32>
    %259 = arith.mulf %257, %258 : vector<32x64xf32>
    %260 = arith.subf %255, %259 : vector<32x64xf32>
    %c0_145 = arith.constant 0 : index
    %c0_146 = arith.constant 0 : index
    %261 = vector.load %arg2[%c0_145, %c0_146] : memref<32x64xf32, #tpu.memory_space<vmem>>, vector<32x64xf32>
    tpu.vector_store %arg2[%c0_145, %c0_146], %260 {strides = array<i32>} : memref<32x64xf32, #tpu.memory_space<vmem>>, vector<32x64xf32>,
    %c17_147 = arith.constant 17 : index
    %c0_148 = arith.constant 0 : index
    %262 = vector.load %arg2[%c17_147, %c0_148] : memref<32x64xf32, #tpu.memory_space<vmem>>, vector<1x64xf32>
    tpu.vector_store %arg2[%c17_147, %c0_148], %254 {strides = array<i32>} : memref<32x64xf32, #tpu.memory_space<vmem>>, vector<1x64xf32>,
    %c18 = arith.constant 18 : index
    %c0_149 = arith.constant 0 : index
    %263 = vector.load %arg2[%c18, %c0_149] : memref<32x64xf32, #tpu.memory_space<vmem>>, vector<1x64xf32>
    %264 = vector.extract_strided_slice %263 {offsets = [0, 18], sizes = [1, 1], strides = [1, 1]} : vector<1x64xf32> to vector<1x1xf32>
    %cst_150 = arith.constant 1.000000e+00 : f32
    %265 = vector.broadcast %cst_150 : f32 to vector<1x1xf32>
    %266 = arith.divf %265, %264 : vector<1x1xf32>
    %267 = vector.broadcast %266 : vector<1x1xf32> to vector<1x64xf32>
    %268 = arith.mulf %263, %267 : vector<1x64xf32>
    %c0_151 = arith.constant 0 : index
    %c0_152 = arith.constant 0 : index
    %269 = vector.load %arg2[%c0_151, %c0_152] : memref<32x64xf32, #tpu.memory_space<vmem>>, vector<32x64xf32>
    %270 = vector.extract_strided_slice %269 {offsets = [0, 18], sizes = [32, 1], strides = [1, 1]} : vector<32x64xf32> to vector<32x1xf32>
    %271 = vector.broadcast %270 : vector<32x1xf32> to vector<32x64xf32>
    %272 = vector.broadcast %268 : vector<1x64xf32> to vector<32x64xf32>
    %273 = arith.mulf %271, %272 : vector<32x64xf32>
    %274 = arith.subf %269, %273 : vector<32x64xf32>
    %c0_153 = arith.constant 0 : index
    %c0_154 = arith.constant 0 : index
    %275 = vector.load %arg2[%c0_153, %c0_154] : memref<32x64xf32, #tpu.memory_space<vmem>>, vector<32x64xf32>
    tpu.vector_store %arg2[%c0_153, %c0_154], %274 {strides = array<i32>} : memref<32x64xf32, #tpu.memory_space<vmem>>, vector<32x64xf32>,
    %c18_155 = arith.constant 18 : index
    %c0_156 = arith.constant 0 : index
    %276 = vector.load %arg2[%c18_155, %c0_156] : memref<32x64xf32, #tpu.memory_space<vmem>>, vector<1x64xf32>
    tpu.vector_store %arg2[%c18_155, %c0_156], %268 {strides = array<i32>} : memref<32x64xf32, #tpu.memory_space<vmem>>, vector<1x64xf32>,
    %c19 = arith.constant 19 : index
    %c0_157 = arith.constant 0 : index
    %277 = vector.load %arg2[%c19, %c0_157] : memref<32x64xf32, #tpu.memory_space<vmem>>, vector<1x64xf32>
    %278 = vector.extract_strided_slice %277 {offsets = [0, 19], sizes = [1, 1], strides = [1, 1]} : vector<1x64xf32> to vector<1x1xf32>
    %cst_158 = arith.constant 1.000000e+00 : f32
    %279 = vector.broadcast %cst_158 : f32 to vector<1x1xf32>
    %280 = arith.divf %279, %278 : vector<1x1xf32>
    %281 = vector.broadcast %280 : vector<1x1xf32> to vector<1x64xf32>
    %282 = arith.mulf %277, %281 : vector<1x64xf32>
    %c0_159 = arith.constant 0 : index
    %c0_160 = arith.constant 0 : index
    %283 = vector.load %arg2[%c0_159, %c0_160] : memref<32x64xf32, #tpu.memory_space<vmem>>, vector<32x64xf32>
    %284 = vector.extract_strided_slice %283 {offsets = [0, 19], sizes = [32, 1], strides = [1, 1]} : vector<32x64xf32> to vector<32x1xf32>
    %285 = vector.broadcast %284 : vector<32x1xf32> to vector<32x64xf32>
    %286 = vector.broadcast %282 : vector<1x64xf32> to vector<32x64xf32>
    %287 = arith.mulf %285, %286 : vector<32x64xf32>
    %288 = arith.subf %283, %287 : vector<32x64xf32>
    %c0_161 = arith.constant 0 : index
    %c0_162 = arith.constant 0 : index
    %289 = vector.load %arg2[%c0_161, %c0_162] : memref<32x64xf32, #tpu.memory_space<vmem>>, vector<32x64xf32>
    tpu.vector_store %arg2[%c0_161, %c0_162], %288 {strides = array<i32>} : memref<32x64xf32, #tpu.memory_space<vmem>>, vector<32x64xf32>,
    %c19_163 = arith.constant 19 : index
    %c0_164 = arith.constant 0 : index
    %290 = vector.load %arg2[%c19_163, %c0_164] : memref<32x64xf32, #tpu.memory_space<vmem>>, vector<1x64xf32>
    tpu.vector_store %arg2[%c19_163, %c0_164], %282 {strides = array<i32>} : memref<32x64xf32, #tpu.memory_space<vmem>>, vector<1x64xf32>,
    %c20 = arith.constant 20 : index
    %c0_165 = arith.constant 0 : index
    %291 = vector.load %arg2[%c20, %c0_165] : memref<32x64xf32, #tpu.memory_space<vmem>>, vector<1x64xf32>
    %292 = vector.extract_strided_slice %291 {offsets = [0, 20], sizes = [1, 1], strides = [1, 1]} : vector<1x64xf32> to vector<1x1xf32>
    %cst_166 = arith.constant 1.000000e+00 : f32
    %293 = vector.broadcast %cst_166 : f32 to vector<1x1xf32>
    %294 = arith.divf %293, %292 : vector<1x1xf32>
    %295 = vector.broadcast %294 : vector<1x1xf32> to vector<1x64xf32>
    %296 = arith.mulf %291, %295 : vector<1x64xf32>
    %c0_167 = arith.constant 0 : index
    %c0_168 = arith.constant 0 : index
    %297 = vector.load %arg2[%c0_167, %c0_168] : memref<32x64xf32, #tpu.memory_space<vmem>>, vector<32x64xf32>
    %298 = vector.extract_strided_slice %297 {offsets = [0, 20], sizes = [32, 1], strides = [1, 1]} : vector<32x64xf32> to vector<32x1xf32>
    %299 = vector.broadcast %298 : vector<32x1xf32> to vector<32x64xf32>
    %300 = vector.broadcast %296 : vector<1x64xf32> to vector<32x64xf32>
    %301 = arith.mulf %299, %300 : vector<32x64xf32>
    %302 = arith.subf %297, %301 : vector<32x64xf32>
    %c0_169 = arith.constant 0 : index
    %c0_170 = arith.constant 0 : index
    %303 = vector.load %arg2[%c0_169, %c0_170] : memref<32x64xf32, #tpu.memory_space<vmem>>, vector<32x64xf32>
    tpu.vector_store %arg2[%c0_169, %c0_170], %302 {strides = array<i32>} : memref<32x64xf32, #tpu.memory_space<vmem>>, vector<32x64xf32>,
    %c20_171 = arith.constant 20 : index
    %c0_172 = arith.constant 0 : index
    %304 = vector.load %arg2[%c20_171, %c0_172] : memref<32x64xf32, #tpu.memory_space<vmem>>, vector<1x64xf32>
    tpu.vector_store %arg2[%c20_171, %c0_172], %296 {strides = array<i32>} : memref<32x64xf32, #tpu.memory_space<vmem>>, vector<1x64xf32>,
    %c21 = arith.constant 21 : index
    %c0_173 = arith.constant 0 : index
    %305 = vector.load %arg2[%c21, %c0_173] : memref<32x64xf32, #tpu.memory_space<vmem>>, vector<1x64xf32>
    %306 = vector.extract_strided_slice %305 {offsets = [0, 21], sizes = [1, 1], strides = [1, 1]} : vector<1x64xf32> to vector<1x1xf32>
    %cst_174 = arith.constant 1.000000e+00 : f32
    %307 = vector.broadcast %cst_174 : f32 to vector<1x1xf32>
    %308 = arith.divf %307, %306 : vector<1x1xf32>
    %309 = vector.broadcast %308 : vector<1x1xf32> to vector<1x64xf32>
    %310 = arith.mulf %305, %309 : vector<1x64xf32>
    %c0_175 = arith.constant 0 : index
    %c0_176 = arith.constant 0 : index
    %311 = vector.load %arg2[%c0_175, %c0_176] : memref<32x64xf32, #tpu.memory_space<vmem>>, vector<32x64xf32>
    %312 = vector.extract_strided_slice %311 {offsets = [0, 21], sizes = [32, 1], strides = [1, 1]} : vector<32x64xf32> to vector<32x1xf32>
    %313 = vector.broadcast %312 : vector<32x1xf32> to vector<32x64xf32>
    %314 = vector.broadcast %310 : vector<1x64xf32> to vector<32x64xf32>
    %315 = arith.mulf %313, %314 : vector<32x64xf32>
    %316 = arith.subf %311, %315 : vector<32x64xf32>
    %c0_177 = arith.constant 0 : index
    %c0_178 = arith.constant 0 : index
    %317 = vector.load %arg2[%c0_177, %c0_178] : memref<32x64xf32, #tpu.memory_space<vmem>>, vector<32x64xf32>
    tpu.vector_store %arg2[%c0_177, %c0_178], %316 {strides = array<i32>} : memref<32x64xf32, #tpu.memory_space<vmem>>, vector<32x64xf32>,
    %c21_179 = arith.constant 21 : index
    %c0_180 = arith.constant 0 : index
    %318 = vector.load %arg2[%c21_179, %c0_180] : memref<32x64xf32, #tpu.memory_space<vmem>>, vector<1x64xf32>
    tpu.vector_store %arg2[%c21_179, %c0_180], %310 {strides = array<i32>} : memref<32x64xf32, #tpu.memory_space<vmem>>, vector<1x64xf32>,
    %c22 = arith.constant 22 : index
    %c0_181 = arith.constant 0 : index
    %319 = vector.load %arg2[%c22, %c0_181] : memref<32x64xf32, #tpu.memory_space<vmem>>, vector<1x64xf32>
    %320 = vector.extract_strided_slice %319 {offsets = [0, 22], sizes = [1, 1], strides = [1, 1]} : vector<1x64xf32> to vector<1x1xf32>
    %cst_182 = arith.constant 1.000000e+00 : f32
    %321 = vector.broadcast %cst_182 : f32 to vector<1x1xf32>
    %322 = arith.divf %321, %320 : vector<1x1xf32>
    %323 = vector.broadcast %322 : vector<1x1xf32> to vector<1x64xf32>
    %324 = arith.mulf %319, %323 : vector<1x64xf32>
    %c0_183 = arith.constant 0 : index
    %c0_184 = arith.constant 0 : index
    %325 = vector.load %arg2[%c0_183, %c0_184] : memref<32x64xf32, #tpu.memory_space<vmem>>, vector<32x64xf32>
    %326 = vector.extract_strided_slice %325 {offsets = [0, 22], sizes = [32, 1], strides = [1, 1]} : vector<32x64xf32> to vector<32x1xf32>
    %327 = vector.broadcast %326 : vector<32x1xf32> to vector<32x64xf32>
    %328 = vector.broadcast %324 : vector<1x64xf32> to vector<32x64xf32>
    %329 = arith.mulf %327, %328 : vector<32x64xf32>
    %330 = arith.subf %325, %329 : vector<32x64xf32>
    %c0_185 = arith.constant 0 : index
    %c0_186 = arith.constant 0 : index
    %331 = vector.load %arg2[%c0_185, %c0_186] : memref<32x64xf32, #tpu.memory_space<vmem>>, vector<32x64xf32>
    tpu.vector_store %arg2[%c0_185, %c0_186], %330 {strides = array<i32>} : memref<32x64xf32, #tpu.memory_space<vmem>>, vector<32x64xf32>,
    %c22_187 = arith.constant 22 : index
    %c0_188 = arith.constant 0 : index
    %332 = vector.load %arg2[%c22_187, %c0_188] : memref<32x64xf32, #tpu.memory_space<vmem>>, vector<1x64xf32>
    tpu.vector_store %arg2[%c22_187, %c0_188], %324 {strides = array<i32>} : memref<32x64xf32, #tpu.memory_space<vmem>>, vector<1x64xf32>,
    %c23 = arith.constant 23 : index
    %c0_189 = arith.constant 0 : index
    %333 = vector.load %arg2[%c23, %c0_189] : memref<32x64xf32, #tpu.memory_space<vmem>>, vector<1x64xf32>
    %334 = vector.extract_strided_slice %333 {offsets = [0, 23], sizes = [1, 1], strides = [1, 1]} : vector<1x64xf32> to vector<1x1xf32>
    %cst_190 = arith.constant 1.000000e+00 : f32
    %335 = vector.broadcast %cst_190 : f32 to vector<1x1xf32>
    %336 = arith.divf %335, %334 : vector<1x1xf32>
    %337 = vector.broadcast %336 : vector<1x1xf32> to vector<1x64xf32>
    %338 = arith.mulf %333, %337 : vector<1x64xf32>
    %c0_191 = arith.constant 0 : index
    %c0_192 = arith.constant 0 : index
    %339 = vector.load %arg2[%c0_191, %c0_192] : memref<32x64xf32, #tpu.memory_space<vmem>>, vector<32x64xf32>
    %340 = vector.extract_strided_slice %339 {offsets = [0, 23], sizes = [32, 1], strides = [1, 1]} : vector<32x64xf32> to vector<32x1xf32>
    %341 = vector.broadcast %340 : vector<32x1xf32> to vector<32x64xf32>
    %342 = vector.broadcast %338 : vector<1x64xf32> to vector<32x64xf32>
    %343 = arith.mulf %341, %342 : vector<32x64xf32>
    %344 = arith.subf %339, %343 : vector<32x64xf32>
    %c0_193 = arith.constant 0 : index
    %c0_194 = arith.constant 0 : index
    %345 = vector.load %arg2[%c0_193, %c0_194] : memref<32x64xf32, #tpu.memory_space<vmem>>, vector<32x64xf32>
    tpu.vector_store %arg2[%c0_193, %c0_194], %344 {strides = array<i32>} : memref<32x64xf32, #tpu.memory_space<vmem>>, vector<32x64xf32>,
    %c23_195 = arith.constant 23 : index
    %c0_196 = arith.constant 0 : index
    %346 = vector.load %arg2[%c23_195, %c0_196] : memref<32x64xf32, #tpu.memory_space<vmem>>, vector<1x64xf32>
    tpu.vector_store %arg2[%c23_195, %c0_196], %338 {strides = array<i32>} : memref<32x64xf32, #tpu.memory_space<vmem>>, vector<1x64xf32>,
    %c24 = arith.constant 24 : index
    %c0_197 = arith.constant 0 : index
    %347 = vector.load %arg2[%c24, %c0_197] : memref<32x64xf32, #tpu.memory_space<vmem>>, vector<1x64xf32>
    %348 = vector.extract_strided_slice %347 {offsets = [0, 24], sizes = [1, 1], strides = [1, 1]} : vector<1x64xf32> to vector<1x1xf32>
    %cst_198 = arith.constant 1.000000e+00 : f32
    %349 = vector.broadcast %cst_198 : f32 to vector<1x1xf32>
    %350 = arith.divf %349, %348 : vector<1x1xf32>
    %351 = vector.broadcast %350 : vector<1x1xf32> to vector<1x64xf32>
    %352 = arith.mulf %347, %351 : vector<1x64xf32>
    %c0_199 = arith.constant 0 : index
    %c0_200 = arith.constant 0 : index
    %353 = vector.load %arg2[%c0_199, %c0_200] : memref<32x64xf32, #tpu.memory_space<vmem>>, vector<32x64xf32>
    %354 = vector.extract_strided_slice %353 {offsets = [0, 24], sizes = [32, 1], strides = [1, 1]} : vector<32x64xf32> to vector<32x1xf32>
    %355 = vector.broadcast %354 : vector<32x1xf32> to vector<32x64xf32>
    %356 = vector.broadcast %352 : vector<1x64xf32> to vector<32x64xf32>
    %357 = arith.mulf %355, %356 : vector<32x64xf32>
    %358 = arith.subf %353, %357 : vector<32x64xf32>
    %c0_201 = arith.constant 0 : index
    %c0_202 = arith.constant 0 : index
    %359 = vector.load %arg2[%c0_201, %c0_202] : memref<32x64xf32, #tpu.memory_space<vmem>>, vector<32x64xf32>
    tpu.vector_store %arg2[%c0_201, %c0_202], %358 {strides = array<i32>} : memref<32x64xf32, #tpu.memory_space<vmem>>, vector<32x64xf32>,
    %c24_203 = arith.constant 24 : index
    %c0_204 = arith.constant 0 : index
    %360 = vector.load %arg2[%c24_203, %c0_204] : memref<32x64xf32, #tpu.memory_space<vmem>>, vector<1x64xf32>
    tpu.vector_store %arg2[%c24_203, %c0_204], %352 {strides = array<i32>} : memref<32x64xf32, #tpu.memory_space<vmem>>, vector<1x64xf32>,
    %c25 = arith.constant 25 : index
    %c0_205 = arith.constant 0 : index
    %361 = vector.load %arg2[%c25, %c0_205] : memref<32x64xf32, #tpu.memory_space<vmem>>, vector<1x64xf32>
    %362 = vector.extract_strided_slice %361 {offsets = [0, 25], sizes = [1, 1], strides = [1, 1]} : vector<1x64xf32> to vector<1x1xf32>
    %cst_206 = arith.constant 1.000000e+00 : f32
    %363 = vector.broadcast %cst_206 : f32 to vector<1x1xf32>
    %364 = arith.divf %363, %362 : vector<1x1xf32>
    %365 = vector.broadcast %364 : vector<1x1xf32> to vector<1x64xf32>
    %366 = arith.mulf %361, %365 : vector<1x64xf32>
    %c0_207 = arith.constant 0 : index
    %c0_208 = arith.constant 0 : index
    %367 = vector.load %arg2[%c0_207, %c0_208] : memref<32x64xf32, #tpu.memory_space<vmem>>, vector<32x64xf32>
    %368 = vector.extract_strided_slice %367 {offsets = [0, 25], sizes = [32, 1], strides = [1, 1]} : vector<32x64xf32> to vector<32x1xf32>
    %369 = vector.broadcast %368 : vector<32x1xf32> to vector<32x64xf32>
    %370 = vector.broadcast %366 : vector<1x64xf32> to vector<32x64xf32>
    %371 = arith.mulf %369, %370 : vector<32x64xf32>
    %372 = arith.subf %367, %371 : vector<32x64xf32>
    %c0_209 = arith.constant 0 : index
    %c0_210 = arith.constant 0 : index
    %373 = vector.load %arg2[%c0_209, %c0_210] : memref<32x64xf32, #tpu.memory_space<vmem>>, vector<32x64xf32>
    tpu.vector_store %arg2[%c0_209, %c0_210], %372 {strides = array<i32>} : memref<32x64xf32, #tpu.memory_space<vmem>>, vector<32x64xf32>,
    %c25_211 = arith.constant 25 : index
    %c0_212 = arith.constant 0 : index
    %374 = vector.load %arg2[%c25_211, %c0_212] : memref<32x64xf32, #tpu.memory_space<vmem>>, vector<1x64xf32>
    tpu.vector_store %arg2[%c25_211, %c0_212], %366 {strides = array<i32>} : memref<32x64xf32, #tpu.memory_space<vmem>>, vector<1x64xf32>,
    %c26 = arith.constant 26 : index
    %c0_213 = arith.constant 0 : index
    %375 = vector.load %arg2[%c26, %c0_213] : memref<32x64xf32, #tpu.memory_space<vmem>>, vector<1x64xf32>
    %376 = vector.extract_strided_slice %375 {offsets = [0, 26], sizes = [1, 1], strides = [1, 1]} : vector<1x64xf32> to vector<1x1xf32>
    %cst_214 = arith.constant 1.000000e+00 : f32
    %377 = vector.broadcast %cst_214 : f32 to vector<1x1xf32>
    %378 = arith.divf %377, %376 : vector<1x1xf32>
    %379 = vector.broadcast %378 : vector<1x1xf32> to vector<1x64xf32>
    %380 = arith.mulf %375, %379 : vector<1x64xf32>
    %c0_215 = arith.constant 0 : index
    %c0_216 = arith.constant 0 : index
    %381 = vector.load %arg2[%c0_215, %c0_216] : memref<32x64xf32, #tpu.memory_space<vmem>>, vector<32x64xf32>
    %382 = vector.extract_strided_slice %381 {offsets = [0, 26], sizes = [32, 1], strides = [1, 1]} : vector<32x64xf32> to vector<32x1xf32>
    %383 = vector.broadcast %382 : vector<32x1xf32> to vector<32x64xf32>
    %384 = vector.broadcast %380 : vector<1x64xf32> to vector<32x64xf32>
    %385 = arith.mulf %383, %384 : vector<32x64xf32>
    %386 = arith.subf %381, %385 : vector<32x64xf32>
    %c0_217 = arith.constant 0 : index
    %c0_218 = arith.constant 0 : index
    %387 = vector.load %arg2[%c0_217, %c0_218] : memref<32x64xf32, #tpu.memory_space<vmem>>, vector<32x64xf32>
    tpu.vector_store %arg2[%c0_217, %c0_218], %386 {strides = array<i32>} : memref<32x64xf32, #tpu.memory_space<vmem>>, vector<32x64xf32>,
    %c26_219 = arith.constant 26 : index
    %c0_220 = arith.constant 0 : index
    %388 = vector.load %arg2[%c26_219, %c0_220] : memref<32x64xf32, #tpu.memory_space<vmem>>, vector<1x64xf32>
    tpu.vector_store %arg2[%c26_219, %c0_220], %380 {strides = array<i32>} : memref<32x64xf32, #tpu.memory_space<vmem>>, vector<1x64xf32>,
    %c27 = arith.constant 27 : index
    %c0_221 = arith.constant 0 : index
    %389 = vector.load %arg2[%c27, %c0_221] : memref<32x64xf32, #tpu.memory_space<vmem>>, vector<1x64xf32>
    %390 = vector.extract_strided_slice %389 {offsets = [0, 27], sizes = [1, 1], strides = [1, 1]} : vector<1x64xf32> to vector<1x1xf32>
    %cst_222 = arith.constant 1.000000e+00 : f32
    %391 = vector.broadcast %cst_222 : f32 to vector<1x1xf32>
    %392 = arith.divf %391, %390 : vector<1x1xf32>
    %393 = vector.broadcast %392 : vector<1x1xf32> to vector<1x64xf32>
    %394 = arith.mulf %389, %393 : vector<1x64xf32>
    %c0_223 = arith.constant 0 : index
    %c0_224 = arith.constant 0 : index
    %395 = vector.load %arg2[%c0_223, %c0_224] : memref<32x64xf32, #tpu.memory_space<vmem>>, vector<32x64xf32>
    %396 = vector.extract_strided_slice %395 {offsets = [0, 27], sizes = [32, 1], strides = [1, 1]} : vector<32x64xf32> to vector<32x1xf32>
    %397 = vector.broadcast %396 : vector<32x1xf32> to vector<32x64xf32>
    %398 = vector.broadcast %394 : vector<1x64xf32> to vector<32x64xf32>
    %399 = arith.mulf %397, %398 : vector<32x64xf32>
    %400 = arith.subf %395, %399 : vector<32x64xf32>
    %c0_225 = arith.constant 0 : index
    %c0_226 = arith.constant 0 : index
    %401 = vector.load %arg2[%c0_225, %c0_226] : memref<32x64xf32, #tpu.memory_space<vmem>>, vector<32x64xf32>
    tpu.vector_store %arg2[%c0_225, %c0_226], %400 {strides = array<i32>} : memref<32x64xf32, #tpu.memory_space<vmem>>, vector<32x64xf32>,
    %c27_227 = arith.constant 27 : index
    %c0_228 = arith.constant 0 : index
    %402 = vector.load %arg2[%c27_227, %c0_228] : memref<32x64xf32, #tpu.memory_space<vmem>>, vector<1x64xf32>
    tpu.vector_store %arg2[%c27_227, %c0_228], %394 {strides = array<i32>} : memref<32x64xf32, #tpu.memory_space<vmem>>, vector<1x64xf32>,
    %c28 = arith.constant 28 : index
    %c0_229 = arith.constant 0 : index
    %403 = vector.load %arg2[%c28, %c0_229] : memref<32x64xf32, #tpu.memory_space<vmem>>, vector<1x64xf32>
    %404 = vector.extract_strided_slice %403 {offsets = [0, 28], sizes = [1, 1], strides = [1, 1]} : vector<1x64xf32> to vector<1x1xf32>
    %cst_230 = arith.constant 1.000000e+00 : f32
    %405 = vector.broadcast %cst_230 : f32 to vector<1x1xf32>
    %406 = arith.divf %405, %404 : vector<1x1xf32>
    %407 = vector.broadcast %406 : vector<1x1xf32> to vector<1x64xf32>
    %408 = arith.mulf %403, %407 : vector<1x64xf32>
    %c0_231 = arith.constant 0 : index
    %c0_232 = arith.constant 0 : index
    %409 = vector.load %arg2[%c0_231, %c0_232] : memref<32x64xf32, #tpu.memory_space<vmem>>, vector<32x64xf32>
    %410 = vector.extract_strided_slice %409 {offsets = [0, 28], sizes = [32, 1], strides = [1, 1]} : vector<32x64xf32> to vector<32x1xf32>
    %411 = vector.broadcast %410 : vector<32x1xf32> to vector<32x64xf32>
    %412 = vector.broadcast %408 : vector<1x64xf32> to vector<32x64xf32>
    %413 = arith.mulf %411, %412 : vector<32x64xf32>
    %414 = arith.subf %409, %413 : vector<32x64xf32>
    %c0_233 = arith.constant 0 : index
    %c0_234 = arith.constant 0 : index
    %415 = vector.load %arg2[%c0_233, %c0_234] : memref<32x64xf32, #tpu.memory_space<vmem>>, vector<32x64xf32>
    tpu.vector_store %arg2[%c0_233, %c0_234], %414 {strides = array<i32>} : memref<32x64xf32, #tpu.memory_space<vmem>>, vector<32x64xf32>,
    %c28_235 = arith.constant 28 : index
    %c0_236 = arith.constant 0 : index
    %416 = vector.load %arg2[%c28_235, %c0_236] : memref<32x64xf32, #tpu.memory_space<vmem>>, vector<1x64xf32>
    tpu.vector_store %arg2[%c28_235, %c0_236], %408 {strides = array<i32>} : memref<32x64xf32, #tpu.memory_space<vmem>>, vector<1x64xf32>,
    %c29 = arith.constant 29 : index
    %c0_237 = arith.constant 0 : index
    %417 = vector.load %arg2[%c29, %c0_237] : memref<32x64xf32, #tpu.memory_space<vmem>>, vector<1x64xf32>
    %418 = vector.extract_strided_slice %417 {offsets = [0, 29], sizes = [1, 1], strides = [1, 1]} : vector<1x64xf32> to vector<1x1xf32>
    %cst_238 = arith.constant 1.000000e+00 : f32
    %419 = vector.broadcast %cst_238 : f32 to vector<1x1xf32>
    %420 = arith.divf %419, %418 : vector<1x1xf32>
    %421 = vector.broadcast %420 : vector<1x1xf32> to vector<1x64xf32>
    %422 = arith.mulf %417, %421 : vector<1x64xf32>
    %c0_239 = arith.constant 0 : index
    %c0_240 = arith.constant 0 : index
    %423 = vector.load %arg2[%c0_239, %c0_240] : memref<32x64xf32, #tpu.memory_space<vmem>>, vector<32x64xf32>
    %424 = vector.extract_strided_slice %423 {offsets = [0, 29], sizes = [32, 1], strides = [1, 1]} : vector<32x64xf32> to vector<32x1xf32>
    %425 = vector.broadcast %424 : vector<32x1xf32> to vector<32x64xf32>
    %426 = vector.broadcast %422 : vector<1x64xf32> to vector<32x64xf32>
    %427 = arith.mulf %425, %426 : vector<32x64xf32>
    %428 = arith.subf %423, %427 : vector<32x64xf32>
    %c0_241 = arith.constant 0 : index
    %c0_242 = arith.constant 0 : index
    %429 = vector.load %arg2[%c0_241, %c0_242] : memref<32x64xf32, #tpu.memory_space<vmem>>, vector<32x64xf32>
    tpu.vector_store %arg2[%c0_241, %c0_242], %428 {strides = array<i32>} : memref<32x64xf32, #tpu.memory_space<vmem>>, vector<32x64xf32>,
    %c29_243 = arith.constant 29 : index
    %c0_244 = arith.constant 0 : index
    %430 = vector.load %arg2[%c29_243, %c0_244] : memref<32x64xf32, #tpu.memory_space<vmem>>, vector<1x64xf32>
    tpu.vector_store %arg2[%c29_243, %c0_244], %422 {strides = array<i32>} : memref<32x64xf32, #tpu.memory_space<vmem>>, vector<1x64xf32>,
    %c30 = arith.constant 30 : index
    %c0_245 = arith.constant 0 : index
    %431 = vector.load %arg2[%c30, %c0_245] : memref<32x64xf32, #tpu.memory_space<vmem>>, vector<1x64xf32>
    %432 = vector.extract_strided_slice %431 {offsets = [0, 30], sizes = [1, 1], strides = [1, 1]} : vector<1x64xf32> to vector<1x1xf32>
    %cst_246 = arith.constant 1.000000e+00 : f32
    %433 = vector.broadcast %cst_246 : f32 to vector<1x1xf32>
    %434 = arith.divf %433, %432 : vector<1x1xf32>
    %435 = vector.broadcast %434 : vector<1x1xf32> to vector<1x64xf32>
    %436 = arith.mulf %431, %435 : vector<1x64xf32>
    %c0_247 = arith.constant 0 : index
    %c0_248 = arith.constant 0 : index
    %437 = vector.load %arg2[%c0_247, %c0_248] : memref<32x64xf32, #tpu.memory_space<vmem>>, vector<32x64xf32>
    %438 = vector.extract_strided_slice %437 {offsets = [0, 30], sizes = [32, 1], strides = [1, 1]} : vector<32x64xf32> to vector<32x1xf32>
    %439 = vector.broadcast %438 : vector<32x1xf32> to vector<32x64xf32>
    %440 = vector.broadcast %436 : vector<1x64xf32> to vector<32x64xf32>
    %441 = arith.mulf %439, %440 : vector<32x64xf32>
    %442 = arith.subf %437, %441 : vector<32x64xf32>
    %c0_249 = arith.constant 0 : index
    %c0_250 = arith.constant 0 : index
    %443 = vector.load %arg2[%c0_249, %c0_250] : memref<32x64xf32, #tpu.memory_space<vmem>>, vector<32x64xf32>
    tpu.vector_store %arg2[%c0_249, %c0_250], %442 {strides = array<i32>} : memref<32x64xf32, #tpu.memory_space<vmem>>, vector<32x64xf32>,
    %c30_251 = arith.constant 30 : index
    %c0_252 = arith.constant 0 : index
    %444 = vector.load %arg2[%c30_251, %c0_252] : memref<32x64xf32, #tpu.memory_space<vmem>>, vector<1x64xf32>
    tpu.vector_store %arg2[%c30_251, %c0_252], %436 {strides = array<i32>} : memref<32x64xf32, #tpu.memory_space<vmem>>, vector<1x64xf32>,
    %c31 = arith.constant 31 : index
    %c0_253 = arith.constant 0 : index
    %445 = vector.load %arg2[%c31, %c0_253] : memref<32x64xf32, #tpu.memory_space<vmem>>, vector<1x64xf32>
    %446 = vector.extract_strided_slice %445 {offsets = [0, 31], sizes = [1, 1], strides = [1, 1]} : vector<1x64xf32> to vector<1x1xf32>
    %cst_254 = arith.constant 1.000000e+00 : f32
    %447 = vector.broadcast %cst_254 : f32 to vector<1x1xf32>
    %448 = arith.divf %447, %446 : vector<1x1xf32>
    %449 = vector.broadcast %448 : vector<1x1xf32> to vector<1x64xf32>
    %450 = arith.mulf %445, %449 : vector<1x64xf32>
    %c0_255 = arith.constant 0 : index
    %c0_256 = arith.constant 0 : index
    %451 = vector.load %arg2[%c0_255, %c0_256] : memref<32x64xf32, #tpu.memory_space<vmem>>, vector<32x64xf32>
    %452 = vector.extract_strided_slice %451 {offsets = [0, 31], sizes = [32, 1], strides = [1, 1]} : vector<32x64xf32> to vector<32x1xf32>
    %453 = vector.broadcast %452 : vector<32x1xf32> to vector<32x64xf32>
    %454 = vector.broadcast %450 : vector<1x64xf32> to vector<32x64xf32>
    %455 = arith.mulf %453, %454 : vector<32x64xf32>
    %456 = arith.subf %451, %455 : vector<32x64xf32>
    %c0_257 = arith.constant 0 : index
    %c0_258 = arith.constant 0 : index
    %457 = vector.load %arg2[%c0_257, %c0_258] : memref<32x64xf32, #tpu.memory_space<vmem>>, vector<32x64xf32>
    tpu.vector_store %arg2[%c0_257, %c0_258], %456 {strides = array<i32>} : memref<32x64xf32, #tpu.memory_space<vmem>>, vector<32x64xf32>,
    %c31_259 = arith.constant 31 : index
    %c0_260 = arith.constant 0 : index
    %458 = vector.load %arg2[%c31_259, %c0_260] : memref<32x64xf32, #tpu.memory_space<vmem>>, vector<1x64xf32>
    tpu.vector_store %arg2[%c31_259, %c0_260], %450 {strides = array<i32>} : memref<32x64xf32, #tpu.memory_space<vmem>>, vector<1x64xf32>,
    %c0_261 = arith.constant 0 : index
    %c0_262 = arith.constant 0 : index
    %459 = vector.load %arg2[%c0_261, %c0_262] : memref<32x64xf32, #tpu.memory_space<vmem>>, vector<32x64xf32>
    %460 = vector.extract_strided_slice %459 {offsets = [0, 32], sizes = [32, 32], strides = [1, 1]} : vector<32x64xf32> to vector<32x32xf32>
    %c0_263 = arith.constant 0 : index
    %c0_264 = arith.constant 0 : index
    %461 = vector.load %arg1[%c0_263, %c0_264] : memref<32x32xf32, #tpu.memory_space<vmem>>, vector<32x32xf32>
    tpu.vector_store %arg1[%c0_263, %c0_264], %460 {strides = array<i32>} : memref<32x32xf32, #tpu.memory_space<vmem>>, vector<32x32xf32>,
    return
  }
}

</mosaic_0001>

<bundles_post_ra>
// kernel: tpu_custom_call.1
= control target key start
LH: loop header
LB: loop body
LE: loop exit
PB: predicated region body
PF: predicated region fallthrough
CT: control target
= control target key end

     0   :  { %6 = vsyncpa [#allocation4], 0  ;;  %s2525_s0 = inlined_call_operand.hbm [shape: f32[32,32], index: 0, kind: input, shape index: {}]   ;;  %s2526_s1 = inlined_call_operand.hbm [shape: f32[32,32], index: 1, kind: output, shape index: {}]  }
   0x1   :  { %7 = vsyncpa [#allocation5], 0  ;;  %s1986_s6 = smov [#allocation3]   ;;  %s1938_s10 = scalar_lea.hbm %s2525_s0, 512 }
   0x2   :  { %s13_s7 = sshll.u32 %s1986_s6, 4  ;;  %p1939_p0 = scmp.ne.s32.totalorder %s2525_s0, %s1938_s10  ;;  %s14_s7 = int_to_ptr.vmem [resolvable:$true] %s13_s7 }
   0x3   :  { %p1942_p1 = scmp.lt.u32.totalorder %s1938_s10, %s2525_s0 }
   0x5   :  { %p1944_p2 = pnand %p1942_p1, %p1939_p0 }
   0x7   :  { %1947 = shalt.err (!%p1944_p2)
}
   0x8   :  { %s1948_s15 = scalar_lea.vmem %s14_s7, 512  ;;  %p1953_p4 = scmp.lt.s32.totalorder %s14_s7, %s14_s7 }
   0x9   :  { %p1949_p3 = scmp.ne.s32.totalorder %s14_s7, %s1948_s15  ;;  %p1954_p5 = scmp.lt.s32.totalorder %s1948_s15, %s1948_s15 }
   0xb   :  { %p1955_p6 = por %p1954_p5, %p1953_p4 }
   0xd   :  { %p1956_p7 = pnand %p1955_p6, %p1949_p3 }
   0xf   :  { %1959 = shalt.err (!%p1956_p7)
}
  0x10   :  { %s1987_s16 = smov 128   ;;  %s1988_s17 = smov 8  }
  0x11   :  { %19 = dma.hbm_to_vmem [thread:$0]  %s2525_s0, 512, %s14_s7, [#allocation4], %s1987_s16, %s1987_s16, %s1988_s17  }
  0x12   :  { %1982 = dma.done.wait [#allocation4], 512  }
  0x13   :  { %1983 = vsyncadd [#allocation4], 4294966784  ;;  %v27_v0 = vlaneseq  ;;  %v1989_v3 = vmov 0   ;;  %v1990_v4 = vmov 0.0   ;;  %v23_v6 = vld [vmem:[#allocation3] sm:$0xff]  ;;  %s1991_s0 = smov 32  }
  0x14   :  { %1758 = vset.pattern.permute.xlu1 %v1989_v3  ;;  %1757 = vset.pattern.permute.xlu0 %v1989_v3  ;;  %v24_v10 = vld [vmem:[#allocation3 + $0x8] sm:$0xff]  ;;  %vm66_vm2 = vcmask 261120   ;;  %vm71_vm3 = vcmask 523264   ;;  %v1992_v19 = vmov 1   ;;  %v25_v21 = vld [vmem:[#allocation3 + $0x10] sm:$0xff]  ;;  %vm125_vm5 = vcmask 516096  }
  0x15   :  { %v2050_v1 = vshrl.u32 %v27_v0, 7  ;;  %v2052_v2 = vand.u32 127, %v27_v0  ;;  %v1993_v38 = vmov 2   ;;  %v1994_v55 = vmov 3   ;;  %v26_v57 = vld [vmem:[#allocation3 + $0x18] sm:$0xff]  ;;  %s2023_s20 = smov 96  }
  0x16   :  { %s2024_s21 = smov [#allocation6]  }
  0x17   :  { %vm34_vm0 = vcmp.eq.s32.totalorder %v2050_v1, %v2052_v2  ;;  %v29_v9 = vadd.s32 8, %v2050_v1  ;;  %v30_v20 = vadd.s32 16, %v2050_v1  ;;  %v2074_v27 = vsub.s32 0, %v2050_v1  ;;  %s1706_s22 = sshll.u32 %s2024_s21, 4  ;;  %s1707_s22 = int_to_ptr.vmem [resolvable:$true] %s1706_s22 }
  0x18   :  { %v38_v5 = vsel %vm34_vm0, 1.0, %v1990_v4  ;;  %v31_v56 = vadd.s32 24, %v2050_v1  ;;  %s1960_s23 = scalar_lea.vmem %s1707_s22, 512  ;;  %p1965_p9 = scmp.lt.s32.totalorder %s1707_s22, %s1707_s22 }
  0x19   :  { %v46_v7 = vsub.f32 %v38_v5, %v23_v6  ;;  %v42_v8 = vadd.f32 %v38_v5, %v23_v6  ;;  %vm35_vm1 = vcmp.eq.s32.totalorder %v29_v9, %v2052_v2  ;;  %vm36_vm4 = vcmp.eq.s32.totalorder %v30_v20, %v2052_v2  ;;  %p1961_p8 = scmp.ne.s32.totalorder %s1707_s22, %s1960_s23  ;;  %p1966_p10 = scmp.lt.s32.totalorder %s1960_s23, %s1960_s23 }
  0x1a   :  { %v39_v11 = vsel %vm35_vm1, 1.0, %v1990_v4  ;;  %v40_v22 = vsel %vm36_vm4, 1.0, %v1990_v4  ;;  %vm37_vm6 = vcmp.eq.s32.totalorder %v31_v56, %v2052_v2  ;;  %v1995_v20 = vmov 4  }
  0x1b   :  { %54 = vrot.lane.b32.xlu0 %v46_v7, %s1991_s0  ;;  %v43_v12 = vadd.f32 %v39_v11, %v24_v10  ;;  %v47_v17 = vsub.f32 %v39_v11, %v24_v10  ;;  %v44_v23 = vadd.f32 %v40_v22, %v25_v21  ;;  %v48_v37 = vsub.f32 %v40_v22, %v25_v21  ;;  %p1967_p11 = por %p1966_p10, %p1965_p9 }
  0x1c   :  { %v41_v58 = vsel %vm37_vm6, 1.0, %v1990_v4 }
  0x1d   :  { %v45_v59 = vadd.f32 %v41_v58, %v26_v57  ;;  %p1968_p12 = pnand %p1967_p11, %p1961_p8 }
  0x8d   :  { %v55_v13 = vpop.permute.xlu0 %54 }
  0x8e   :  { %v67_v14 = vsel %vm66_vm2, %v42_v8, %v55_v13  ;;  %v49_v13 = vsub.f32 %v41_v58, %v26_v57 }
  0x8f   :  { %72 = vst.msk [vmem:[#allocation2] sm:$0xff] %vm71_vm3, %v67_v14 }
  0x96   :  { %v85_v15 = vld [vmem:[#allocation2] sm:$0xff] }
  0x97   :  { %v76_v16 = vld [vmem:[#allocation2] sm:$0x1]  ;;  %91 = vperm.xlu1 %1758, %v85_v15  }
  0x98   :  { %1874 = vrcp.f32 %v76_v16 }
  0x9b   :  { %56 = vrot.lane.b32.xlu1 %v47_v17, %s1991_s0 }
  0x9c   :  { %1759 = vset.pattern.permute.xlu1 %v1992_v19 }
  0xa2   :  { %v1875_v18 = vpop.eup %1874 }
  0xa3   :  { %81 = vperm.xlu0 %1757, %v1875_v18  }
  0xa7   :  { %1760 = vset.pattern.permute.xlu0 %v1992_v19 }
 0x116   :  { %v92_v24 = vpop.permute.xlu1 %91 }
 0x11a   :  { %v57_v25 = vpop.permute.xlu1 %56 }
 0x11b   :  { %v68_v26 = vsel %vm66_vm2, %v43_v12, %v57_v25 }
 0x11c   :  { %73 = vst.msk [vmem:[#allocation2 + $0x8] sm:$0xff] %vm71_vm3, %v68_v26 }
 0x122   :  { %v82_v28 = vpop.permute.xlu0 %81 }
 0x123   :  { %v84_v29 = vmul.f32 %v82_v28, %v76_v16  ;;  %v86_v36 = vld [vmem:[#allocation2 + $0x8] sm:$0xff] }
 0x125   :  { %v2077_v30 = vrot.slane %v84_v29, %v2074_v27 }
 0x127   :  { %v113_v31 = vmul.f32 %v2077_v30, %v92_v24 }
 0x129   :  { %v117_v32 = vsub.f32 %v85_v15, %v113_v31 }
 0x12b   :  { %121 = vst.msk [vmem:[#allocation2] sm:$0xff] %vm71_vm3, %v117_v32 }
 0x12c   :  { %126 = vst.msk [vmem:[#allocation2] sm:$0x1] %vm125_vm5, %v84_v29 }
 0x132   :  { %v127_v33 = vld [vmem:[#allocation2 + $0x1] sm:$0x1] }
 0x133   :  { %v136_v34 = vld [vmem:[#allocation2] sm:$0xff]  ;;  %1876 = vrcp.f32 %v127_v33 }
 0x134   :  { %142 = vperm.xlu0 %1760, %v136_v34  }
 0x138   :  { %1762 = vset.pattern.permute.xlu0 %v1993_v38 }
 0x13d   :  { %v1877_v35 = vpop.eup %1876 }
 0x13e   :  { %132 = vperm.xlu1 %1759, %v1877_v35  }
 0x142   :  { %1761 = vset.pattern.permute.xlu1 %v1989_v3 }
 0x143   :  { %96 = vperm.xlu1 %1761, %v86_v36  }
 0x147   :  { %58 = vrot.lane.b32.xlu1 %v48_v37, %s1991_s0 }
 0x148   :  { %1763 = vset.pattern.permute.xlu1 %v1992_v19 }
 0x1b3   :  { %v143_v42 = vpop.permute.xlu0 %142 }
 0x1bd   :  { %v133_v39 = vpop.permute.xlu1 %132 }
 0x1be   :  { %v135_v40 = vmul.f32 %v133_v39, %v127_v33 }
 0x1c0   :  { %v2087_v41 = vrot.slane %v135_v40, %v2074_v27 }
 0x1c2   :  { %v164_v43 = vmul.f32 %v2087_v41, %v143_v42  ;;  %v97_v44 = vpop.permute.xlu1 %96 }
 0x1c3   :  { %v114_v45 = vmul.f32 %v2077_v30, %v97_v44 }
 0x1c4   :  { %v168_v46 = vsub.f32 %v136_v34, %v164_v43 }
 0x1c5   :  { %v118_v47 = vsub.f32 %v86_v36, %v114_v45 }
 0x1c6   :  { %172 = vst.msk [vmem:[#allocation2] sm:$0xff] %vm71_vm3, %v168_v46  ;;  %v59_v48 = vpop.permute.xlu1 %58 }
 0x1c7   :  { %176 = vst.msk [vmem:[#allocation2 + $0x1] sm:$0x1] %vm125_vm5, %v135_v40  ;;  %v69_v49 = vsel %vm66_vm2, %v44_v23, %v59_v48 }
 0x1c8   :  { %122 = vst.msk [vmem:[#allocation2 + $0x8] sm:$0xff] %vm71_vm3, %v118_v47  ;;  %74 = vst.msk [vmem:[#allocation2 + $0x10] sm:$0xff] %vm71_vm3, %v69_v49 }
 0x1cd   :  { %v177_v50 = vld [vmem:[#allocation2 + $0x2] sm:$0x1] }
 0x1ce   :  { %1878 = vrcp.f32 %v177_v50  ;;  %v186_v52 = vld [vmem:[#allocation2] sm:$0xff] }
 0x1cf   :  { %v137_v51 = vld [vmem:[#allocation2 + $0x8] sm:$0xff]  ;;  %v87_v54 = vld [vmem:[#allocation2 + $0x10] sm:$0xff] }
 0x1d0   :  { %147 = vperm.xlu1 %1763, %v137_v51  }
 0x1d4   :  { %1764 = vset.pattern.permute.xlu1 %v1993_v38 }
 0x1d5   :  { %192 = vperm.xlu1 %1764, %v186_v52  }
 0x1d8   :  { %v1879_v53 = vpop.eup %1878 }
 0x1d9   :  { %182 = vperm.xlu0 %1762, %v1879_v53  }
 0x1dd   :  { %1765 = vset.pattern.permute.xlu0 %v1989_v3 }
 0x1de   :  { %101 = vperm.xlu0 %1765, %v87_v54  }
 0x1e2   :  { %1767 = vset.pattern.permute.xlu0 %v1994_v55 }
 0x24f   :  { %v148_v60 = vpop.permute.xlu1 %147 }
 0x250   :  { %v165_v61 = vmul.f32 %v2087_v41, %v148_v60 }
 0x252   :  { %v169_v62 = vsub.f32 %v137_v51, %v165_v61 }
 0x254   :  { %173 = vst.msk [vmem:[#allocation2 + $0x8] sm:$0xff] %vm71_vm3, %v169_v62  ;;  %v193_v1 = vpop.permute.xlu1 %192 }
 0x258   :  { %v183_v63 = vpop.permute.xlu0 %182 }
 0x259   :  { %v185_v0 = vmul.f32 %v183_v63, %v177_v50 }
 0x25b   :  { %v187_v5 = vld [vmem:[#allocation2 + $0x8] sm:$0xff]  ;;  %v2105_v6 = vrot.slane %v185_v0, %v2074_v27 }
 0x25c   :  { %197 = vperm.xlu1 %1764, %v187_v5  }
 0x25d   :  { %v214_v2 = vmul.f32 %v2105_v6, %v193_v1  ;;  %v102_v7 = vpop.permute.xlu0 %101 }
 0x25e   :  { %v115_v4 = vmul.f32 %v2077_v30, %v102_v7 }
 0x25f   :  { %v218_v8 = vsub.f32 %v186_v52, %v214_v2 }
 0x260   :  { %1766 = vset.pattern.permute.xlu1 %v1994_v55  ;;  %v119_v9 = vsub.f32 %v87_v54, %v115_v4  ;;  %v1996_v54 = vmov 5  }
 0x261   :  { %222 = vst.msk [vmem:[#allocation2] sm:$0xff] %vm71_vm3, %v218_v8 }
 0x262   :  { %226 = vst.msk [vmem:[#allocation2 + $0x2] sm:$0x1] %vm125_vm5, %v185_v0 }
 0x263   :  { %123 = vst.msk [vmem:[#allocation2 + $0x10] sm:$0xff] %vm71_vm3, %v119_v9 }
 0x268   :  { %v227_v10 = vld [vmem:[#allocation2 + $0x3] sm:$0x1] }
 0x269   :  { %v236_v11 = vld [vmem:[#allocation2] sm:$0xff]  ;;  %1880 = vrcp.f32 %v227_v10 }
 0x26a   :  { %242 = vperm.xlu0 %1767, %v236_v11   ;;  %v138_v14 = vld [vmem:[#allocation2 + $0x10] sm:$0xff] }
 0x273   :  { %v1881_v12 = vpop.eup %1880 }
 0x274   :  { %232 = vperm.xlu1 %1766, %v1881_v12  }
 0x278   :  { %60 = vrot.lane.b32.xlu1 %v49_v13, %s1991_s0 }
 0x279   :  { %1768 = vset.pattern.permute.xlu1 %v1992_v19 }
 0x27c   :  { %152 = vperm.xlu1 %1768, %v138_v14  }
 0x280   :  { %1769 = vset.pattern.permute.xlu1 %v1989_v3 }
 0x2db   :  { %v198_v15 = vpop.permute.xlu1 %197 }
 0x2dc   :  { %v215_v16 = vmul.f32 %v2105_v6, %v198_v15 }
 0x2de   :  { %v219_v17 = vsub.f32 %v187_v5, %v215_v16  ;;  %v1997_v5 = vmov 6  }
 0x2e0   :  { %223 = vst.msk [vmem:[#allocation2 + $0x8] sm:$0xff] %vm71_vm3, %v219_v17 }
 0x2e7   :  { %v237_v18 = vld [vmem:[#allocation2 + $0x8] sm:$0xff] }
 0x2e8   :  { %247 = vperm.xlu0 %1767, %v237_v18  }
 0x2e9   :  { %v243_v24 = vpop.permute.xlu0 %242 }
 0x2ec   :  { %1770 = vset.pattern.permute.xlu0 %v1995_v20 }
 0x2f3   :  { %v233_v21 = vpop.permute.xlu1 %232 }
 0x2f4   :  { %v235_v22 = vmul.f32 %v233_v21, %v227_v10 }
 0x2f6   :  { %v2120_v23 = vrot.slane %v235_v22, %v2074_v27 }
 0x2f7   :  { %v61_v25 = vpop.permute.xlu1 %60 }
 0x2f8   :  { %v264_v3 = vmul.f32 %v2120_v23, %v243_v24  ;;  %v70_v26 = vsel %vm66_vm2, %v45_v59, %v61_v25 }
 0x2f9   :  { %75 = vst.msk [vmem:[#allocation2 + $0x18] sm:$0xff] %vm71_vm3, %v70_v26 }
 0x2fa   :  { %v268_v28 = vsub.f32 %v236_v11, %v264_v3 }
 0x2fb   :  { %v153_v29 = vpop.permute.xlu1 %152 }
 0x2fc   :  { %272 = vst.msk [vmem:[#allocation2] sm:$0xff] %vm71_vm3, %v268_v28  ;;  %v166_v31 = vmul.f32 %v2087_v41, %v153_v29 }
 0x2fd   :  { %276 = vst.msk [vmem:[#allocation2 + $0x3] sm:$0x1] %vm125_vm5, %v235_v22 }
 0x2fe   :  { %v170_v32 = vsub.f32 %v138_v14, %v166_v31 }
 0x300   :  { %174 = vst.msk [vmem:[#allocation2 + $0x10] sm:$0xff] %vm71_vm3, %v170_v32  ;;  %v88_v33 = vld [vmem:[#allocation2 + $0x18] sm:$0xff] }
 0x301   :  { %106 = vperm.xlu1 %1769, %v88_v33  }
 0x303   :  { %v277_v34 = vld [vmem:[#allocation2 + $0x4] sm:$0x1] }
 0x304   :  { %v286_v35 = vld [vmem:[#allocation2] sm:$0xff]  ;;  %1882 = vrcp.f32 %v277_v34 }
 0x305   :  { %1771 = vset.pattern.permute.xlu1 %v1995_v20 }
 0x306   :  { %292 = vperm.xlu1 %1771, %v286_v35  }
 0x307   :  { %v188_v36 = vld [vmem:[#allocation2 + $0x10] sm:$0xff] }
 0x30a   :  { %1772 = vset.pattern.permute.xlu1 %v1993_v38 }
 0x30b   :  { %202 = vperm.xlu1 %1772, %v188_v36  }
 0x30e   :  { %v1883_v37 = vpop.eup %1882 }
 0x30f   :  { %282 = vperm.xlu0 %1770, %v1883_v37   ;;  %1773 = vset.pattern.permute.xlu1 %v1992_v19 }
 0x367   :  { %v248_v39 = vpop.permute.xlu0 %247 }
 0x368   :  { %v265_v40 = vmul.f32 %v2120_v23, %v248_v39 }
 0x36a   :  { %v269_v42 = vsub.f32 %v237_v18, %v265_v40 }
 0x36c   :  { %273 = vst.msk [vmem:[#allocation2 + $0x8] sm:$0xff] %vm71_vm3, %v269_v42 }
 0x373   :  { %v287_v43 = vld [vmem:[#allocation2 + $0x8] sm:$0xff] }
 0x374   :  { %297 = vperm.xlu0 %1770, %v287_v43  }
 0x378   :  { %1774 = vset.pattern.permute.xlu0 %v1994_v55 }
 0x380   :  { %v107_v44 = vpop.permute.xlu1 %106 }
 0x381   :  { %v116_v45 = vmul.f32 %v2077_v30, %v107_v44 }
 0x383   :  { %v120_v46 = vsub.f32 %v88_v33, %v116_v45  ;;  %v1998_v33 = vmov 7  }
 0x385   :  { %124 = vst.msk [vmem:[#allocation2 + $0x18] sm:$0xff] %vm71_vm3, %v120_v46  ;;  %v293_v47 = vpop.permute.xlu1 %292 }
 0x38a   :  { %v203_v48 = vpop.permute.xlu1 %202 }
 0x38b   :  { %v216_v19 = vmul.f32 %v2105_v6, %v203_v48 }
 0x38c   :  { %v139_v49 = vld [vmem:[#allocation2 + $0x18] sm:$0xff] }
 0x38d   :  { %v220_v50 = vsub.f32 %v188_v36, %v216_v19  ;;  %157 = vperm.xlu1 %1773, %v139_v49  }
 0x38e   :  { %v283_v51 = vpop.permute.xlu0 %282 }
 0x38f   :  { %224 = vst.msk [vmem:[#allocation2 + $0x10] sm:$0xff] %vm71_vm3, %v220_v50  ;;  %v285_v52 = vmul.f32 %v283_v51, %v277_v34 }
 0x391   :  { %v2140_v53 = vrot.slane %v285_v52, %v2074_v27  ;;  %1775 = vset.pattern.permute.xlu1 %v1996_v54 }
 0x393   :  { %v314_v30 = vmul.f32 %v2140_v53, %v293_v47 }
 0x395   :  { %v318_v56 = vsub.f32 %v286_v35, %v314_v30 }
 0x396   :  { %v238_v57 = vld [vmem:[#allocation2 + $0x10] sm:$0xff] }
 0x397   :  { %322 = vst.msk [vmem:[#allocation2] sm:$0xff] %vm71_vm3, %v318_v56  ;;  %252 = vperm.xlu0 %1774, %v238_v57   ;;  %v1999_v56 = vmov 8  }
 0x398   :  { %326 = vst.msk [vmem:[#allocation2 + $0x4] sm:$0x1] %vm125_vm5, %v285_v52 }
 0x39b   :  { %1776 = vset.pattern.permute.xlu0 %v1996_v54 }
 0x39e   :  { %v327_v58 = vld [vmem:[#allocation2 + $0x5] sm:$0x1] }
 0x39f   :  { %1884 = vrcp.f32 %v327_v58  ;;  %v336_v60 = vld [vmem:[#allocation2] sm:$0xff] }
 0x3a9   :  { %v1885_v59 = vpop.eup %1884 }
 0x3aa   :  { %332 = vperm.xlu1 %1775, %v1885_v59  }
 0x3ae   :  { %342 = vperm.xlu1 %1775, %v336_v60  }
 0x3b2   :  { %1777 = vset.pattern.permute.xlu1 %v1993_v38 }
 0x3f3   :  { %v298_v61 = vpop.permute.xlu0 %297 }
 0x3f4   :  { %v315_v62 = vmul.f32 %v2140_v53, %v298_v61 }
 0x3f6   :  { %v319_v63 = vsub.f32 %v287_v43, %v315_v62 }
 0x3f8   :  { %323 = vst.msk [vmem:[#allocation2 + $0x8] sm:$0xff] %vm71_vm3, %v319_v63 }
 0x3ff   :  { %v337_v0 = vld [vmem:[#allocation2 + $0x8] sm:$0xff] }
 0x400   :  { %347 = vperm.xlu0 %1776, %v337_v0  }
 0x404   :  { %1779 = vset.pattern.permute.xlu0 %v1997_v5 }
 0x40c   :  { %v158_v1 = vpop.permute.xlu1 %157 }
 0x40d   :  { %v167_v2 = vmul.f32 %v2087_v41, %v158_v1 }
 0x40f   :  { %v171_v7 = vsub.f32 %v139_v49, %v167_v2 }
 0x411   :  { %175 = vst.msk [vmem:[#allocation2 + $0x18] sm:$0xff] %vm71_vm3, %v171_v7 }
 0x416   :  { %v253_v4 = vpop.permute.xlu0 %252 }
 0x417   :  { %v266_v38 = vmul.f32 %v2120_v23, %v253_v4 }
 0x418   :  { %v189_v8 = vld [vmem:[#allocation2 + $0x18] sm:$0xff] }
 0x419   :  { %v270_v9 = vsub.f32 %v238_v57, %v266_v38  ;;  %207 = vperm.xlu1 %1777, %v189_v8  }
 0x41b   :  { %274 = vst.msk [vmem:[#allocation2 + $0x10] sm:$0xff] %vm71_vm3, %v270_v9 }
 0x41d   :  { %1778 = vset.pattern.permute.xlu1 %v1995_v20 }
 0x422   :  { %v288_v10 = vld [vmem:[#allocation2 + $0x10] sm:$0xff] }
 0x423   :  { %302 = vperm.xlu1 %1778, %v288_v10  }
 0x427   :  { %1780 = vset.pattern.permute.xlu1 %v1997_v5 }
 0x429   :  { %v333_v11 = vpop.permute.xlu1 %332 }
 0x42a   :  { %v335_v12 = vmul.f32 %v333_v11, %v327_v58 }
 0x42c   :  { %v2158_v41 = vrot.slane %v335_v12, %v2074_v27 }
 0x42d   :  { %v343_v13 = vpop.permute.xlu1 %342 }
 0x42e   :  { %v364_v14 = vmul.f32 %v2158_v41, %v343_v13 }
 0x430   :  { %v368_v15 = vsub.f32 %v336_v60, %v364_v14 }
 0x432   :  { %372 = vst.msk [vmem:[#allocation2] sm:$0xff] %vm71_vm3, %v368_v15 }
 0x433   :  { %376 = vst.msk [vmem:[#allocation2 + $0x5] sm:$0x1] %vm125_vm5, %v335_v12 }
 0x439   :  { %v377_v16 = vld [vmem:[#allocation2 + $0x6] sm:$0x1] }
 0x43a   :  { %v386_v17 = vld [vmem:[#allocation2] sm:$0xff]  ;;  %1886 = vrcp.f32 %v377_v16 }
 0x43b   :  { %392 = vperm.xlu1 %1780, %v386_v17  }
 0x444   :  { %v1887_v18 = vpop.eup %1886 }
 0x445   :  { %382 = vperm.xlu0 %1779, %v1887_v18  }
 0x449   :  { %1781 = vset.pattern.permute.xlu0 %v1994_v55 }
 0x47f   :  { %v348_v21 = vpop.permute.xlu0 %347 }
 0x480   :  { %v365_v22 = vmul.f32 %v2158_v41, %v348_v21 }
 0x482   :  { %v369_v24 = vsub.f32 %v337_v0, %v365_v22 }
 0x484   :  { %373 = vst.msk [vmem:[#allocation2 + $0x8] sm:$0xff] %vm71_vm3, %v369_v24 }
 0x48b   :  { %v387_v25 = vld [vmem:[#allocation2 + $0x8] sm:$0xff] }
 0x48c   :  { %397 = vperm.xlu1 %1780, %v387_v25  }
 0x490   :  { %1782 = vset.pattern.permute.xlu1 %v1996_v54 }
 0x498   :  { %v208_v3 = vpop.permute.xlu1 %207 }
 0x499   :  { %v217_v26 = vmul.f32 %v2105_v6, %v208_v3 }
 0x49b   :  { %v221_v28 = vsub.f32 %v189_v8, %v217_v26 }
 0x49d   :  { %225 = vst.msk [vmem:[#allocation2 + $0x18] sm:$0xff] %vm71_vm3, %v221_v28  ;;  %v2001_v28 = vmov 10  }
 0x4a2   :  { %v303_v29 = vpop.permute.xlu1 %302 }
 0x4a3   :  { %v316_v31 = vmul.f32 %v2140_v53, %v303_v29 }
 0x4a4   :  { %v239_v55 = vld [vmem:[#allocation2 + $0x18] sm:$0xff] }
 0x4a5   :  { %v320_v32 = vsub.f32 %v288_v10, %v316_v31  ;;  %257 = vperm.xlu0 %1781, %v239_v55  }
 0x4a7   :  { %324 = vst.msk [vmem:[#allocation2 + $0x10] sm:$0xff] %vm71_vm3, %v320_v32 }
 0x4a9   :  { %1784 = vset.pattern.permute.xlu0 %v1998_v33 }
 0x4ae   :  { %v338_v34 = vld [vmem:[#allocation2 + $0x10] sm:$0xff] }
 0x4af   :  { %352 = vperm.xlu1 %1782, %v338_v34  }
 0x4b3   :  { %1783 = vset.pattern.permute.xlu1 %v1998_v33 }
 0x4ba   :  { %v393_v37 = vpop.permute.xlu1 %392 }
 0x4c4   :  { %v383_v35 = vpop.permute.xlu0 %382 }
 0x4c5   :  { %v385_v6 = vmul.f32 %v383_v35, %v377_v16 }
 0x4c7   :  { %v2174_v36 = vrot.slane %v385_v6, %v2074_v27 }
 0x4c9   :  { %v414_v39 = vmul.f32 %v2174_v36, %v393_v37 }
 0x4cb   :  { %v418_v40 = vsub.f32 %v386_v17, %v414_v39 }
 0x4cd   :  { %422 = vst.msk [vmem:[#allocation2] sm:$0xff] %vm71_vm3, %v418_v40 }
 0x4ce   :  { %426 = vst.msk [vmem:[#allocation2 + $0x6] sm:$0x1] %vm125_vm5, %v385_v6 }
 0x4d4   :  { %v427_v42 = vld [vmem:[#allocation2 + $0x7] sm:$0x1] }
 0x4d5   :  { %1888 = vrcp.f32 %v427_v42 }
 0x4df   :  { %v1889_v43 = vpop.eup %1888 }
 0x4e0   :  { %432 = vperm.xlu1 %1783, %v1889_v43  }
 0x4e4   :  { %1785 = vset.pattern.permute.xlu1 %v1995_v20 }
 0x50b   :  { %v398_v44 = vpop.permute.xlu1 %397 }
 0x50c   :  { %v415_v45 = vmul.f32 %v2174_v36, %v398_v44 }
 0x50e   :  { %v419_v46 = vsub.f32 %v387_v25, %v415_v45 }
 0x510   :  { %423 = vst.msk [vmem:[#allocation2 + $0x8] sm:$0xff] %vm71_vm3, %v419_v46 }
 0x517   :  { %v437_v47 = vld [vmem:[#allocation2 + $0x8] sm:$0xff] }
 0x518   :  { %447 = vperm.xlu0 %1784, %v437_v47  }
 0x51c   :  { %1787 = vset.pattern.permute.xlu0 %v1996_v54 }
 0x524   :  { %v258_v48 = vpop.permute.xlu0 %257 }
 0x525   :  { %v267_v19 = vmul.f32 %v2120_v23, %v258_v48 }
 0x527   :  { %v271_v49 = vsub.f32 %v239_v55, %v267_v19 }
 0x529   :  { %275 = vst.msk [vmem:[#allocation2 + $0x18] sm:$0xff] %vm71_vm3, %v271_v49 }
 0x52e   :  { %v353_v50 = vpop.permute.xlu1 %352 }
 0x52f   :  { %v366_v51 = vmul.f32 %v2158_v41, %v353_v50 }
 0x530   :  { %v289_v20 = vld [vmem:[#allocation2 + $0x18] sm:$0xff] }
 0x531   :  { %v370_v52 = vsub.f32 %v338_v34, %v366_v51  ;;  %307 = vperm.xlu1 %1785, %v289_v20  }
 0x533   :  { %374 = vst.msk [vmem:[#allocation2 + $0x10] sm:$0xff] %vm71_vm3, %v370_v52 }
 0x535   :  { %1786 = vset.pattern.permute.xlu1 %v1997_v5 }
 0x53a   :  { %v388_v30 = vld [vmem:[#allocation2 + $0x10] sm:$0xff] }
 0x53b   :  { %402 = vperm.xlu1 %1786, %v388_v30  }
 0x53f   :  { %1788 = vset.pattern.permute.xlu1 %v1999_v56 }
 0x55f   :  { %v433_v54 = vpop.permute.xlu1 %432 }
 0x560   :  { %v2189_v23 = vmul.f32 %v433_v54, %v427_v42 }
 0x562   :  { %v2193_v57 = vrot.slane %v2189_v23, %v2074_v27 }
 0x597   :  { %v448_v58 = vpop.permute.xlu0 %447 }
 0x598   :  { %v465_v59 = vmul.f32 %v2193_v57, %v448_v58 }
 0x59a   :  { %v469_v60 = vsub.f32 %v437_v47, %v465_v59 }
 0x59c   :  { %473 = vst.msk [vmem:[#allocation2 + $0x8] sm:$0xff] %vm71_vm3, %v469_v60 }
 0x5a3   :  { %v477_v61 = vld [vmem:[#allocation2 + $0x8] sm:$0x1] }
 0x5a4   :  { %1890 = vrcp.f32 %v477_v61  ;;  %v487_v1 = vld [vmem:[#allocation2 + $0x8] sm:$0xff] }
 0x5ae   :  { %v1891_v62 = vpop.eup %1890 }
 0x5af   :  { %482 = vperm.xlu1 %1788, %v1891_v62  }
 0x5b0   :  { %v308_v63 = vpop.permute.xlu1 %307 }
 0x5b1   :  { %v317_v0 = vmul.f32 %v2140_v53, %v308_v63  ;;  %v2000_v53 = vmov 9  }
 0x5b3   :  { %497 = vperm.xlu1 %1788, %v487_v1   ;;  %v321_v2 = vsub.f32 %v289_v20, %v317_v0  ;;  %v436_v0 = vld [vmem:[#allocation2] sm:$0xff] }
 0x5b5   :  { %325 = vst.msk [vmem:[#allocation2 + $0x18] sm:$0xff] %vm71_vm3, %v321_v2 }
 0x5b7   :  { %1790 = vset.pattern.permute.xlu1 %v1997_v5 }
 0x5ba   :  { %v403_v7 = vpop.permute.xlu1 %402 }
 0x5bb   :  { %v416_v4 = vmul.f32 %v2174_v36, %v403_v7 }
 0x5bc   :  { %v339_v38 = vld [vmem:[#allocation2 + $0x18] sm:$0xff] }
 0x5bd   :  { %v420_v8 = vsub.f32 %v388_v30, %v416_v4  ;;  %357 = vperm.xlu0 %1787, %v339_v38   ;;  %v2002_v30 = vmov 11  }
 0x5bf   :  { %424 = vst.msk [vmem:[#allocation2 + $0x10] sm:$0xff] %vm71_vm3, %v420_v8 }
 0x5c1   :  { %1789 = vset.pattern.permute.xlu0 %v1998_v33 }
 0x5c6   :  { %v438_v9 = vld [vmem:[#allocation2 + $0x10] sm:$0xff] }
 0x5c7   :  { %452 = vperm.xlu0 %1789, %v438_v9  }
 0x5cb   :  { %1792 = vset.pattern.permute.xlu0 %v2000_v53 }
 0x62e   :  { %v483_v10 = vpop.permute.xlu1 %482 }
 0x62f   :  { %v485_v11 = vmul.f32 %v483_v10, %v477_v61 }
 0x631   :  { %v2205_v12 = vrot.slane %v485_v11, %v2074_v27 }
 0x632   :  { %v498_v5 = vpop.permute.xlu1 %497 }
 0x633   :  { %v515_v13 = vmul.f32 %v2205_v12, %v498_v5 }
 0x635   :  { %v519_v14 = vsub.f32 %v487_v1, %v515_v13 }
 0x637   :  { %523 = vst.msk [vmem:[#allocation2 + $0x8] sm:$0xff] %vm71_vm3, %v519_v14 }
 0x638   :  { %526 = vst.msk [vmem:[#allocation2 + $0x8] sm:$0x1] %vm125_vm5, %v485_v11 }
 0x63c   :  { %v358_v15 = vpop.permute.xlu0 %357 }
 0x63d   :  { %v367_v16 = vmul.f32 %v2158_v41, %v358_v15 }
 0x63e   :  { %v527_v21 = vld [vmem:[#allocation2 + $0x9] sm:$0x1] }
 0x63f   :  { %v537_v17 = vld [vmem:[#allocation2 + $0x8] sm:$0xff]  ;;  %v371_v18 = vsub.f32 %v339_v38, %v367_v16  ;;  %1892 = vrcp.f32 %v527_v21  ;;  %v2003_v16 = vmov 12  }
 0x640   :  { %547 = vperm.xlu0 %1792, %v537_v17  }
 0x641   :  { %375 = vst.msk [vmem:[#allocation2 + $0x18] sm:$0xff] %vm71_vm3, %v371_v18 }
 0x644   :  { %1795 = vset.pattern.permute.xlu0 %v2001_v28 }
 0x646   :  { %v453_v22 = vpop.permute.xlu0 %452 }
 0x647   :  { %v466_v24 = vmul.f32 %v2193_v57, %v453_v22 }
 0x648   :  { %v389_v25 = vld [vmem:[#allocation2 + $0x18] sm:$0xff] }
 0x649   :  { %v470_v3 = vsub.f32 %v438_v9, %v466_v24  ;;  %407 = vperm.xlu1 %1790, %v389_v25   ;;  %v1893_v26 = vpop.eup %1892 }
 0x64b   :  { %474 = vst.msk [vmem:[#allocation2 + $0x10] sm:$0xff] %vm71_vm3, %v470_v3 }
 0x64d   :  { %1791 = vset.pattern.permute.xlu1 %v2000_v53 }
 0x64e   :  { %532 = vperm.xlu1 %1791, %v1893_v26  }
 0x652   :  { %1793 = vset.pattern.permute.xlu1 %v1999_v56  ;;  %v488_v41 = vld [vmem:[#allocation2 + $0x10] sm:$0xff] }
 0x653   :  { %502 = vperm.xlu1 %1793, %v488_v41  }
 0x657   :  { %1794 = vset.pattern.permute.xlu1 %v1998_v33 }
 0x6bf   :  { %v548_v6 = vpop.permute.xlu0 %547 }
 0x6c8   :  { %v408_v29 = vpop.permute.xlu1 %407 }
 0x6c9   :  { %v417_v31 = vmul.f32 %v2174_v36, %v408_v29 }
 0x6cb   :  { %v421_v55 = vsub.f32 %v389_v25, %v417_v31 }
 0x6cd   :  { %425 = vst.msk [vmem:[#allocation2 + $0x18] sm:$0xff] %vm71_vm3, %v421_v55  ;;  %v533_v32 = vpop.permute.xlu1 %532 }
 0x6ce   :  { %v535_v34 = vmul.f32 %v533_v32, %v527_v21 }
 0x6d0   :  { %v2221_v35 = vrot.slane %v535_v34, %v2074_v27 }
 0x6d2   :  { %v565_v37 = vmul.f32 %v2221_v35, %v548_v6  ;;  %v503_v39 = vpop.permute.xlu1 %502 }
 0x6d3   :  { %v516_v40 = vmul.f32 %v2205_v12, %v503_v39 }
 0x6d4   :  { %v569_v42 = vsub.f32 %v537_v17, %v565_v37  ;;  %v439_v43 = vld [vmem:[#allocation2 + $0x18] sm:$0xff] }
 0x6d5   :  { %v520_v44 = vsub.f32 %v488_v41, %v516_v40  ;;  %457 = vperm.xlu1 %1794, %v439_v43  }
 0x6d6   :  { %573 = vst.msk [vmem:[#allocation2 + $0x8] sm:$0xff] %vm71_vm3, %v569_v42 }
 0x6d7   :  { %576 = vst.msk [vmem:[#allocation2 + $0x9] sm:$0x1] %vm125_vm5, %v535_v34 }
 0x6d8   :  { %524 = vst.msk [vmem:[#allocation2 + $0x10] sm:$0xff] %vm71_vm3, %v520_v44 }
 0x6d9   :  { %1796 = vset.pattern.permute.xlu1 %v2000_v53 }
 0x6dd   :  { %v577_v36 = vld [vmem:[#allocation2 + $0xa] sm:$0x1] }
 0x6de   :  { %1894 = vrcp.f32 %v577_v36  ;;  %v587_v46 = vld [vmem:[#allocation2 + $0x8] sm:$0xff] }
 0x6df   :  { %v538_v45 = vld [vmem:[#allocation2 + $0x10] sm:$0xff] }
 0x6e0   :  { %552 = vperm.xlu1 %1796, %v538_v45  }
 0x6e4   :  { %1797 = vset.pattern.permute.xlu1 %v2001_v28 }
 0x6e5   :  { %597 = vperm.xlu1 %1797, %v587_v46  }
 0x6e8   :  { %v1895_v47 = vpop.eup %1894 }
 0x6e9   :  { %582 = vperm.xlu0 %1795, %v1895_v47  }
 0x6ed   :  { %1798 = vset.pattern.permute.xlu0 %v1999_v56 }
 0x754   :  { %v458_v48 = vpop.permute.xlu1 %457 }
 0x755   :  { %v467_v19 = vmul.f32 %v2193_v57, %v458_v48 }
 0x757   :  { %v471_v49 = vsub.f32 %v439_v43, %v467_v19  ;;  %v2004_v43 = vmov 13  }
 0x759   :  { %475 = vst.msk [vmem:[#allocation2 + $0x18] sm:$0xff] %vm71_vm3, %v471_v49 }
 0x75f   :  { %v553_v50 = vpop.permute.xlu1 %552 }
 0x760   :  { %v566_v51 = vmul.f32 %v2221_v35, %v553_v50  ;;  %v489_v20 = vld [vmem:[#allocation2 + $0x18] sm:$0xff] }
 0x761   :  { %507 = vperm.xlu0 %1798, %v489_v20  }
 0x762   :  { %v570_v52 = vsub.f32 %v538_v45, %v566_v51 }
 0x764   :  { %574 = vst.msk [vmem:[#allocation2 + $0x10] sm:$0xff] %vm71_vm3, %v570_v52  ;;  %v598_v61 = vpop.permute.xlu1 %597 }
 0x765   :  { %1800 = vset.pattern.permute.xlu0 %v2002_v30 }
 0x768   :  { %v583_v54 = vpop.permute.xlu0 %582 }
 0x769   :  { %v585_v58 = vmul.f32 %v583_v54, %v577_v36 }
 0x76b   :  { %v588_v59 = vld [vmem:[#allocation2 + $0x10] sm:$0xff]  ;;  %v2237_v60 = vrot.slane %v585_v58, %v2074_v27 }
 0x76c   :  { %602 = vperm.xlu1 %1797, %v588_v59  }
 0x76d   :  { %v615_v62 = vmul.f32 %v2237_v60, %v598_v61 }
 0x76f   :  { %v619_v63 = vsub.f32 %v587_v46, %v615_v62 }
 0x770   :  { %1799 = vset.pattern.permute.xlu1 %v1998_v33 }
 0x771   :  { %442 = vperm.xlu1 %1799, %v436_v0   ;;  %623 = vst.msk [vmem:[#allocation2 + $0x8] sm:$0xff] %vm71_vm3, %v619_v63  ;;  %v2005_v63 = vmov 14  }
 0x772   :  { %626 = vst.msk [vmem:[#allocation2 + $0xa] sm:$0x1] %vm125_vm5, %v585_v58 }
 0x775   :  { %1801 = vset.pattern.permute.xlu1 %v2002_v30 }
 0x778   :  { %v627_v1 = vld [vmem:[#allocation2 + $0xb] sm:$0x1] }
 0x779   :  { %v637_v2 = vld [vmem:[#allocation2 + $0x8] sm:$0xff]  ;;  %1896 = vrcp.f32 %v627_v1 }
 0x77a   :  { %647 = vperm.xlu1 %1801, %v637_v2  }
 0x77e   :  { %1802 = vset.pattern.permute.xlu1 %v2000_v53 }
 0x783   :  { %v1897_v7 = vpop.eup %1896 }
 0x784   :  { %632 = vperm.xlu0 %1800, %v1897_v7  }
 0x7e0   :  { %v508_v4 = vpop.permute.xlu0 %507 }
 0x7e1   :  { %v517_v38 = vmul.f32 %v2205_v12, %v508_v4 }
 0x7e3   :  { %v521_v33 = vsub.f32 %v489_v20, %v517_v38 }
 0x7e5   :  { %525 = vst.msk [vmem:[#allocation2 + $0x18] sm:$0xff] %vm71_vm3, %v521_v33 }
 0x7eb   :  { %v603_v8 = vpop.permute.xlu1 %602 }
 0x7ec   :  { %v616_v9 = vmul.f32 %v2237_v60, %v603_v8  ;;  %v539_v10 = vld [vmem:[#allocation2 + $0x18] sm:$0xff] }
 0x7ed   :  { %557 = vperm.xlu1 %1802, %v539_v10  }
 0x7ee   :  { %v620_v11 = vsub.f32 %v588_v59, %v616_v9 }
 0x7f0   :  { %624 = vst.msk [vmem:[#allocation2 + $0x10] sm:$0xff] %vm71_vm3, %v620_v11  ;;  %v443_v5 = vpop.permute.xlu1 %442 }
 0x7f1   :  { %v464_v13 = vmul.f32 %v2193_v57, %v443_v5  ;;  %1803 = vset.pattern.permute.xlu1 %v1999_v56 }
 0x7f3   :  { %v468_v14 = vsub.f32 %v436_v0, %v464_v13 }
 0x7f5   :  { %472 = vst.msk [vmem:[#allocation2] sm:$0xff] %vm71_vm3, %v468_v14 }
 0x7f6   :  { %476 = vst.msk [vmem:[#allocation2 + $0x7] sm:$0x1] %vm125_vm5, %v2189_v23 }
 0x7f7   :  { %v638_v15 = vld [vmem:[#allocation2 + $0x10] sm:$0xff] }
 0x7f8   :  { %652 = vperm.xlu0 %1800, %v638_v15  }
 0x7f9   :  { %v648_v56 = vpop.permute.xlu1 %647 }
 0x7fc   :  { %1804 = vset.pattern.permute.xlu0 %v2003_v16 }
 0x7fd   :  { %v486_v17 = vld [vmem:[#allocation2] sm:$0xff] }
 0x7fe   :  { %492 = vperm.xlu1 %1803, %v486_v17  }
 0x802   :  { %1805 = vset.pattern.permute.xlu1 %v2003_v16 }
 0x803   :  { %v633_v18 = vpop.permute.xlu0 %632 }
 0x804   :  { %v635_v21 = vmul.f32 %v633_v18, %v627_v1 }
 0x806   :  { %v2257_v57 = vrot.slane %v635_v21, %v2074_v27 }
 0x808   :  { %v665_v22 = vmul.f32 %v2257_v57, %v648_v56 }
 0x80a   :  { %v669_v24 = vsub.f32 %v637_v2, %v665_v22 }
 0x80c   :  { %673 = vst.msk [vmem:[#allocation2 + $0x8] sm:$0xff] %vm71_vm3, %v669_v24  ;;  %v2006_v24 = vmov 15  }
 0x80d   :  { %676 = vst.msk [vmem:[#allocation2 + $0xb] sm:$0x1] %vm125_vm5, %v635_v21 }
 0x813   :  { %v677_v23 = vld [vmem:[#allocation2 + $0xc] sm:$0x1] }
 0x814   :  { %v687_v25 = vld [vmem:[#allocation2 + $0x8] sm:$0xff]  ;;  %1898 = vrcp.f32 %v677_v23 }
 0x815   :  { %697 = vperm.xlu1 %1805, %v687_v25  }
 0x819   :  { %1806 = vset.pattern.permute.xlu1 %v2001_v28 }
 0x81e   :  { %v1899_v3 = vpop.eup %1898 }
 0x81f   :  { %682 = vperm.xlu0 %1804, %v1899_v3  }
 0x86c   :  { %v558_v26 = vpop.permute.xlu1 %557 }
 0x86d   :  { %v567_v41 = vmul.f32 %v2221_v35, %v558_v26 }
 0x86f   :  { %v571_v29 = vsub.f32 %v539_v10, %v567_v41 }
 0x871   :  { %575 = vst.msk [vmem:[#allocation2 + $0x18] sm:$0xff] %vm71_vm3, %v571_v29 }
 0x877   :  { %v653_v31 = vpop.permute.xlu0 %652 }
 0x878   :  { %v666_v55 = vmul.f32 %v2257_v57, %v653_v31  ;;  %v589_v32 = vld [vmem:[#allocation2 + $0x18] sm:$0xff] }
 0x879   :  { %607 = vperm.xlu1 %1806, %v589_v32  }
 0x87a   :  { %v670_v34 = vsub.f32 %v638_v15, %v666_v55 }
 0x87c   :  { %674 = vst.msk [vmem:[#allocation2 + $0x10] sm:$0xff] %vm71_vm3, %v670_v34 }
 0x87d   :  { %v493_v6 = vpop.permute.xlu1 %492  ;;  %1807 = vset.pattern.permute.xlu1 %v2000_v53 }
 0x87e   :  { %v514_v37 = vmul.f32 %v2205_v12, %v493_v6 }
 0x880   :  { %v518_v39 = vsub.f32 %v486_v17, %v514_v37 }
 0x882   :  { %522 = vst.msk [vmem:[#allocation2] sm:$0xff] %vm71_vm3, %v518_v39 }
 0x883   :  { %v688_v40 = vld [vmem:[#allocation2 + $0x10] sm:$0xff] }
 0x884   :  { %702 = vperm.xlu0 %1804, %v688_v40  }
 0x888   :  { %1808 = vset.pattern.permute.xlu0 %v2002_v30 }
 0x889   :  { %v536_v42 = vld [vmem:[#allocation2] sm:$0xff] }
 0x88a   :  { %542 = vperm.xlu1 %1807, %v536_v42  }
 0x88e   :  { %1809 = vset.pattern.permute.xlu1 %v2004_v43 }
 0x894   :  { %v698_v12 = vpop.permute.xlu1 %697 }
 0x89e   :  { %v683_v44 = vpop.permute.xlu0 %682 }
 0x89f   :  { %v685_v36 = vmul.f32 %v683_v44, %v677_v23 }
 0x8a1   :  { %v2273_v45 = vrot.slane %v685_v36, %v2074_v27 }
 0x8a3   :  { %v715_v53 = vmul.f32 %v2273_v45, %v698_v12 }
 0x8a5   :  { %v719_v46 = vsub.f32 %v687_v25, %v715_v53 }
 0x8a7   :  { %723 = vst.msk [vmem:[#allocation2 + $0x8] sm:$0xff] %vm71_vm3, %v719_v46 }
 0x8a8   :  { %726 = vst.msk [vmem:[#allocation2 + $0xc] sm:$0x1] %vm125_vm5, %v685_v36 }
 0x8ae   :  { %v727_v47 = vld [vmem:[#allocation2 + $0xd] sm:$0x1] }
 0x8af   :  { %1900 = vrcp.f32 %v727_v47  ;;  %v737_v19 = vld [vmem:[#allocation2 + $0x8] sm:$0xff] }
 0x8b9   :  { %v1901_v48 = vpop.eup %1900 }
 0x8ba   :  { %732 = vperm.xlu1 %1809, %v1901_v48  }
 0x8be   :  { %747 = vperm.xlu1 %1809, %v737_v19  }
 0x8c2   :  { %1811 = vset.pattern.permute.xlu1 %v2001_v28 }
 0x8f8   :  { %v608_v49 = vpop.permute.xlu1 %607 }
 0x8f9   :  { %v617_v50 = vmul.f32 %v2237_v60, %v608_v49 }
 0x8fb   :  { %v621_v51 = vsub.f32 %v589_v32, %v617_v50 }
 0x8fd   :  { %625 = vst.msk [vmem:[#allocation2 + $0x18] sm:$0xff] %vm71_vm3, %v621_v51 }
 0x903   :  { %v703_v20 = vpop.permute.xlu0 %702 }
 0x904   :  { %v716_v52 = vmul.f32 %v2273_v45, %v703_v20  ;;  %v639_v54 = vld [vmem:[#allocation2 + $0x18] sm:$0xff] }
 0x905   :  { %657 = vperm.xlu0 %1808, %v639_v54  }
 0x906   :  { %v720_v58 = vsub.f32 %v688_v40, %v716_v52 }
 0x908   :  { %724 = vst.msk [vmem:[#allocation2 + $0x10] sm:$0xff] %vm71_vm3, %v720_v58 }
 0x909   :  { %v543_v59 = vpop.permute.xlu1 %542  ;;  %1810 = vset.pattern.permute.xlu0 %v2004_v43 }
 0x90a   :  { %v564_v61 = vmul.f32 %v2221_v35, %v543_v59 }
 0x90c   :  { %v568_v28 = vsub.f32 %v536_v42, %v564_v61 }
 0x90e   :  { %572 = vst.msk [vmem:[#allocation2] sm:$0xff] %vm71_vm3, %v568_v28 }
 0x90f   :  { %v738_v62 = vld [vmem:[#allocation2 + $0x10] sm:$0xff] }
 0x910   :  { %752 = vperm.xlu0 %1810, %v738_v62  }
 0x914   :  { %1813 = vset.pattern.permute.xlu0 %v2005_v63 }
 0x915   :  { %v586_v0 = vld [vmem:[#allocation2] sm:$0xff] }
 0x916   :  { %592 = vperm.xlu1 %1811, %v586_v0  }
 0x91a   :  { %1812 = vset.pattern.permute.xlu1 %v2003_v16 }
 0x939   :  { %v733_v1 = vpop.permute.xlu1 %732 }
 0x93a   :  { %v735_v2 = vmul.f32 %v733_v1, %v727_v47 }
 0x93c   :  { %v2289_v7 = vrot.slane %v735_v2, %v2074_v27 }
 0x93d   :  { %v748_v35 = vpop.permute.xlu1 %747 }
 0x93e   :  { %v765_v4 = vmul.f32 %v2289_v7, %v748_v35  ;;  %v2008_v35 = vmov 17  }
 0x940   :  { %v769_v38 = vsub.f32 %v737_v19, %v765_v4 }
 0x942   :  { %773 = vst.msk [vmem:[#allocation2 + $0x8] sm:$0xff] %vm71_vm3, %v769_v38 }
 0x943   :  { %776 = vst.msk [vmem:[#allocation2 + $0xd] sm:$0x1] %vm125_vm5, %v735_v2 }
 0x949   :  { %v777_v33 = vld [vmem:[#allocation2 + $0xe] sm:$0x1] }
 0x94a   :  { %1902 = vrcp.f32 %v777_v33 }
 0x954   :  { %v1903_v8 = vpop.eup %1902 }
 0x955   :  { %782 = vperm.xlu0 %1813, %v1903_v8  }
 0x959   :  { %1815 = vset.pattern.permute.xlu0 %v2002_v30  ;;  %v787_v30 = vld [vmem:[#allocation2 + $0x8] sm:$0xff] }
 0x984   :  { %v658_v9 = vpop.permute.xlu0 %657 }
 0x985   :  { %v667_v10 = vmul.f32 %v2257_v57, %v658_v9 }
 0x987   :  { %v671_v11 = vsub.f32 %v639_v54, %v667_v10 }
 0x989   :  { %675 = vst.msk [vmem:[#allocation2 + $0x18] sm:$0xff] %vm71_vm3, %v671_v11 }
 0x98f   :  { %v753_v5 = vpop.permute.xlu0 %752 }
 0x990   :  { %v766_v13 = vmul.f32 %v2289_v7, %v753_v5  ;;  %v689_v14 = vld [vmem:[#allocation2 + $0x18] sm:$0xff] }
 0x991   :  { %707 = vperm.xlu1 %1812, %v689_v14  }
 0x992   :  { %v770_v15 = vsub.f32 %v738_v62, %v766_v13 }
 0x994   :  { %774 = vst.msk [vmem:[#allocation2 + $0x10] sm:$0xff] %vm71_vm3, %v770_v15 }
 0x995   :  { %v593_v17 = vpop.permute.xlu1 %592  ;;  %1814 = vset.pattern.permute.xlu1 %v2005_v63 }
 0x996   :  { %v614_v18 = vmul.f32 %v2237_v60, %v593_v17  ;;  %797 = vperm.xlu1 %1814, %v787_v30  }
 0x998   :  { %v618_v21 = vsub.f32 %v586_v0, %v614_v18 }
 0x99a   :  { %622 = vst.msk [vmem:[#allocation2] sm:$0xff] %vm71_vm3, %v618_v21 }
 0x99b   :  { %v788_v56 = vld [vmem:[#allocation2 + $0x10] sm:$0xff] }
 0x99c   :  { %802 = vperm.xlu1 %1814, %v788_v56  }
 0x9a0   :  { %1816 = vset.pattern.permute.xlu1 %v2004_v43 }
 0x9a1   :  { %v636_v22 = vld [vmem:[#allocation2] sm:$0xff] }
 0x9a2   :  { %642 = vperm.xlu0 %1815, %v636_v22  }
 0x9a6   :  { %1818 = vset.pattern.permute.xlu0 %v2006_v24 }
 0x9d4   :  { %v783_v23 = vpop.permute.xlu0 %782 }
 0x9d5   :  { %v785_v25 = vmul.f32 %v783_v23, %v777_v33 }
 0x9d7   :  { %v2306_v41 = vrot.slane %v785_v25, %v2074_v27 }
 0xa10   :  { %v708_v3 = vpop.permute.xlu1 %707 }
 0xa11   :  { %v717_v60 = vmul.f32 %v2273_v45, %v708_v3 }
 0xa13   :  { %v721_v26 = vsub.f32 %v689_v14, %v717_v60 }
 0xa15   :  { %725 = vst.msk [vmem:[#allocation2 + $0x18] sm:$0xff] %vm71_vm3, %v721_v26  ;;  %v798_v29 = vpop.permute.xlu1 %797 }
 0xa16   :  { %v815_v31 = vmul.f32 %v2306_v41, %v798_v29 }
 0xa18   :  { %v819_v55 = vsub.f32 %v787_v30, %v815_v31 }
 0xa1a   :  { %823 = vst.msk [vmem:[#allocation2 + $0x8] sm:$0xff] %vm71_vm3, %v819_v55 }
 0xa1b   :  { %v803_v32 = vpop.permute.xlu1 %802  ;;  %826 = vst.msk [vmem:[#allocation2 + $0xe] sm:$0x1] %vm125_vm5, %v785_v25  ;;  %v2009_v25 = vmov 18  }
 0xa1c   :  { %v816_v34 = vmul.f32 %v2306_v41, %v803_v32  ;;  %v739_v6 = vld [vmem:[#allocation2 + $0x18] sm:$0xff] }
 0xa1d   :  { %757 = vperm.xlu1 %1816, %v739_v6  }
 0xa1e   :  { %v820_v37 = vsub.f32 %v788_v56, %v816_v34 }
 0xa20   :  { %824 = vst.msk [vmem:[#allocation2 + $0x10] sm:$0xff] %vm71_vm3, %v820_v37 }
 0xa21   :  { %v643_v39 = vpop.permute.xlu0 %642  ;;  %v827_v40 = vld [vmem:[#allocation2 + $0xf] sm:$0x1]  ;;  %1817 = vset.pattern.permute.xlu1 %v2006_v24 }
 0xa22   :  { %v664_v42 = vmul.f32 %v2257_v57, %v643_v39  ;;  %1904 = vrcp.f32 %v827_v40  ;;  %v837_v56 = vld [vmem:[#allocation2 + $0x8] sm:$0xff] }
 0xa24   :  { %v668_v44 = vsub.f32 %v636_v22, %v664_v42 }
 0xa26   :  { %672 = vst.msk [vmem:[#allocation2] sm:$0xff] %vm71_vm3, %v668_v44 }
 0xa27   :  { %v838_v36 = vld [vmem:[#allocation2 + $0x10] sm:$0xff] }
 0xa28   :  { %852 = vperm.xlu0 %1818, %v838_v36  }
 0xa2c   :  { %1821 = vset.pattern.permute.xlu0 %v2004_v43  ;;  %v1905_v12 = vpop.eup %1904  ;;  %v2007_v43 = vmov 16  }
 0xa2d   :  { %832 = vperm.xlu1 %1817, %v1905_v12   ;;  %v686_v53 = vld [vmem:[#allocation2] sm:$0xff] }
 0xa31   :  { %1819 = vset.pattern.permute.xlu1 %v2003_v16 }
 0xa32   :  { %692 = vperm.xlu1 %1819, %v686_v53  }
 0xa36   :  { %1820 = vset.pattern.permute.xlu1 %v2005_v63 }
 0xa9c   :  { %v758_v46 = vpop.permute.xlu1 %757 }
 0xa9d   :  { %v767_v57 = vmul.f32 %v2289_v7, %v758_v46 }
 0xa9f   :  { %v771_v47 = vsub.f32 %v739_v6, %v767_v57 }
 0xaa1   :  { %775 = vst.msk [vmem:[#allocation2 + $0x18] sm:$0xff] %vm71_vm3, %v771_v47 }
 0xaa7   :  { %v853_v50 = vpop.permute.xlu0 %852 }
 0xaa8   :  { %v789_v48 = vld [vmem:[#allocation2 + $0x18] sm:$0xff] }
 0xaa9   :  { %807 = vperm.xlu1 %1820, %v789_v48  }
 0xaac   :  { %v833_v19 = vpop.permute.xlu1 %832 }
 0xaad   :  { %v2322_v49 = vmul.f32 %v833_v19, %v827_v40  ;;  %1822 = vset.pattern.permute.xlu1 %v2007_v43  ;;  %v2010_v19 = vmov 19  }
 0xaaf   :  { %v2327_v16 = vrot.slane %v2322_v49, %v2074_v27 }
 0xab1   :  { %v866_v51 = vmul.f32 %v2327_v16, %v853_v50  ;;  %v693_v20 = vpop.permute.xlu1 %692 }
 0xab2   :  { %v714_v52 = vmul.f32 %v2273_v45, %v693_v20 }
 0xab3   :  { %v870_v54 = vsub.f32 %v838_v36, %v866_v51 }
 0xab4   :  { %v718_v58 = vsub.f32 %v686_v53, %v714_v52 }
 0xab5   :  { %874 = vst.msk [vmem:[#allocation2 + $0x10] sm:$0xff] %vm71_vm3, %v870_v54 }
 0xab6   :  { %722 = vst.msk [vmem:[#allocation2] sm:$0xff] %vm71_vm3, %v718_v58 }
 0xabc   :  { %v877_v59 = vld [vmem:[#allocation2 + $0x10] sm:$0x1] }
 0xabd   :  { %v736_v61 = vld [vmem:[#allocation2] sm:$0xff]  ;;  %1906 = vrcp.f32 %v877_v59  ;;  %v888_v62 = vld [vmem:[#allocation2 + $0x10] sm:$0xff] }
 0xabe   :  { %742 = vperm.xlu0 %1821, %v736_v61  }
 0xac2   :  { %1823 = vset.pattern.permute.xlu0 %v2006_v24 }
 0xac7   :  { %v1907_v28 = vpop.eup %1906 }
 0xac8   :  { %882 = vperm.xlu1 %1822, %v1907_v28  }
 0xacc   :  { %902 = vperm.xlu1 %1822, %v888_v62  }
 0xad0   :  { %1824 = vset.pattern.permute.xlu1 %v2005_v63 }
 0xb28   :  { %v808_v0 = vpop.permute.xlu1 %807 }
 0xb29   :  { %v817_v45 = vmul.f32 %v2306_v41, %v808_v0 }
 0xb2b   :  { %v821_v1 = vsub.f32 %v789_v48, %v817_v45 }
 0xb2d   :  { %825 = vst.msk [vmem:[#allocation2 + $0x18] sm:$0xff] %vm71_vm3, %v821_v1 }
 0xb34   :  { %v839_v2 = vld [vmem:[#allocation2 + $0x18] sm:$0xff] }
 0xb35   :  { %857 = vperm.xlu0 %1823, %v839_v2  }
 0xb39   :  { %1826 = vset.pattern.permute.xlu0 %v2008_v35 }
 0xb3d   :  { %v743_v4 = vpop.permute.xlu0 %742 }
 0xb3e   :  { %v764_v38 = vmul.f32 %v2289_v7, %v743_v4 }
 0xb40   :  { %v768_v33 = vsub.f32 %v736_v61, %v764_v38 }
 0xb42   :  { %772 = vst.msk [vmem:[#allocation2] sm:$0xff] %vm71_vm3, %v768_v33 }
 0xb47   :  { %v883_v8 = vpop.permute.xlu1 %882 }
 0xb48   :  { %v885_v9 = vmul.f32 %v883_v8, %v877_v59  ;;  %v2011_v8 = vmov 20  }
 0xb49   :  { %v786_v63 = vld [vmem:[#allocation2] sm:$0xff] }
 0xb4a   :  { %v2341_v10 = vrot.slane %v885_v9, %v2074_v27  ;;  %792 = vperm.xlu1 %1824, %v786_v63  }
 0xb4b   :  { %v903_v11 = vpop.permute.xlu1 %902 }
 0xb4c   :  { %v916_v5 = vmul.f32 %v2341_v10, %v903_v11 }
 0xb4e   :  { %v920_v13 = vsub.f32 %v888_v62, %v916_v5  ;;  %1825 = vset.pattern.permute.xlu1 %v2008_v35 }
 0xb50   :  { %924 = vst.msk [vmem:[#allocation2 + $0x10] sm:$0xff] %vm71_vm3, %v920_v13 }
 0xb51   :  { %926 = vst.msk [vmem:[#allocation2 + $0x10] sm:$0x1] %vm125_vm5, %v885_v9 }
 0xb57   :  { %v927_v7 = vld [vmem:[#allocation2 + $0x11] sm:$0x1] }
 0xb58   :  { %v938_v14 = vld [vmem:[#allocation2 + $0x10] sm:$0xff]  ;;  %1908 = vrcp.f32 %v927_v7 }
 0xb59   :  { %952 = vperm.xlu0 %1826, %v938_v14  }
 0xb5d   :  { %1829 = vset.pattern.permute.xlu0 %v2006_v24 }
 0xb62   :  { %v1909_v15 = vpop.eup %1908 }
 0xb63   :  { %932 = vperm.xlu1 %1825, %v1909_v15  }
 0xb67   :  { %1827 = vset.pattern.permute.xlu1 %v2007_v43 }
 0xbb4   :  { %v858_v17 = vpop.permute.xlu0 %857 }
 0xbb5   :  { %v867_v18 = vmul.f32 %v2327_v16, %v858_v17 }
 0xbb7   :  { %v871_v30 = vsub.f32 %v839_v2, %v867_v18 }
 0xbb9   :  { %875 = vst.msk [vmem:[#allocation2 + $0x18] sm:$0xff] %vm71_vm3, %v871_v30 }
 0xbc0   :  { %v889_v21 = vld [vmem:[#allocation2 + $0x18] sm:$0xff] }
 0xbc1   :  { %907 = vperm.xlu1 %1827, %v889_v21  }
 0xbc5   :  { %1828 = vset.pattern.permute.xlu1 %v2006_v24 }
 0xbc6   :  { %847 = vperm.xlu1 %1828, %v837_v56  }
 0xbc9   :  { %v793_v22 = vpop.permute.xlu1 %792 }
 0xbca   :  { %v814_v23 = vmul.f32 %v2306_v41, %v793_v22  ;;  %1830 = vset.pattern.permute.xlu1 %v2009_v25 }
 0xbcc   :  { %v818_v3 = vsub.f32 %v786_v63, %v814_v23 }
 0xbce   :  { %822 = vst.msk [vmem:[#allocation2] sm:$0xff] %vm71_vm3, %v818_v3 }
 0xbd5   :  { %v836_v60 = vld [vmem:[#allocation2] sm:$0xff] }
 0xbd6   :  { %842 = vperm.xlu0 %1829, %v836_v60  }
 0xbd8   :  { %v953_v24 = vpop.permute.xlu0 %952 }
 0xbda   :  { %1832 = vset.pattern.permute.xlu0 %v2009_v25 }
 0xbe2   :  { %v933_v26 = vpop.permute.xlu1 %932 }
 0xbe3   :  { %v935_v29 = vmul.f32 %v933_v26, %v927_v7 }
 0xbe5   :  { %v2357_v31 = vrot.slane %v935_v29, %v2074_v27 }
 0xbe7   :  { %v966_v55 = vmul.f32 %v2357_v31, %v953_v24 }
 0xbe9   :  { %v970_v32 = vsub.f32 %v938_v14, %v966_v55 }
 0xbeb   :  { %974 = vst.msk [vmem:[#allocation2 + $0x10] sm:$0xff] %vm71_vm3, %v970_v32 }
 0xbec   :  { %976 = vst.msk [vmem:[#allocation2 + $0x11] sm:$0x1] %vm125_vm5, %v935_v29 }
 0xbf2   :  { %v977_v41 = vld [vmem:[#allocation2 + $0x12] sm:$0x1] }
 0xbf3   :  { %v988_v34 = vld [vmem:[#allocation2 + $0x10] sm:$0xff]  ;;  %1910 = vrcp.f32 %v977_v41 }
 0xbf4   :  { %1002 = vperm.xlu0 %1832, %v988_v34  }
 0xbfd   :  { %v1911_v6 = vpop.eup %1910 }
 0xbfe   :  { %982 = vperm.xlu1 %1830, %v1911_v6  }
 0xc02   :  { %1831 = vset.pattern.permute.xlu1 %v2008_v35 }
 0xc40   :  { %v908_v37 = vpop.permute.xlu1 %907 }
 0xc41   :  { %v917_v39 = vmul.f32 %v2341_v10, %v908_v37 }
 0xc43   :  { %v921_v40 = vsub.f32 %v889_v21, %v917_v39 }
 0xc45   :  { %925 = vst.msk [vmem:[#allocation2 + $0x18] sm:$0xff] %vm71_vm3, %v921_v40  ;;  %v848_v42 = vpop.permute.xlu1 %847 }
 0xc46   :  { %v865_v44 = vmul.f32 %v2327_v16, %v848_v42 }
 0xc48   :  { %v869_v36 = vsub.f32 %v837_v56, %v865_v44 }
 0xc4a   :  { %873 = vst.msk [vmem:[#allocation2 + $0x8] sm:$0xff] %vm71_vm3, %v869_v36 }
 0xc4b   :  { %876 = vst.msk [vmem:[#allocation2 + $0xf] sm:$0x1] %vm125_vm5, %v2322_v49 }
 0xc4c   :  { %v939_v12 = vld [vmem:[#allocation2 + $0x18] sm:$0xff] }
 0xc4d   :  { %957 = vperm.xlu1 %1831, %v939_v12  }
 0xc51   :  { %1833 = vset.pattern.permute.xlu1 %v2007_v43 }
 0xc52   :  { %v887_v48 = vld [vmem:[#allocation2 + $0x8] sm:$0xff] }
 0xc55   :  { %v843_v53 = vpop.permute.xlu0 %842 }
 0xc56   :  { %v864_v46 = vmul.f32 %v2327_v16, %v843_v53 }
 0xc58   :  { %v868_v57 = vsub.f32 %v836_v60, %v864_v46 }
 0xc5a   :  { %872 = vst.msk [vmem:[#allocation2] sm:$0xff] %vm71_vm3, %v868_v57 }
 0xc61   :  { %v886_v47 = vld [vmem:[#allocation2] sm:$0xff] }
 0xc62   :  { %892 = vperm.xlu1 %1833, %v886_v47  }
 0xc66   :  { %897 = vperm.xlu1 %1833, %v887_v48  }
 0xc6a   :  { %1834 = vset.pattern.permute.xlu1 %v2010_v19 }
 0xc73   :  { %v1003_v20 = vpop.permute.xlu0 %1002 }
 0xc7d   :  { %v983_v50 = vpop.permute.xlu1 %982 }
 0xc7e   :  { %v985_v51 = vmul.f32 %v983_v50, %v977_v41 }
 0xc80   :  { %v2374_v49 = vrot.slane %v985_v51, %v2074_v27 }
 0xc82   :  { %v1016_v43 = vmul.f32 %v2374_v49, %v1003_v20 }
 0xc84   :  { %v1020_v52 = vsub.f32 %v988_v34, %v1016_v43 }
 0xc86   :  { %1024 = vst.msk [vmem:[#allocation2 + $0x10] sm:$0xff] %vm71_vm3, %v1020_v52 }
 0xc87   :  { %1026 = vst.msk [vmem:[#allocation2 + $0x12] sm:$0x1] %vm125_vm5, %v985_v51 }
 0xc8d   :  { %v1027_v16 = vld [vmem:[#allocation2 + $0x13] sm:$0x1] }
 0xc8e   :  { %1912 = vrcp.f32 %v1027_v16  ;;  %v1038_v62 = vld [vmem:[#allocation2 + $0x10] sm:$0xff] }
 0xc98   :  { %v1913_v54 = vpop.eup %1912 }
 0xc99   :  { %1032 = vperm.xlu1 %1834, %v1913_v54  }
 0xc9d   :  { %1836 = vset.pattern.permute.xlu1 %v2008_v35 }
 0xccc   :  { %v958_v58 = vpop.permute.xlu1 %957 }
 0xccd   :  { %v967_v59 = vmul.f32 %v2357_v31, %v958_v58 }
 0xccf   :  { %v971_v61 = vsub.f32 %v939_v12, %v967_v59 }
 0xcd1   :  { %975 = vst.msk [vmem:[#allocation2 + $0x18] sm:$0xff] %vm71_vm3, %v971_v61 }
 0xcd8   :  { %v989_v28 = vld [vmem:[#allocation2 + $0x18] sm:$0xff] }
 0xcd9   :  { %1007 = vperm.xlu0 %1832, %v989_v28  }
 0xcdd   :  { %1835 = vset.pattern.permute.xlu0 %v2010_v19 }
 0xcde   :  { %1052 = vperm.xlu0 %1835, %v1038_v62  }
 0xce1   :  { %v893_v0 = vpop.permute.xlu1 %892 }
 0xce2   :  { %v914_v45 = vmul.f32 %v2341_v10, %v893_v0 }
 0xce4   :  { %v918_v1 = vsub.f32 %v886_v47, %v914_v45 }
 0xce5   :  { %v898_v2 = vpop.permute.xlu1 %897 }
 0xce6   :  { %922 = vst.msk [vmem:[#allocation2] sm:$0xff] %vm71_vm3, %v918_v1  ;;  %v915_v35 = vmul.f32 %v2341_v10, %v898_v2 }
 0xce8   :  { %v919_v4 = vsub.f32 %v887_v48, %v915_v35 }
 0xcea   :  { %923 = vst.msk [vmem:[#allocation2 + $0x8] sm:$0xff] %vm71_vm3, %v919_v4 }
 0xced   :  { %v936_v38 = vld [vmem:[#allocation2] sm:$0xff] }
 0xcee   :  { %942 = vperm.xlu1 %1836, %v936_v38  }
 0xcf1   :  { %v937_v33 = vld [vmem:[#allocation2 + $0x8] sm:$0xff] }
 0xcf2   :  { %947 = vperm.xlu1 %1836, %v937_v33  }
 0xcf6   :  { %1837 = vset.pattern.permute.xlu1 %v2011_v8 }
 0xd18   :  { %v1033_v9 = vpop.permute.xlu1 %1032 }
 0xd19   :  { %v1035_v63 = vmul.f32 %v1033_v9, %v1027_v16  ;;  %v2013_v16 = vmov 22  }
 0xd1b   :  { %v2390_v7 = vrot.slane %v1035_v63, %v2074_v27 }
 0xd58   :  { %v1008_v11 = vpop.permute.xlu0 %1007 }
 0xd59   :  { %v1017_v5 = vmul.f32 %v2374_v49, %v1008_v11 }
 0xd5b   :  { %v1021_v13 = vsub.f32 %v989_v28, %v1017_v5 }
 0xd5d   :  { %1025 = vst.msk [vmem:[#allocation2 + $0x18] sm:$0xff] %vm71_vm3, %v1021_v13  ;;  %v1053_v10 = vpop.permute.xlu0 %1052 }
 0xd5e   :  { %v1066_v14 = vmul.f32 %v2390_v7, %v1053_v10 }
 0xd60   :  { %v1070_v15 = vsub.f32 %v1038_v62, %v1066_v14 }
 0xd62   :  { %1074 = vst.msk [vmem:[#allocation2 + $0x10] sm:$0xff] %vm71_vm3, %v1070_v15 }
 0xd63   :  { %1076 = vst.msk [vmem:[#allocation2 + $0x13] sm:$0x1] %vm125_vm5, %v1035_v63 }
 0xd64   :  { %v1039_v17 = vld [vmem:[#allocation2 + $0x18] sm:$0xff] }
 0xd65   :  { %1057 = vperm.xlu0 %1835, %v1039_v17  }
 0xd69   :  { %1838 = vset.pattern.permute.xlu0 %v2011_v8  ;;  %v1077_v18 = vld [vmem:[#allocation2 + $0x14] sm:$0x1] }
 0xd6a   :  { %v1088_v30 = vld [vmem:[#allocation2 + $0x10] sm:$0xff]  ;;  %1914 = vrcp.f32 %v1077_v18 }
 0xd6b   :  { %1102 = vperm.xlu0 %1838, %v1088_v30  }
 0xd6d   :  { %v943_v21 = vpop.permute.xlu1 %942 }
 0xd6e   :  { %v964_v56 = vmul.f32 %v2357_v31, %v943_v21 }
 0xd70   :  { %v968_v22 = vsub.f32 %v936_v38, %v964_v56 }
 0xd71   :  { %v948_v23 = vpop.permute.xlu1 %947 }
 0xd72   :  { %972 = vst.msk [vmem:[#allocation2] sm:$0xff] %vm71_vm3, %v968_v22  ;;  %v965_v3 = vmul.f32 %v2357_v31, %v948_v23  ;;  %v2014_v22 = vmov 23  }
 0xd74   :  { %v1915_v60 = vpop.eup %1914  ;;  %v969_v26 = vsub.f32 %v937_v33, %v965_v3 }
 0xd75   :  { %1082 = vperm.xlu1 %1837, %v1915_v60  }
 0xd76   :  { %973 = vst.msk [vmem:[#allocation2 + $0x8] sm:$0xff] %vm71_vm3, %v969_v26 }
 0xd79   :  { %1839 = vset.pattern.permute.xlu1 %v2009_v25  ;;  %v986_v29 = vld [vmem:[#allocation2] sm:$0xff] }
 0xd7a   :  { %992 = vperm.xlu1 %1839, %v986_v29  }
 0xd7d   :  { %v987_v24 = vld [vmem:[#allocation2 + $0x8] sm:$0xff] }
 0xd7e   :  { %997 = vperm.xlu1 %1839, %v987_v24  }
 0xd82   :  { %1841 = vset.pattern.permute.xlu1 %v2010_v19 }
 0xde4   :  { %v1058_v55 = vpop.permute.xlu0 %1057 }
 0xde5   :  { %v1067_v32 = vmul.f32 %v2390_v7, %v1058_v55 }
 0xde7   :  { %v1071_v41 = vsub.f32 %v1039_v17, %v1067_v32 }
 0xde9   :  { %1075 = vst.msk [vmem:[#allocation2 + $0x18] sm:$0xff] %vm71_vm3, %v1071_v41 }
 0xdea   :  { %v1103_v37 = vpop.permute.xlu0 %1102 }
 0xdf0   :  { %v1089_v31 = vld [vmem:[#allocation2 + $0x18] sm:$0xff] }
 0xdf1   :  { %1107 = vperm.xlu0 %1838, %v1089_v31  }
 0xdf4   :  { %v1083_v34 = vpop.permute.xlu1 %1082 }
 0xdf5   :  { %v1085_v6 = vmul.f32 %v1083_v34, %v1077_v18  ;;  %1840 = vset.pattern.permute.xlu0 %v2010_v19  ;;  %v2012_v19 = vmov 21  }
 0xdf7   :  { %v2407_v25 = vrot.slane %v1085_v6, %v2074_v27 }
 0xdf9   :  { %v1116_v39 = vmul.f32 %v2407_v25, %v1103_v37  ;;  %v993_v40 = vpop.permute.xlu1 %992 }
 0xdfa   :  { %v1014_v42 = vmul.f32 %v2374_v49, %v993_v40 }
 0xdfb   :  { %v1120_v44 = vsub.f32 %v1088_v30, %v1116_v39 }
 0xdfc   :  { %v1018_v36 = vsub.f32 %v986_v29, %v1014_v42 }
 0xdfd   :  { %1124 = vst.msk [vmem:[#allocation2 + $0x10] sm:$0xff] %vm71_vm3, %v1120_v44  ;;  %v998_v12 = vpop.permute.xlu1 %997 }
 0xdfe   :  { %1126 = vst.msk [vmem:[#allocation2 + $0x14] sm:$0x1] %vm125_vm5, %v1085_v6  ;;  %v1015_v53 = vmul.f32 %v2374_v49, %v998_v12 }
 0xdff   :  { %1022 = vst.msk [vmem:[#allocation2] sm:$0xff] %vm71_vm3, %v1018_v36 }
 0xe00   :  { %v1019_v46 = vsub.f32 %v987_v24, %v1015_v53 }
 0xe02   :  { %1023 = vst.msk [vmem:[#allocation2 + $0x8] sm:$0xff] %vm71_vm3, %v1019_v46 }
 0xe04   :  { %v1127_v57 = vld [vmem:[#allocation2 + $0x15] sm:$0x1] }
 0xe05   :  { %1916 = vrcp.f32 %v1127_v57  ;;  %v1138_v51 = vld [vmem:[#allocation2 + $0x10] sm:$0xff] }
 0xe06   :  { %v1036_v47 = vld [vmem:[#allocation2] sm:$0xff] }
 0xe07   :  { %1042 = vperm.xlu0 %1840, %v1036_v47  }
 0xe09   :  { %v1037_v48 = vld [vmem:[#allocation2 + $0x8] sm:$0xff] }
 0xe0a   :  { %1047 = vperm.xlu1 %1841, %v1037_v48  }
 0xe0b   :  { %1843 = vset.pattern.permute.xlu0 %v2012_v19 }
 0xe0e   :  { %1842 = vset.pattern.permute.xlu1 %v2012_v19 }
 0xe0f   :  { %v1917_v50 = vpop.eup %1916 }
 0xe10   :  { %1132 = vperm.xlu1 %1842, %v1917_v50  }
 0xe14   :  { %1152 = vperm.xlu1 %1842, %v1138_v51  }
 0xe18   :  { %1844 = vset.pattern.permute.xlu1 %v2011_v8 }
 0xe70   :  { %v1108_v20 = vpop.permute.xlu0 %1107 }
 0xe71   :  { %v1117_v49 = vmul.f32 %v2407_v25, %v1108_v20 }
 0xe73   :  { %v1121_v43 = vsub.f32 %v1089_v31, %v1117_v49 }
 0xe75   :  { %1125 = vst.msk [vmem:[#allocation2 + $0x18] sm:$0xff] %vm71_vm3, %v1121_v43 }
 0xe7c   :  { %v1139_v52 = vld [vmem:[#allocation2 + $0x18] sm:$0xff] }
 0xe7d   :  { %1157 = vperm.xlu0 %1843, %v1139_v52  }
 0xe81   :  { %1845 = vset.pattern.permute.xlu0 %v2013_v16 }
 0xe86   :  { %v1043_v54 = vpop.permute.xlu0 %1042 }
 0xe87   :  { %v1064_v58 = vmul.f32 %v2390_v7, %v1043_v54 }
 0xe89   :  { %v1068_v59 = vsub.f32 %v1036_v47, %v1064_v58  ;;  %v1048_v61 = vpop.permute.xlu1 %1047 }
 0xe8a   :  { %v1065_v28 = vmul.f32 %v2390_v7, %v1048_v61 }
 0xe8b   :  { %1072 = vst.msk [vmem:[#allocation2] sm:$0xff] %vm71_vm3, %v1068_v59 }
 0xe8c   :  { %v1069_v62 = vsub.f32 %v1037_v48, %v1065_v28 }
 0xe8e   :  { %1073 = vst.msk [vmem:[#allocation2 + $0x8] sm:$0xff] %vm71_vm3, %v1069_v62 }
 0xe8f   :  { %v1133_v0 = vpop.permute.xlu1 %1132 }
 0xe90   :  { %v1135_v45 = vmul.f32 %v1133_v0, %v1127_v57  ;;  %v2016_v0 = vmov 25  }
 0xe92   :  { %v1086_v1 = vld [vmem:[#allocation2] sm:$0xff]  ;;  %v2425_v2 = vrot.slane %v1135_v45, %v2074_v27 }
 0xe93   :  { %1092 = vperm.xlu1 %1844, %v1086_v1   ;;  %v1153_v35 = vpop.permute.xlu1 %1152 }
 0xe94   :  { %v1166_v4 = vmul.f32 %v2425_v2, %v1153_v35 }
 0xe95   :  { %v1087_v38 = vld [vmem:[#allocation2 + $0x8] sm:$0xff] }
 0xe96   :  { %v1170_v33 = vsub.f32 %v1138_v51, %v1166_v4 }
 0xe97   :  { %1097 = vperm.xlu1 %1844, %v1087_v38  }
 0xe98   :  { %1174 = vst.msk [vmem:[#allocation2 + $0x10] sm:$0xff] %vm71_vm3, %v1170_v33 }
 0xe99   :  { %1176 = vst.msk [vmem:[#allocation2 + $0x15] sm:$0x1] %vm125_vm5, %v1135_v45 }
 0xe9b   :  { %1846 = vset.pattern.permute.xlu1 %v2013_v16 }
 0xe9f   :  { %v1177_v8 = vld [vmem:[#allocation2 + $0x16] sm:$0x1] }
 0xea0   :  { %v1188_v9 = vld [vmem:[#allocation2 + $0x10] sm:$0xff]  ;;  %1918 = vrcp.f32 %v1177_v8 }
 0xea1   :  { %1202 = vperm.xlu1 %1846, %v1188_v9  }
 0xeaa   :  { %v1919_v63 = vpop.eup %1918 }
 0xeab   :  { %1182 = vperm.xlu0 %1845, %v1919_v63  }
 0xeaf   :  { %1847 = vset.pattern.permute.xlu0 %v2012_v19 }
 0xefc   :  { %v1158_v11 = vpop.permute.xlu0 %1157 }
 0xefd   :  { %v1167_v5 = vmul.f32 %v2425_v2, %v1158_v11 }
 0xeff   :  { %v1171_v13 = vsub.f32 %v1139_v52, %v1167_v5 }
 0xf01   :  { %1175 = vst.msk [vmem:[#allocation2 + $0x18] sm:$0xff] %vm71_vm3, %v1171_v13 }
 0xf08   :  { %v1189_v7 = vld [vmem:[#allocation2 + $0x18] sm:$0xff] }
 0xf09   :  { %1207 = vperm.xlu1 %1846, %v1189_v7  }
 0xf0d   :  { %1848 = vset.pattern.permute.xlu1 %v2012_v19 }
 0xf12   :  { %v1093_v10 = vpop.permute.xlu1 %1092 }
 0xf13   :  { %v1114_v14 = vmul.f32 %v2407_v25, %v1093_v10 }
 0xf15   :  { %v1118_v15 = vsub.f32 %v1086_v1, %v1114_v14 }
 0xf16   :  { %v1098_v17 = vpop.permute.xlu1 %1097 }
 0xf17   :  { %1122 = vst.msk [vmem:[#allocation2] sm:$0xff] %vm71_vm3, %v1118_v15  ;;  %v1115_v18 = vmul.f32 %v2407_v25, %v1098_v17  ;;  %v2015_v25 = vmov 24  }
 0xf19   :  { %v1119_v30 = vsub.f32 %v1087_v38, %v1115_v18 }
 0xf1b   :  { %1123 = vst.msk [vmem:[#allocation2 + $0x8] sm:$0xff] %vm71_vm3, %v1119_v30 }
 0xf1e   :  { %v1136_v21 = vld [vmem:[#allocation2] sm:$0xff] }
 0xf1f   :  { %1142 = vperm.xlu0 %1847, %v1136_v21  }
 0xf20   :  { %v1203_v26 = vpop.permute.xlu1 %1202 }
 0xf22   :  { %v1137_v56 = vld [vmem:[#allocation2 + $0x8] sm:$0xff] }
 0xf23   :  { %1147 = vperm.xlu1 %1848, %v1137_v56   ;;  %1850 = vset.pattern.permute.xlu0 %v2014_v22 }
 0xf27   :  { %1849 = vset.pattern.permute.xlu1 %v2014_v22 }
 0xf2a   :  { %v1183_v23 = vpop.permute.xlu0 %1182 }
 0xf2b   :  { %v1185_v3 = vmul.f32 %v1183_v23, %v1177_v8 }
 0xf2d   :  { %v1213_v60 = vrot.slane %v1185_v3, %v2074_v27 }
 0xf2f   :  { %v1216_v29 = vmul.f32 %v1213_v60, %v1203_v26 }
 0xf31   :  { %v1220_v24 = vsub.f32 %v1188_v9, %v1216_v29 }
 0xf33   :  { %1224 = vst.msk [vmem:[#allocation2 + $0x10] sm:$0xff] %vm71_vm3, %v1220_v24 }
 0xf34   :  { %1226 = vst.msk [vmem:[#allocation2 + $0x16] sm:$0x1] %vm125_vm5, %v1185_v3 }
 0xf3a   :  { %v1227_v55 = vld [vmem:[#allocation2 + $0x17] sm:$0x1] }
 0xf3b   :  { %1920 = vrcp.f32 %v1227_v55  ;;  %v1238_v49 = vld [vmem:[#allocation2 + $0x10] sm:$0xff] }
 0xf45   :  { %v1921_v32 = vpop.eup %1920 }
 0xf46   :  { %1232 = vperm.xlu1 %1849, %v1921_v32  }
 0xf4a   :  { %1851 = vset.pattern.permute.xlu1 %v2013_v16 }
 0xf88   :  { %v1208_v41 = vpop.permute.xlu1 %1207 }
 0xf89   :  { %v1217_v31 = vmul.f32 %v1213_v60, %v1208_v41 }
 0xf8b   :  { %v1221_v34 = vsub.f32 %v1189_v7, %v1217_v31 }
 0xf8d   :  { %1225 = vst.msk [vmem:[#allocation2 + $0x18] sm:$0xff] %vm71_vm3, %v1221_v34 }
 0xf94   :  { %v1239_v6 = vld [vmem:[#allocation2 + $0x18] sm:$0xff] }
 0xf95   :  { %1257 = vperm.xlu0 %1850, %v1239_v6  }
 0xf99   :  { %1852 = vset.pattern.permute.xlu0 %v2015_v25 }
 0xf9e   :  { %v1143_v37 = vpop.permute.xlu0 %1142 }
 0xf9f   :  { %v1164_v39 = vmul.f32 %v2425_v2, %v1143_v37 }
 0xfa1   :  { %v1168_v40 = vsub.f32 %v1136_v21, %v1164_v39 }
 0xfa2   :  { %v1148_v42 = vpop.permute.xlu1 %1147 }
 0xfa3   :  { %1172 = vst.msk [vmem:[#allocation2] sm:$0xff] %vm71_vm3, %v1168_v40  ;;  %v1165_v44 = vmul.f32 %v2425_v2, %v1148_v42 }
 0xfa5   :  { %v1169_v36 = vsub.f32 %v1137_v56, %v1165_v44  ;;  %v2017_v44 = vmov 26  }
 0xfa7   :  { %1173 = vst.msk [vmem:[#allocation2 + $0x8] sm:$0xff] %vm71_vm3, %v1169_v36 }
 0xfaa   :  { %v1186_v12 = vld [vmem:[#allocation2] sm:$0xff] }
 0xfab   :  { %1192 = vperm.xlu1 %1851, %v1186_v12  }
 0xfae   :  { %v1187_v53 = vld [vmem:[#allocation2 + $0x8] sm:$0xff] }
 0xfaf   :  { %1197 = vperm.xlu1 %1851, %v1187_v53  }
 0xfb3   :  { %1853 = vset.pattern.permute.xlu1 %v2015_v25 }
 0xfc5   :  { %v1233_v46 = vpop.permute.xlu1 %1232 }
 0xfc6   :  { %v1235_v57 = vmul.f32 %v1233_v46, %v1227_v55 }
 0xfc8   :  { %v1263_v47 = vrot.slane %v1235_v57, %v2074_v27 }
0x1014   :  { %v1258_v48 = vpop.permute.xlu0 %1257 }
0x1015   :  { %v1267_v19 = vmul.f32 %v1263_v47, %v1258_v48 }
0x1017   :  { %v1271_v50 = vsub.f32 %v1239_v6, %v1267_v19 }
0x1019   :  { %1275 = vst.msk [vmem:[#allocation2 + $0x18] sm:$0xff] %vm71_vm3, %v1271_v50 }
0x1020   :  { %v1289_v51 = vld [vmem:[#allocation2 + $0x18] sm:$0xff] }
0x1021   :  { %v1277_v20 = vld [vmem:[#allocation2 + $0x18] sm:$0x1]  ;;  %1307 = vperm.xlu1 %1853, %v1289_v51  }
0x1022   :  { %1922 = vrcp.f32 %v1277_v20 }
0x1025   :  { %1854 = vset.pattern.permute.xlu1 %v2014_v22 }
0x1026   :  { %1252 = vperm.xlu1 %1854, %v1238_v49  }
0x102a   :  { %v1193_v43 = vpop.permute.xlu1 %1192 }
0x102b   :  { %v1214_v52 = vmul.f32 %v1213_v60, %v1193_v43 }
0x102c   :  { %v1923_v16 = vpop.eup %1922 }
0x102d   :  { %v1218_v54 = vsub.f32 %v1186_v12, %v1214_v52  ;;  %1282 = vperm.xlu0 %1852, %v1923_v16  }
0x102e   :  { %v1198_v58 = vpop.permute.xlu1 %1197 }
0x102f   :  { %1222 = vst.msk [vmem:[#allocation2] sm:$0xff] %vm71_vm3, %v1218_v54  ;;  %v1215_v59 = vmul.f32 %v1213_v60, %v1198_v58 }
0x1031   :  { %v1219_v61 = vsub.f32 %v1187_v53, %v1215_v59  ;;  %1855 = vset.pattern.permute.xlu0 %v2014_v22 }
0x1033   :  { %1223 = vst.msk [vmem:[#allocation2 + $0x8] sm:$0xff] %vm71_vm3, %v1219_v61 }
0x1036   :  { %v1236_v28 = vld [vmem:[#allocation2] sm:$0xff] }
0x1037   :  { %1242 = vperm.xlu0 %1855, %v1236_v28  }
0x103a   :  { %v1237_v62 = vld [vmem:[#allocation2 + $0x8] sm:$0xff] }
0x103b   :  { %1247 = vperm.xlu1 %1854, %v1237_v62   ;;  %1857 = vset.pattern.permute.xlu0 %v2016_v0 }
0x103f   :  { %1856 = vset.pattern.permute.xlu1 %v2016_v0 }
0x10a0   :  { %v1308_v45 = vpop.permute.xlu1 %1307 }
0x10a5   :  { %v1253_v1 = vpop.permute.xlu1 %1252 }
0x10a6   :  { %v1266_v2 = vmul.f32 %v1263_v47, %v1253_v1 }
0x10a8   :  { %v1270_v35 = vsub.f32 %v1238_v49, %v1266_v2 }
0x10aa   :  { %1274 = vst.msk [vmem:[#allocation2 + $0x10] sm:$0xff] %vm71_vm3, %v1270_v35 }
0x10ab   :  { %1276 = vst.msk [vmem:[#allocation2 + $0x17] sm:$0x1] %vm125_vm5, %v1235_v57 }
0x10ac   :  { %v1283_v4 = vpop.permute.xlu0 %1282 }
0x10ad   :  { %v1285_v38 = vmul.f32 %v1283_v4, %v1277_v20 }
0x10af   :  { %v1313_v33 = vrot.slane %v1285_v38, %v2074_v27 }
0x10b1   :  { %v1317_v8 = vmul.f32 %v1313_v33, %v1308_v45 }
0x10b2   :  { %v1288_v17 = vld [vmem:[#allocation2 + $0x10] sm:$0xff] }
0x10b3   :  { %v1321_v9 = vsub.f32 %v1289_v51, %v1317_v8 }
0x10b5   :  { %1325 = vst.msk [vmem:[#allocation2 + $0x18] sm:$0xff] %vm71_vm3, %v1321_v9 }
0x10b6   :  { %1326 = vst.msk [vmem:[#allocation2 + $0x18] sm:$0x1] %vm125_vm5, %v1285_v38  ;;  %v1243_v63 = vpop.permute.xlu0 %1242 }
0x10b7   :  { %v1264_v11 = vmul.f32 %v1263_v47, %v1243_v63 }
0x10b9   :  { %v1268_v5 = vsub.f32 %v1236_v28, %v1264_v11  ;;  %v2018_v28 = vmov 27  }
0x10ba   :  { %v1248_v13 = vpop.permute.xlu1 %1247 }
0x10bb   :  { %1272 = vst.msk [vmem:[#allocation2] sm:$0xff] %vm71_vm3, %v1268_v5  ;;  %v1265_v7 = vmul.f32 %v1263_v47, %v1248_v13 }
0x10bc   :  { %v1327_v10 = vld [vmem:[#allocation2 + $0x19] sm:$0x1] }
0x10bd   :  { %v1269_v14 = vsub.f32 %v1237_v62, %v1265_v7  ;;  %v1339_v15 = vld [vmem:[#allocation2 + $0x18] sm:$0xff]  ;;  %1924 = vrcp.f32 %v1327_v10 }
0x10be   :  { %1357 = vperm.xlu0 %1857, %v1339_v15  }
0x10bf   :  { %1273 = vst.msk [vmem:[#allocation2 + $0x8] sm:$0xff] %vm71_vm3, %v1269_v14 }
0x10c2   :  { %1859 = vset.pattern.permute.xlu0 %v2015_v25  ;;  %v1286_v30 = vld [vmem:[#allocation2] sm:$0xff] }
0x10c3   :  { %1302 = vperm.xlu0 %1859, %v1288_v17  }
0x10c6   :  { %v1287_v21 = vld [vmem:[#allocation2 + $0x8] sm:$0xff] }
0x10c7   :  { %v1925_v18 = vpop.eup %1924  ;;  %1861 = vset.pattern.permute.xlu0 %v2016_v0 }
0x10c8   :  { %1332 = vperm.xlu1 %1856, %v1925_v18  }
0x10cc   :  { %1858 = vset.pattern.permute.xlu1 %v2015_v25 }
0x10cd   :  { %1292 = vperm.xlu1 %1858, %v1286_v30  }
0x10d1   :  { %1297 = vperm.xlu1 %1858, %v1287_v21  }
0x10d5   :  { %1860 = vset.pattern.permute.xlu1 %v2016_v0 }
0x113d   :  { %v1358_v56 = vpop.permute.xlu0 %1357 }
0x1142   :  { %v1303_v22 = vpop.permute.xlu0 %1302 }
0x1143   :  { %v1316_v23 = vmul.f32 %v1313_v33, %v1303_v22 }
0x1145   :  { %v1320_v3 = vsub.f32 %v1288_v17, %v1316_v23 }
0x1147   :  { %1324 = vst.msk [vmem:[#allocation2 + $0x10] sm:$0xff] %vm71_vm3, %v1320_v3  ;;  %v1333_v60 = vpop.permute.xlu1 %1332 }
0x1148   :  { %v1335_v26 = vmul.f32 %v1333_v60, %v1327_v10  ;;  %v2019_v10 = vmov 28  }
0x114a   :  { %v1363_v29 = vrot.slane %v1335_v26, %v2074_v27 }
0x114c   :  { %v1367_v24 = vmul.f32 %v1363_v29, %v1358_v56  ;;  %v1293_v55 = vpop.permute.xlu1 %1292 }
0x114d   :  { %v1314_v32 = vmul.f32 %v1313_v33, %v1293_v55 }
0x114e   :  { %v1371_v41 = vsub.f32 %v1339_v15, %v1367_v24  ;;  %v1338_v40 = vld [vmem:[#allocation2 + $0x10] sm:$0xff] }
0x114f   :  { %v1318_v31 = vsub.f32 %v1286_v30, %v1314_v32 }
0x1150   :  { %1375 = vst.msk [vmem:[#allocation2 + $0x18] sm:$0xff] %vm71_vm3, %v1371_v41  ;;  %v1298_v34 = vpop.permute.xlu1 %1297 }
0x1151   :  { %1376 = vst.msk [vmem:[#allocation2 + $0x19] sm:$0x1] %vm125_vm5, %v1335_v26  ;;  %v1315_v6 = vmul.f32 %v1313_v33, %v1298_v34 }
0x1152   :  { %1322 = vst.msk [vmem:[#allocation2] sm:$0xff] %vm71_vm3, %v1318_v31 }
0x1153   :  { %v1319_v25 = vsub.f32 %v1287_v21, %v1315_v6 }
0x1155   :  { %1323 = vst.msk [vmem:[#allocation2 + $0x8] sm:$0xff] %vm71_vm3, %v1319_v25 }
0x1157   :  { %v1377_v37 = vld [vmem:[#allocation2 + $0x1a] sm:$0x1] }
0x1158   :  { %1926 = vrcp.f32 %v1377_v37  ;;  %v1389_v12 = vld [vmem:[#allocation2 + $0x18] sm:$0xff] }
0x1159   :  { %v1336_v39 = vld [vmem:[#allocation2] sm:$0xff] }
0x115a   :  { %1342 = vperm.xlu1 %1860, %v1336_v39  }
0x115c   :  { %v1337_v42 = vld [vmem:[#allocation2 + $0x8] sm:$0xff] }
0x115d   :  { %1347 = vperm.xlu0 %1861, %v1337_v42  }
0x115e   :  { %1352 = vperm.xlu1 %1860, %v1338_v40  }
0x1161   :  { %1863 = vset.pattern.permute.xlu0 %v2017_v44 }
0x1162   :  { %1862 = vset.pattern.permute.xlu1 %v2017_v44  ;;  %v1927_v36 = vpop.eup %1926 }
0x1163   :  { %1382 = vperm.xlu1 %1862, %v1927_v36  }
0x1167   :  { %1407 = vperm.xlu1 %1862, %v1389_v12  }
0x11d9   :  { %v1343_v53 = vpop.permute.xlu1 %1342 }
0x11da   :  { %v1364_v46 = vmul.f32 %v1363_v29, %v1343_v53 }
0x11dc   :  { %v1368_v57 = vsub.f32 %v1336_v39, %v1364_v46  ;;  %v1348_v47 = vpop.permute.xlu0 %1347 }
0x11dd   :  { %v1353_v48 = vpop.permute.xlu1 %1352  ;;  %v1365_v19 = vmul.f32 %v1363_v29, %v1348_v47 }
0x11de   :  { %1372 = vst.msk [vmem:[#allocation2] sm:$0xff] %vm71_vm3, %v1368_v57  ;;  %v1366_v50 = vmul.f32 %v1363_v29, %v1353_v48 }
0x11df   :  { %v1369_v51 = vsub.f32 %v1337_v42, %v1365_v19 }
0x11e0   :  { %v1370_v20 = vsub.f32 %v1338_v40, %v1366_v50 }
0x11e1   :  { %1373 = vst.msk [vmem:[#allocation2 + $0x8] sm:$0xff] %vm71_vm3, %v1369_v51 }
0x11e2   :  { %1374 = vst.msk [vmem:[#allocation2 + $0x10] sm:$0xff] %vm71_vm3, %v1370_v20  ;;  %v1383_v49 = vpop.permute.xlu1 %1382 }
0x11e3   :  { %v1385_v43 = vmul.f32 %v1383_v49, %v1377_v37  ;;  %v2020_v37 = vmov 29  }
0x11e5   :  { %v1386_v52 = vld [vmem:[#allocation2] sm:$0xff]  ;;  %v1413_v16 = vrot.slane %v1385_v43, %v2074_v27 }
0x11e6   :  { %1392 = vperm.xlu0 %1863, %v1386_v52   ;;  %v1408_v54 = vpop.permute.xlu1 %1407 }
0x11e7   :  { %v1417_v58 = vmul.f32 %v1413_v16, %v1408_v54 }
0x11e8   :  { %v1387_v59 = vld [vmem:[#allocation2 + $0x8] sm:$0xff] }
0x11e9   :  { %v1421_v61 = vsub.f32 %v1389_v12, %v1417_v58  ;;  %1397 = vperm.xlu1 %1862, %v1387_v59   ;;  %v1388_v62 = vld [vmem:[#allocation2 + $0x10] sm:$0xff] }
0x11ea   :  { %1864 = vset.pattern.permute.xlu0 %v2018_v28 }
0x11eb   :  { %1425 = vst.msk [vmem:[#allocation2 + $0x18] sm:$0xff] %vm71_vm3, %v1421_v61 }
0x11ec   :  { %1426 = vst.msk [vmem:[#allocation2 + $0x1a] sm:$0x1] %vm125_vm5, %v1385_v43 }
0x11ed   :  { %1402 = vperm.xlu1 %1862, %v1388_v62  }
0x11f1   :  { %1865 = vset.pattern.permute.xlu1 %v2018_v28 }
0x11f2   :  { %v1427_v0 = vld [vmem:[#allocation2 + $0x1b] sm:$0x1] }
0x11f3   :  { %v1439_v45 = vld [vmem:[#allocation2 + $0x18] sm:$0xff]  ;;  %1928 = vrcp.f32 %v1427_v0 }
0x11f4   :  { %1457 = vperm.xlu1 %1865, %v1439_v45  }
0x11fd   :  { %v1929_v1 = vpop.eup %1928 }
0x11fe   :  { %1432 = vperm.xlu0 %1864, %v1929_v1  }
0x1265   :  { %v1393_v2 = vpop.permute.xlu0 %1392 }
0x1266   :  { %v1414_v35 = vmul.f32 %v1413_v16, %v1393_v2 }
0x1268   :  { %v1418_v4 = vsub.f32 %v1386_v52, %v1414_v35  ;;  %v1398_v38 = vpop.permute.xlu1 %1397 }
0x1269   :  { %v1415_v33 = vmul.f32 %v1413_v16, %v1398_v38 }
0x126a   :  { %1422 = vst.msk [vmem:[#allocation2] sm:$0xff] %vm71_vm3, %v1418_v4 }
0x126b   :  { %v1419_v8 = vsub.f32 %v1387_v59, %v1415_v33  ;;  %v2021_v59 = vmov 30  }
0x126c   :  { %v1403_v9 = vpop.permute.xlu1 %1402 }
0x126d   :  { %1423 = vst.msk [vmem:[#allocation2 + $0x8] sm:$0xff] %vm71_vm3, %v1419_v8  ;;  %v1416_v63 = vmul.f32 %v1413_v16, %v1403_v9 }
0x126f   :  { %v1420_v11 = vsub.f32 %v1388_v62, %v1416_v63 }
0x1271   :  { %v1436_v5 = vld [vmem:[#allocation2] sm:$0xff]  ;;  %1424 = vst.msk [vmem:[#allocation2 + $0x10] sm:$0xff] %vm71_vm3, %v1420_v11 }
0x1272   :  { %1442 = vperm.xlu1 %1865, %v1436_v5  }
0x1273   :  { %v1458_v18 = vpop.permute.xlu1 %1457 }
0x1274   :  { %v1437_v13 = vld [vmem:[#allocation2 + $0x8] sm:$0xff] }
0x1275   :  { %1447 = vperm.xlu0 %1864, %v1437_v13  }
0x1278   :  { %v1438_v7 = vld [vmem:[#allocation2 + $0x10] sm:$0xff] }
0x1279   :  { %1452 = vperm.xlu1 %1865, %v1438_v7   ;;  %1866 = vset.pattern.permute.xlu0 %v2019_v10 }
0x127d   :  { %v1433_v14 = vpop.permute.xlu0 %1432  ;;  %1867 = vset.pattern.permute.xlu1 %v2019_v10 }
0x127e   :  { %v1435_v15 = vmul.f32 %v1433_v14, %v1427_v0 }
0x1280   :  { %v1463_v17 = vrot.slane %v1435_v15, %v2074_v27 }
0x1282   :  { %v1467_v30 = vmul.f32 %v1463_v17, %v1458_v18 }
0x1284   :  { %v1471_v21 = vsub.f32 %v1439_v45, %v1467_v30 }
0x1286   :  { %1475 = vst.msk [vmem:[#allocation2 + $0x18] sm:$0xff] %vm71_vm3, %v1471_v21 }
0x1287   :  { %1476 = vst.msk [vmem:[#allocation2 + $0x1b] sm:$0x1] %vm125_vm5, %v1435_v15 }
0x128d   :  { %v1477_v56 = vld [vmem:[#allocation2 + $0x1c] sm:$0x1] }
0x128e   :  { %v1489_v22 = vld [vmem:[#allocation2 + $0x18] sm:$0xff]  ;;  %1930 = vrcp.f32 %v1477_v56 }
0x128f   :  { %1507 = vperm.xlu1 %1867, %v1489_v22  }
0x1298   :  { %v1931_v23 = vpop.eup %1930 }
0x1299   :  { %1482 = vperm.xlu0 %1866, %v1931_v23  }
0x12f1   :  { %v1443_v3 = vpop.permute.xlu1 %1442 }
0x12f2   :  { %v1464_v60 = vmul.f32 %v1463_v17, %v1443_v3 }
0x12f4   :  { %v1468_v26 = vsub.f32 %v1436_v5, %v1464_v60  ;;  %v1448_v29 = vpop.permute.xlu0 %1447 }
0x12f5   :  { %v1465_v24 = vmul.f32 %v1463_v17, %v1448_v29 }
0x12f6   :  { %1472 = vst.msk [vmem:[#allocation2] sm:$0xff] %vm71_vm3, %v1468_v26 }
0x12f7   :  { %v1469_v55 = vsub.f32 %v1437_v13, %v1465_v24 }
0x12f8   :  { %v1453_v32 = vpop.permute.xlu1 %1452 }
0x12f9   :  { %1473 = vst.msk [vmem:[#allocation2 + $0x8] sm:$0xff] %vm71_vm3, %v1469_v55  ;;  %v1466_v41 = vmul.f32 %v1463_v17, %v1453_v32  ;;  %v2022_v17 = vmov 31  }
0x12fb   :  { %v1470_v31 = vsub.f32 %v1438_v7, %v1466_v41 }
0x12fd   :  { %v1486_v34 = vld [vmem:[#allocation2] sm:$0xff]  ;;  %1474 = vst.msk [vmem:[#allocation2 + $0x10] sm:$0xff] %vm71_vm3, %v1470_v31 }
0x12fe   :  { %1492 = vperm.xlu1 %1867, %v1486_v34  }
0x1300   :  { %v1487_v6 = vld [vmem:[#allocation2 + $0x8] sm:$0xff] }
0x1301   :  { %1497 = vperm.xlu0 %1866, %v1487_v6  }
0x1304   :  { %v1488_v25 = vld [vmem:[#allocation2 + $0x10] sm:$0xff] }
0x1305   :  { %1502 = vperm.xlu1 %1867, %v1488_v25   ;;  %1868 = vset.pattern.permute.xlu0 %v2020_v37 }
0x1309   :  { %1869 = vset.pattern.permute.xlu1 %v2020_v37 }
0x130e   :  { %v1508_v44 = vpop.permute.xlu1 %1507 }
0x1318   :  { %v1483_v39 = vpop.permute.xlu0 %1482 }
0x1319   :  { %v1485_v40 = vmul.f32 %v1483_v39, %v1477_v56 }
0x131b   :  { %v1513_v42 = vrot.slane %v1485_v40, %v2074_v27 }
0x131d   :  { %v1517_v36 = vmul.f32 %v1513_v42, %v1508_v44 }
0x131f   :  { %v1521_v12 = vsub.f32 %v1489_v22, %v1517_v36 }
0x1321   :  { %1525 = vst.msk [vmem:[#allocation2 + $0x18] sm:$0xff] %vm71_vm3, %v1521_v12 }
0x1322   :  { %1526 = vst.msk [vmem:[#allocation2 + $0x1c] sm:$0x1] %vm125_vm5, %v1485_v40 }
0x1328   :  { %v1527_v53 = vld [vmem:[#allocation2 + $0x1d] sm:$0x1] }
0x1329   :  { %v1539_v46 = vld [vmem:[#allocation2 + $0x18] sm:$0xff]  ;;  %1932 = vrcp.f32 %v1527_v53 }
0x132a   :  { %1557 = vperm.xlu1 %1869, %v1539_v46  }
0x1333   :  { %v1933_v57 = vpop.eup %1932 }
0x1334   :  { %1532 = vperm.xlu0 %1868, %v1933_v57  }
0x137d   :  { %v1493_v47 = vpop.permute.xlu1 %1492 }
0x137e   :  { %v1514_v48 = vmul.f32 %v1513_v42, %v1493_v47 }
0x1380   :  { %v1518_v19 = vsub.f32 %v1486_v34, %v1514_v48  ;;  %v1498_v50 = vpop.permute.xlu0 %1497 }
0x1381   :  { %v1515_v51 = vmul.f32 %v1513_v42, %v1498_v50 }
0x1382   :  { %1522 = vst.msk [vmem:[#allocation2] sm:$0xff] %vm71_vm3, %v1518_v19 }
0x1383   :  { %v1519_v20 = vsub.f32 %v1487_v6, %v1515_v51 }
0x1384   :  { %v1503_v49 = vpop.permute.xlu1 %1502 }
0x1385   :  { %1523 = vst.msk [vmem:[#allocation2 + $0x8] sm:$0xff] %vm71_vm3, %v1519_v20  ;;  %v1516_v43 = vmul.f32 %v1513_v42, %v1503_v49 }
0x1387   :  { %v1520_v52 = vsub.f32 %v1488_v25, %v1516_v43 }
0x1389   :  { %v1536_v16 = vld [vmem:[#allocation2] sm:$0xff]  ;;  %1524 = vst.msk [vmem:[#allocation2 + $0x10] sm:$0xff] %vm71_vm3, %v1520_v52 }
0x138a   :  { %1542 = vperm.xlu1 %1869, %v1536_v16  }
0x138c   :  { %v1537_v54 = vld [vmem:[#allocation2 + $0x8] sm:$0xff] }
0x138d   :  { %1547 = vperm.xlu0 %1868, %v1537_v54  }
0x1390   :  { %v1538_v58 = vld [vmem:[#allocation2 + $0x10] sm:$0xff] }
0x1391   :  { %1552 = vperm.xlu1 %1869, %v1538_v58   ;;  %1870 = vset.pattern.permute.xlu0 %v2021_v59 }
0x1395   :  { %1871 = vset.pattern.permute.xlu1 %v2021_v59 }
0x13a9   :  { %v1558_v0 = vpop.permute.xlu1 %1557 }
0x13b3   :  { %v1533_v61 = vpop.permute.xlu0 %1532 }
0x13b4   :  { %v1535_v28 = vmul.f32 %v1533_v61, %v1527_v53 }
0x13b6   :  { %v1563_v62 = vrot.slane %v1535_v28, %v2074_v27 }
0x13b8   :  { %v1567_v45 = vmul.f32 %v1563_v62, %v1558_v0 }
0x13ba   :  { %v1571_v1 = vsub.f32 %v1539_v46, %v1567_v45 }
0x13bc   :  { %1575 = vst.msk [vmem:[#allocation2 + $0x18] sm:$0xff] %vm71_vm3, %v1571_v1 }
0x13bd   :  { %1576 = vst.msk [vmem:[#allocation2 + $0x1d] sm:$0x1] %vm125_vm5, %v1535_v28 }
0x13c3   :  { %v1577_v2 = vld [vmem:[#allocation2 + $0x1e] sm:$0x1] }
0x13c4   :  { %v1589_v35 = vld [vmem:[#allocation2 + $0x18] sm:$0xff]  ;;  %1934 = vrcp.f32 %v1577_v2 }
0x13c5   :  { %1607 = vperm.xlu1 %1871, %v1589_v35  }
0x13ce   :  { %v1935_v4 = vpop.eup %1934 }
0x13cf   :  { %1582 = vperm.xlu0 %1870, %v1935_v4  }
0x1409   :  { %v1543_v38 = vpop.permute.xlu1 %1542 }
0x140a   :  { %v1564_v33 = vmul.f32 %v1563_v62, %v1543_v38 }
0x140c   :  { %v1568_v8 = vsub.f32 %v1536_v16, %v1564_v33  ;;  %v1548_v9 = vpop.permute.xlu0 %1547 }
0x140d   :  { %v1565_v63 = vmul.f32 %v1563_v62, %v1548_v9 }
0x140e   :  { %1572 = vst.msk [vmem:[#allocation2] sm:$0xff] %vm71_vm3, %v1568_v8 }
0x140f   :  { %v1569_v11 = vsub.f32 %v1537_v54, %v1565_v63 }
0x1410   :  { %v1553_v5 = vpop.permute.xlu1 %1552 }
0x1411   :  { %1573 = vst.msk [vmem:[#allocation2 + $0x8] sm:$0xff] %vm71_vm3, %v1569_v11  ;;  %v1566_v13 = vmul.f32 %v1563_v62, %v1553_v5 }
0x1413   :  { %v1570_v7 = vsub.f32 %v1538_v58, %v1566_v13 }
0x1415   :  { %v1586_v10 = vld [vmem:[#allocation2] sm:$0xff]  ;;  %1574 = vst.msk [vmem:[#allocation2 + $0x10] sm:$0xff] %vm71_vm3, %v1570_v7 }
0x1416   :  { %1592 = vperm.xlu1 %1871, %v1586_v10  }
0x1418   :  { %v1587_v14 = vld [vmem:[#allocation2 + $0x8] sm:$0xff] }
0x1419   :  { %1597 = vperm.xlu0 %1870, %v1587_v14  }
0x141c   :  { %v1588_v15 = vld [vmem:[#allocation2 + $0x10] sm:$0xff] }
0x141d   :  { %1602 = vperm.xlu1 %1871, %v1588_v15   ;;  %1872 = vset.pattern.permute.xlu0 %v2022_v17 }
0x1421   :  { %1873 = vset.pattern.permute.xlu1 %v2022_v17 }
0x1444   :  { %v1608_v56 = vpop.permute.xlu1 %1607 }
0x144e   :  { %v1583_v18 = vpop.permute.xlu0 %1582 }
0x144f   :  { %v1585_v30 = vmul.f32 %v1583_v18, %v1577_v2 }
0x1451   :  { %v1613_v21 = vrot.slane %v1585_v30, %v2074_v27 }
0x1453   :  { %v1617_v22 = vmul.f32 %v1613_v21, %v1608_v56 }
0x1455   :  { %v1621_v23 = vsub.f32 %v1589_v35, %v1617_v22 }
0x1457   :  { %1625 = vst.msk [vmem:[#allocation2 + $0x18] sm:$0xff] %vm71_vm3, %v1621_v23 }
0x1458   :  { %1626 = vst.msk [vmem:[#allocation2 + $0x1e] sm:$0x1] %vm125_vm5, %v1585_v30 }
0x145e   :  { %v1627_v3 = vld [vmem:[#allocation2 + $0x1f] sm:$0x1] }
0x145f   :  { %v1639_v60 = vld [vmem:[#allocation2 + $0x18] sm:$0xff]  ;;  %1936 = vrcp.f32 %v1627_v3 }
0x1460   :  { %1657 = vperm.xlu1 %1873, %v1639_v60  }
0x1469   :  { %v1937_v26 = vpop.eup %1936 }
0x146a   :  { %1632 = vperm.xlu0 %1872, %v1937_v26  }
0x1495   :  { %v1593_v29 = vpop.permute.xlu1 %1592 }
0x1496   :  { %v1614_v24 = vmul.f32 %v1613_v21, %v1593_v29 }
0x1498   :  { %v1618_v55 = vsub.f32 %v1586_v10, %v1614_v24  ;;  %v1598_v32 = vpop.permute.xlu0 %1597 }
0x1499   :  { %v1615_v41 = vmul.f32 %v1613_v21, %v1598_v32 }
0x149a   :  { %1622 = vst.msk [vmem:[#allocation2] sm:$0xff] %vm71_vm3, %v1618_v55 }
0x149b   :  { %v1619_v31 = vsub.f32 %v1587_v14, %v1615_v41 }
0x149c   :  { %v1603_v34 = vpop.permute.xlu1 %1602 }
0x149d   :  { %1623 = vst.msk [vmem:[#allocation2 + $0x8] sm:$0xff] %vm71_vm3, %v1619_v31  ;;  %v1616_v6 = vmul.f32 %v1613_v21, %v1603_v34 }
0x149f   :  { %v1620_v25 = vsub.f32 %v1588_v15, %v1616_v6 }
0x14a1   :  { %v1636_v37 = vld [vmem:[#allocation2] sm:$0xff]  ;;  %1624 = vst.msk [vmem:[#allocation2 + $0x10] sm:$0xff] %vm71_vm3, %v1620_v25 }
0x14a2   :  { %1642 = vperm.xlu1 %1873, %v1636_v37  }
0x14a4   :  { %v1637_v39 = vld [vmem:[#allocation2 + $0x8] sm:$0xff] }
0x14a5   :  { %1647 = vperm.xlu0 %1872, %v1637_v39  }
0x14a8   :  { %v1638_v40 = vld [vmem:[#allocation2 + $0x10] sm:$0xff] }
0x14a9   :  { %1652 = vperm.xlu1 %1873, %v1638_v40  }
0x14df   :  { %v1658_v12 = vpop.permute.xlu1 %1657 }
0x14e9   :  { %v1633_v42 = vpop.permute.xlu0 %1632 }
0x14ea   :  { %v1635_v44 = vmul.f32 %v1633_v42, %v1627_v3 }
0x14ec   :  { %v1663_v36 = vrot.slane %v1635_v44, %v2074_v27 }
0x14ee   :  { %v1667_v53 = vmul.f32 %v1663_v36, %v1658_v12 }
0x14f0   :  { %v1671_v46 = vsub.f32 %v1639_v60, %v1667_v53 }
0x14f2   :  { %1675 = vst.msk [vmem:[#allocation2 + $0x18] sm:$0xff] %vm71_vm3, %v1671_v46 }
0x14f3   :  { %1676 = vst.msk [vmem:[#allocation2 + $0x1f] sm:$0x1] %vm125_vm5, %v1635_v44 }
0x14fa   :  { %v1680_v16 = vld [vmem:[#allocation2 + $0x18] sm:$0xff] }
0x1521   :  { %v1643_v57 = vpop.permute.xlu1 %1642 }
0x1522   :  { %v1664_v47 = vmul.f32 %v1663_v36, %v1643_v57 }
0x1524   :  { %v1668_v48 = vsub.f32 %v1636_v37, %v1664_v47  ;;  %v1648_v19 = vpop.permute.xlu0 %1647 }
0x1525   :  { %v1665_v50 = vmul.f32 %v1663_v36, %v1648_v19 }
0x1526   :  { %1672 = vst.msk [vmem:[#allocation2] sm:$0xff] %vm71_vm3, %v1668_v48 }
0x1527   :  { %v1669_v51 = vsub.f32 %v1637_v39, %v1665_v50 }
0x1528   :  { %v1653_v20 = vpop.permute.xlu1 %1652 }
0x1529   :  { %1673 = vst.msk [vmem:[#allocation2 + $0x8] sm:$0xff] %vm71_vm3, %v1669_v51  ;;  %v1666_v49 = vmul.f32 %v1663_v36, %v1653_v20 }
0x152b   :  { %v1670_v27 = vsub.f32 %v1638_v40, %v1666_v49 }
0x152d   :  { %v1677_v43 = vld [vmem:[#allocation2] sm:$0xff]  ;;  %1674 = vst.msk [vmem:[#allocation2 + $0x10] sm:$0xff] %vm71_vm3, %v1670_v27 }
0x152e   :  { %1685 = vrot.lane.b32.xlu0 %v1677_v43, %s2023_s20 }
0x1530   :  { %v1678_v52 = vld [vmem:[#allocation2 + $0x8] sm:$0xff] }
0x1531   :  { %1687 = vrot.lane.b32.xlu1 %v1678_v52, %s2023_s20 }
0x1534   :  { %v1679_v54 = vld [vmem:[#allocation2 + $0x10] sm:$0xff] }
0x1535   :  { %1691 = vrot.lane.b32.xlu1 %v1680_v16, %s2023_s20  ;;  %1689 = vrot.lane.b32.xlu0 %v1679_v54, %s2023_s20 }
0x15a0   :  { %v1686_v58 = vpop.permute.xlu0 %1685 }
0x15a1   :  { %1697 = vst.msk [vmem:[#allocation6] sm:$0xff] %vm66_vm2, %v1686_v58 }
0x15a3   :  { %v1688_v59 = vpop.permute.xlu1 %1687 }
0x15a4   :  { %1698 = vst.msk [vmem:[#allocation6 + $0x8] sm:$0xff] %vm66_vm2, %v1688_v59 }
0x15a7   :  { %v1690_v61 = vpop.permute.xlu0 %1689  ;;  %v1692_v28 = vpop.permute.xlu1 %1691 }
0x15a8   :  { %1699 = vst.msk [vmem:[#allocation6 + $0x10] sm:$0xff] %vm66_vm2, %v1690_v61  ;;  %1700 = vst.msk [vmem:[#allocation6 + $0x18] sm:$0xff] %vm66_vm2, %v1692_v28 }
0x15a9   :  { %1971 = shalt.err (!%p1968_p12)
}
0x15aa   :  { %s1972_s26 = scalar_lea.hbm %s2526_s1, 512 }
0x15ab   :  { %p1973_p13 = scmp.ne.s32.totalorder %s2526_s1, %s1972_s26  ;;  %p1976_p0 = scmp.lt.u32.totalorder %s1972_s26, %s2526_s1 }
0x15ad   :  { %p1978_p1 = pnand %p1976_p0, %p1973_p13 }
0x15af   :  { %1981 = shalt.err (!%p1978_p1)
}
0x15b0   :  { %1712 = dma.vmem_to_hbm [thread:$0]  %s1707_s22, 512, %s2526_s1, [#allocation5], %s1987_s16, %s1987_s16, %s1988_s17  }
0x15b1   :  { %1984 = dma.done.wait [#allocation5], 512  }
0x15b2   :  { %1985 = vsyncadd [#allocation5], 4294966784 }
0x15b3   :  { %1716 = vsyncpa [#allocation4], 1 }
0x15b4   :  { %1717 = vsyncpa [#allocation5], 1 }

</bundles_post_ra>
